<compile_context>
chip_gen: v5e
topology: v5e:2x2
jax: 0.10.0
libtpu: 0.0.40
codegen_flags: <defaults>
</compile_context>

<pallas_src>
import jax
import jax.numpy as jnp
from jax.experimental import pallas as pl
from jax.experimental.pallas import tpu as pltpu

# Model hyper-parameters (small, consistent with the module's __init__)
VOCAB = 64     # vocab_size
EMBED = 16     # embed_size
HIDDEN = 32    # num_hiddens
LAYERS = 2     # num_layers (kernel is specialized to 2)
BATCH = 2
T_DEC = 6      # decoder sequence length
N_ENC = 8      # encoder sequence length
# dropout = 0 -> the Dropout layers are identity (eval semantics).

V_PAD = ((VOCAB + 127) // 128) * 128          # lane-dense logits width
OUT_ROWS = ((T_DEC * BATCH + 7) // 8) * 8     # 8-row-aligned logits rows


def decoder_kernel(enc_ref, kproj_ref, bias_ref, h0_ref, emb_ref,
                   wfused_ref, wv_ref, wctx_ref, wemb_ref, wiu_ref,
                   b_ref, wd_ref, bd_ref,
                   out_ref, hfin_ref):
    H = HIDDEN
    B = BATCH

    # ---- timestep-invariant loads / slices (hoisted out of the T loop) ----
    enc = enc_ref[...]                        # (B, N, H)  attention values
    kproj = kproj_ref[...]                    # (B, N, H)  precomputed key projection
    bias = bias_ref[...]                      # (B, N, 1)  additive mask bias (0 / -1e6)
    wfused = wfused_ref[...]                  # (2H, 7H)   block-diag [ [0,0,Wh0],[Wq,Wh1,0] ]
    wv3 = wv_ref[...].reshape(1, 1, H)        # (1, 1, H)  additive-attention scoring vector
    wctx = wctx_ref[...]                      # (H, 3H)    layer-0 input weights (context rows)
    wiu = wiu_ref[...]                        # (H, 3H)    layer-1 input weights
    b_all = b_ref[...]                        # (4, 3H)    [b_ih_l0, b_hh_l0, b_ih_l1, b_hh_l1]
    b_ih0 = b_all[0:1, :]
    b_hh0 = b_all[1:2, :]
    b_ih1 = b_all[2:3, :]
    b_hh1 = b_all[3:4, :]
    wd = wd_ref[...]                          # (H, V_PAD) lane-dense output projection
    bd = bd_ref[...]                          # (1, V_PAD)

    # Embedding gate contribution for ALL timesteps: one batched dot off the
    # serial recurrence chain (layer-0 input bias folded in).
    gi_emb_all = jnp.dot(emb_ref[...], wemb_ref[...],
                         preferred_element_type=jnp.float32) + b_ih0       # (T*B, 3H)

    h0 = h0_ref[0]                            # (B, H)  layer-0 hidden
    h1 = h0_ref[1]                            # (B, H)  layer-1 (top) hidden

    outs = []
    for t in range(T_DEC):
        # ---- ONE fused MXU dot for everything depending on h_{t-1} ----
        # [h0 | h1] @ wfused  ->  [ q | gh1 | gh0 ]
        hcat = jnp.concatenate([h0, h1], axis=1)                            # (B, 2H)
        fused = jnp.dot(hcat, wfused, preferred_element_type=jnp.float32)   # (B, 7H)
        q = fused[:, 0:H]                                                   # (B, H)
        gh1 = fused[:, H:4 * H] + b_hh1                                     # (B, 3H)
        gh0 = fused[:, 4 * H:7 * H] + b_hh0                                 # (B, 3H)

        # ---- Bahdanau additive attention (query = previous top hidden) ----
        feat = jnp.tanh(kproj + q[:, None, :])                              # (B, N, H)
        scores = jnp.sum(feat * wv3, axis=-1, keepdims=True) + bias         # (B, N, 1)
        m = jnp.max(scores, axis=1, keepdims=True)
        e = jnp.exp(scores - m)
        attn = e / jnp.sum(e, axis=1, keepdims=True)                        # (B, N, 1)
        context = jnp.sum(attn * enc, axis=1)                               # (B, H)
        # TODO(synk): per-step attention_weights maps are not materialized as outputs.

        # ---- GRU layer 0 (gh0 already produced by the fused dot) ----
        gi0 = (jnp.dot(context, wctx, preferred_element_type=jnp.float32)
               + gi_emb_all[t * B:(t + 1) * B, :])
        r0 = jax.nn.sigmoid(gi0[:, 0:H] + gh0[:, 0:H])
        z0 = jax.nn.sigmoid(gi0[:, H:2 * H] + gh0[:, H:2 * H])
        n0 = jnp.tanh(gi0[:, 2 * H:3 * H] + r0 * gh0[:, 2 * H:3 * H])
        h0 = (1.0 - z0) * n0 + z0 * h0

        # ---- GRU layer 1 (gh1 already produced by the fused dot) ----
        gi1 = jnp.dot(h0, wiu, preferred_element_type=jnp.float32) + b_ih1
        r1 = jax.nn.sigmoid(gi1[:, 0:H] + gh1[:, 0:H])
        z1 = jax.nn.sigmoid(gi1[:, H:2 * H] + gh1[:, H:2 * H])
        n1 = jnp.tanh(gi1[:, 2 * H:3 * H] + r1 * gh1[:, 2 * H:3 * H])
        h1 = (1.0 - z1) * n1 + z1 * h1

        outs.append(h1)                      # stays in vregs; no VMEM scratch

    # ---- output projection: one lane-dense matmul over all (padded) rows ----
    pad_rows = out_ref.shape[0] - T_DEC * B
    dense_in = jnp.concatenate(
        outs + [jnp.zeros((pad_rows, H), jnp.float32)], axis=0)             # (OUT_ROWS, H)
    out_ref[...] = jnp.dot(dense_in, wd, preferred_element_type=jnp.float32) + bd

    # final hidden state written exactly once
    hfin_ref[0] = h0
    hfin_ref[1] = h1


def seq2seq_attention_decoder_forward(tokens, enc_outputs, hidden_state,
                                      enc_valid_lens, params):
    assert LAYERS == 2, "kernel is specialized to a 2-layer GRU"
    B, T = tokens.shape
    _, N, H = enc_outputs.shape
    V = VOCAB

    # Glue: embedding gather + permute(1,0,2) (torch: self.embedding(X).permute(1,0,2)),
    # flattened time-major so the kernel can do one batched embedding-gate dot.
    emb_flat = jnp.transpose(params['embedding'][tokens], (1, 0, 2)).reshape(T * B, EMBED)

    # Hoisted, timestep-invariant encoder key projection: enc @ Wk.T
    kproj = jnp.einsum('bni,oi->bno', enc_outputs, params['Wk'])            # (B, N, H)

    # Hoisted additive attention-mask bias (0 valid / -1e6 padded)
    bias = jnp.where(jnp.arange(N, dtype=jnp.int32)[None, :, None]
                     < enc_valid_lens.astype(jnp.int32)[:, None, None],
                     0.0, -1e6).astype(jnp.float32)                         # (B, N, 1)

    # ---- weight packing (PyTorch stores y = x @ W.T; GRU gate order r, z, n) ----
    Wq_t = params['Wq'].T                                                   # (H, H)
    Wh0_t = params['W_hh_l0'].T                                             # (H, 3H)
    Wh1_t = params['W_hh_l1'].T                                             # (H, 3H)
    zH_H = jnp.zeros((H, H), jnp.float32)
    zH_3H = jnp.zeros((H, 3 * H), jnp.float32)
    # Block-diagonal fused slab; column order [Wq | Wh1 | Wh0] keeps the query
    # columns inside the first 128-lane tile (v5e MXU is 128 wide).
    w_fused = jnp.concatenate([
        jnp.concatenate([zH_H, zH_3H, Wh0_t], axis=1),   # rows multiplied by h0
        jnp.concatenate([Wq_t, Wh1_t, zH_3H], axis=1),   # rows multiplied by h1
    ], axis=0)                                                              # (2H, 7H)

    W_ih0 = params['W_ih_l0']                                               # (3H, H+E)
    w_ctx = W_ih0[:, :H].T                                                  # (H, 3H)
    w_emb = W_ih0[:, H:].T                                                  # (E, 3H)
    w_iu = params['W_ih_l1'].T                                              # (H, 3H)
    b_slab = jnp.stack([params['b_ih_l0'], params['b_hh_l0'],
                        params['b_ih_l1'], params['b_hh_l1']], axis=0)      # (4, 3H)

    # Lane-dense (128-wide) output projection weights; rows padded to 8-multiple.
    wd_pad = jnp.zeros((H, V_PAD), jnp.float32).at[:, :V].set(params['Wd'].T)
    bd_pad = jnp.zeros((1, V_PAD), jnp.float32).at[:, :V].set(params['bd'][None, :])

    inputs = [enc_outputs, kproj, bias, hidden_state, emb_flat,
              w_fused, params['wv'], w_ctx, w_emb, w_iu, b_slab, wd_pad, bd_pad]

    vmem = pl.BlockSpec(memory_space=pltpu.MemorySpace.VMEM)
    out_padded, h_final = pl.pallas_call(
        decoder_kernel,
        out_shape=(jax.ShapeDtypeStruct((OUT_ROWS, V_PAD), jnp.float32),
                   jax.ShapeDtypeStruct((LAYERS, B, H), jnp.float32)),
        in_specs=[vmem] * len(inputs),
        out_specs=(vmem, vmem),
    )(*inputs)

    # (OUT_ROWS, V_PAD) -> (T, B, V) -> torch's outputs.permute(1, 0, 2)
    outputs = jnp.transpose(out_padded[:T * B, :V].reshape(T, B, V), (1, 0, 2))
    return outputs, (enc_outputs, h_final, enc_valid_lens)


def reference_forward(tokens, enc_outputs, h0, valid_lens, params):
    """Pure-JAX reference mirroring the PyTorch forward (dropout=0, eval)."""
    B, T = tokens.shape
    H = HIDDEN
    emb = params['embedding'][tokens]                       # (B, T, E)
    h = h0
    outs = []
    for t in range(T):
        query = h[-1]                                       # (B, H)
        qp = query @ params['Wq'].T
        kp = jnp.einsum('bne,he->bnh', enc_outputs, params['Wk'])
        feat = jnp.tanh(qp[:, None, :] + kp)
        scores = jnp.einsum('bnh,oh->bno', feat, params['wv'])[..., 0]  # (B, N)
        mask = jnp.arange(enc_outputs.shape[1])[None, :] < valid_lens[:, None]
        scores = jnp.where(mask, scores, -1e6)
        attn = jax.nn.softmax(scores, axis=-1)
        context = jnp.einsum('bn,bnh->bh', attn, enc_outputs)
        layer_in = jnp.concatenate([context, emb[:, t, :]], axis=-1)
        new_h = []
        for l in range(LAYERS):
            W_ih, W_hh = params[f'W_ih_l{l}'], params[f'W_hh_l{l}']
            b_ih, b_hh = params[f'b_ih_l{l}'], params[f'b_hh_l{l}']
            hp = h[l]
            gi = layer_in @ W_ih.T + b_ih
            gh = hp @ W_hh.T + b_hh
            r = jax.nn.sigmoid(gi[:, :H] + gh[:, :H])
            z = jax.nn.sigmoid(gi[:, H:2 * H] + gh[:, H:2 * H])
            n = jnp.tanh(gi[:, 2 * H:] + r * gh[:, 2 * H:])
            hn = (1.0 - z) * n + z * hp
            new_h.append(hn)
            layer_in = hn
        h = jnp.stack(new_h, axis=0)
        outs.append(layer_in)
    out = jnp.stack(outs, axis=0)                           # (T, B, H)
    logits = out @ params['Wd'].T + params['bd']
    return jnp.transpose(logits, (1, 0, 2)), h


def _make_params(key):
    ks = iter(jax.random.split(key, 32))

    def nrm(shape, scale=0.1):
        return (scale * jax.random.normal(next(ks), shape)).astype(jnp.float32)

    p = {}
    p['embedding'] = nrm((VOCAB, EMBED), 0.3)
    p['Wq'] = nrm((HIDDEN, HIDDEN))
    p['Wk'] = nrm((HIDDEN, HIDDEN))
    p['wv'] = nrm((1, HIDDEN))
    for l in range(LAYERS):
        in_l = HIDDEN + EMBED if l == 0 else HIDDEN
        p[f'W_ih_l{l}'] = nrm((3 * HIDDEN, in_l))
        p[f'W_hh_l{l}'] = nrm((3 * HIDDEN, HIDDEN))
        p[f'b_ih_l{l}'] = nrm((3 * HIDDEN,))
        p[f'b_hh_l{l}'] = nrm((3 * HIDDEN,))
    p['Wd'] = nrm((VOCAB, HIDDEN))
    p['bd'] = nrm((VOCAB,))
    return p


if __name__ == "__main__":
    key = jax.random.PRNGKey(0)
    k_par, k_tok, k_enc, k_h = jax.random.split(key, 4)
    params = _make_params(k_par)

    tokens = jax.random.randint(k_tok, (BATCH, T_DEC), 0, VOCAB, dtype=jnp.int32)
    enc_outputs = (0.5 * jax.random.normal(k_enc, (BATCH, N_ENC, HIDDEN))
                   ).astype(jnp.float32)
    hidden_state = (0.5 * jax.random.normal(k_h, (LAYERS, BATCH, HIDDEN))
                    ).astype(jnp.float32)
    enc_valid_lens = jnp.array([5, 8], dtype=jnp.int32)

    out, (enc_o, h_fin, vl) = seq2seq_attention_decoder_forward(
        tokens, enc_outputs, hidden_state, enc_valid_lens, params)
    out = jax.block_until_ready(out)
    h_fin = jax.block_until_ready(h_fin)

    # Reference computed at full f32 matmul precision; the kernel uses default
    # (bf16-pass MXU, f32 accumulation), so allow a modest tolerance.
    with jax.default_matmul_precision('highest'):
        ref_out, ref_h = reference_forward(tokens, enc_outputs, hidden_state,
                                           enc_valid_lens, params)
        ref_out = jax.block_until_ready(ref_out)

    assert out.shape == (BATCH, T_DEC, VOCAB)
    assert h_fin.shape == (LAYERS, BATCH, HIDDEN)
    assert jnp.allclose(out, ref_out, atol=1e-2, rtol=1e-2)
    assert jnp.allclose(h_fin, ref_h, atol=1e-2, rtol=1e-2)
    print("KERNEL_OK")
</pallas_src>

<mosaic_0001>
module attributes {stable_mosaic.version = 11 : i64} {
  func.func @decoder_kernel(%arg0: memref<2x8x32xf32, #tpu.memory_space<vmem>>, %arg1: memref<2x8x32xf32, #tpu.memory_space<vmem>>, %arg2: memref<2x8x1xf32, #tpu.memory_space<vmem>>, %arg3: memref<2x2x32xf32, #tpu.memory_space<vmem>>, %arg4: memref<12x16xf32, #tpu.memory_space<vmem>>, %arg5: memref<64x224xf32, #tpu.memory_space<vmem>>, %arg6: memref<1x32xf32, #tpu.memory_space<vmem>>, %arg7: memref<32x96xf32, #tpu.memory_space<vmem>>, %arg8: memref<16x96xf32, #tpu.memory_space<vmem>>, %arg9: memref<32x96xf32, #tpu.memory_space<vmem>>, %arg10: memref<4x96xf32, #tpu.memory_space<vmem>>, %arg11: memref<32x128xf32, #tpu.memory_space<vmem>>, %arg12: memref<1x128xf32, #tpu.memory_space<vmem>>, %arg13: memref<16x128xf32, #tpu.memory_space<vmem>>, %arg14: memref<2x2x32xf32, #tpu.memory_space<vmem>>) attributes {dimension_semantics = [], scalar_prefetch = 0 : i64, scratch_operands = 0 : i64, tpu.core_type = #tpu.core_type<tc>} {
    %c0 = arith.constant 0 : index
    %c0_0 = arith.constant 0 : index
    %c0_1 = arith.constant 0 : index
    %0 = vector.load %arg0[%c0, %c0_0, %c0_1] : memref<2x8x32xf32, #tpu.memory_space<vmem>>, vector<2x8x32xf32>
    %c0_2 = arith.constant 0 : index
    %c0_3 = arith.constant 0 : index
    %c0_4 = arith.constant 0 : index
    %1 = vector.load %arg1[%c0_2, %c0_3, %c0_4] : memref<2x8x32xf32, #tpu.memory_space<vmem>>, vector<2x8x32xf32>
    %c0_5 = arith.constant 0 : index
    %c0_6 = arith.constant 0 : index
    %c0_7 = arith.constant 0 : index
    %2 = vector.load %arg2[%c0_5, %c0_6, %c0_7] : memref<2x8x1xf32, #tpu.memory_space<vmem>>, vector<2x8x1xf32>
    %c0_8 = arith.constant 0 : index
    %c0_9 = arith.constant 0 : index
    %3 = vector.load %arg5[%c0_8, %c0_9] : memref<64x224xf32, #tpu.memory_space<vmem>>, vector<64x224xf32>
    %c0_10 = arith.constant 0 : index
    %c0_11 = arith.constant 0 : index
    %4 = vector.load %arg6[%c0_10, %c0_11] : memref<1x32xf32, #tpu.memory_space<vmem>>, vector<1x32xf32>
    %5 = vector.shape_cast %4 : vector<1x32xf32> to vector<1x1x32xf32>
    %c0_12 = arith.constant 0 : index
    %c0_13 = arith.constant 0 : index
    %6 = vector.load %arg7[%c0_12, %c0_13] : memref<32x96xf32, #tpu.memory_space<vmem>>, vector<32x96xf32>
    %c0_14 = arith.constant 0 : index
    %c0_15 = arith.constant 0 : index
    %7 = vector.load %arg9[%c0_14, %c0_15] : memref<32x96xf32, #tpu.memory_space<vmem>>, vector<32x96xf32>
    %c0_16 = arith.constant 0 : index
    %c0_17 = arith.constant 0 : index
    %8 = vector.load %arg10[%c0_16, %c0_17] : memref<4x96xf32, #tpu.memory_space<vmem>>, vector<4x96xf32>
    %9 = vector.extract_strided_slice %8 {offsets = [0, 0], sizes = [1, 96], strides = [1, 1]} : vector<4x96xf32> to vector<1x96xf32>
    %10 = vector.extract_strided_slice %8 {offsets = [1, 0], sizes = [1, 96], strides = [1, 1]} : vector<4x96xf32> to vector<1x96xf32>
    %11 = vector.extract_strided_slice %8 {offsets = [2, 0], sizes = [1, 96], strides = [1, 1]} : vector<4x96xf32> to vector<1x96xf32>
    %12 = vector.extract_strided_slice %8 {offsets = [3, 0], sizes = [1, 96], strides = [1, 1]} : vector<4x96xf32> to vector<1x96xf32>
    %c0_18 = arith.constant 0 : index
    %c0_19 = arith.constant 0 : index
    %13 = vector.load %arg11[%c0_18, %c0_19] : memref<32x128xf32, #tpu.memory_space<vmem>>, vector<32x128xf32>
    %c0_20 = arith.constant 0 : index
    %c0_21 = arith.constant 0 : index
    %14 = vector.load %arg12[%c0_20, %c0_21] : memref<1x128xf32, #tpu.memory_space<vmem>>, vector<1x128xf32>
    %c0_22 = arith.constant 0 : index
    %c0_23 = arith.constant 0 : index
    %15 = vector.load %arg4[%c0_22, %c0_23] : memref<12x16xf32, #tpu.memory_space<vmem>>, vector<12x16xf32>
    %c0_24 = arith.constant 0 : index
    %c0_25 = arith.constant 0 : index
    %16 = vector.load %arg8[%c0_24, %c0_25] : memref<16x96xf32, #tpu.memory_space<vmem>>, vector<16x96xf32>
    %cst = arith.constant dense<0.000000e+00> : vector<12x96xf32>
    %17 = tpu.matmul %15, %16, %cst {dimension_numbers = #tpu.dot_dimension_numbers<[1], [0], [0], [1], [0, 0, 1, 1], [], []>} : vector<12x16xf32>, vector<16x96xf32>, vector<12x96xf32> -> vector<12x96xf32>
    %18 = vector.broadcast %9 : vector<1x96xf32> to vector<12x96xf32>
    %19 = arith.addf %17, %18 : vector<12x96xf32>
    %c0_26 = arith.constant 0 : index
    %c0_27 = arith.constant 0 : index
    %c0_28 = arith.constant 0 : index
    %20 = vector.load %arg3[%c0_26, %c0_27, %c0_28] : memref<2x2x32xf32, #tpu.memory_space<vmem>>, vector<1x2x32xf32>
    %21 = vector.shape_cast %20 : vector<1x2x32xf32> to vector<2x32xf32>
    %c1 = arith.constant 1 : index
    %c0_29 = arith.constant 0 : index
    %c0_30 = arith.constant 0 : index
    %22 = vector.load %arg3[%c1, %c0_29, %c0_30] : memref<2x2x32xf32, #tpu.memory_space<vmem>>, vector<1x2x32xf32>
    %23 = vector.shape_cast %22 : vector<1x2x32xf32> to vector<2x32xf32>
    %24 = tpu.concatenate %21, %23 in 1 : vector<2x32xf32>, vector<2x32xf32> -> vector<2x64xf32>
    %cst_31 = arith.constant dense<0.000000e+00> : vector<2x224xf32>
    %25 = tpu.matmul %24, %3, %cst_31 {dimension_numbers = #tpu.dot_dimension_numbers<[1], [0], [0], [1], [0, 0, 1, 1], [], []>} : vector<2x64xf32>, vector<64x224xf32>, vector<2x224xf32> -> vector<2x224xf32>
    %26 = vector.extract_strided_slice %25 {offsets = [0, 0], sizes = [2, 32], strides = [1, 1]} : vector<2x224xf32> to vector<2x32xf32>
    %27 = vector.extract_strided_slice %25 {offsets = [0, 32], sizes = [2, 96], strides = [1, 1]} : vector<2x224xf32> to vector<2x96xf32>
    %28 = vector.broadcast %12 : vector<1x96xf32> to vector<2x96xf32>
    %29 = arith.addf %27, %28 : vector<2x96xf32>
    %30 = vector.extract_strided_slice %25 {offsets = [0, 128], sizes = [2, 96], strides = [1, 1]} : vector<2x224xf32> to vector<2x96xf32>
    %31 = vector.broadcast %10 : vector<1x96xf32> to vector<2x96xf32>
    %32 = arith.addf %30, %31 : vector<2x96xf32>
    %33 = vector.shape_cast %26 : vector<2x32xf32> to vector<2x1x32xf32>
    %34 = vector.broadcast %33 : vector<2x1x32xf32> to vector<2x8x32xf32>
    %35 = arith.addf %1, %34 : vector<2x8x32xf32>
    %36 = math.tanh %35 : vector<2x8x32xf32>
    %37 = vector.broadcast %5 : vector<1x1x32xf32> to vector<2x8x32xf32>
    %38 = arith.mulf %36, %37 : vector<2x8x32xf32>
    %cst_32 = arith.constant dense<0.000000e+00> : vector<2x8xf32>
    %39 = vector.multi_reduction <add>, %38, %cst_32 [2] : vector<2x8x32xf32> to vector<2x8xf32>
    %40 = vector.shape_cast %39 : vector<2x8xf32> to vector<2x8x1xf32>
    %41 = arith.addf %40, %2 : vector<2x8x1xf32>
    %cst_33 = arith.constant dense<0xFF800000> : vector<2x1xf32>
    %42 = vector.multi_reduction <maximumf>, %41, %cst_33 [1] : vector<2x8x1xf32> to vector<2x1xf32>
    %43 = vector.shape_cast %42 : vector<2x1xf32> to vector<2x1x1xf32>
    %44 = vector.broadcast %43 : vector<2x1x1xf32> to vector<2x8x1xf32>
    %45 = arith.subf %41, %44 : vector<2x8x1xf32>
    %46 = math.exp %45 : vector<2x8x1xf32>
    %cst_34 = arith.constant dense<0.000000e+00> : vector<2x1xf32>
    %47 = vector.multi_reduction <add>, %46, %cst_34 [1] : vector<2x8x1xf32> to vector<2x1xf32>
    %48 = vector.shape_cast %47 : vector<2x1xf32> to vector<2x1x1xf32>
    %49 = vector.broadcast %48 : vector<2x1x1xf32> to vector<2x8x1xf32>
    %50 = arith.divf %46, %49 : vector<2x8x1xf32>
    %51 = vector.broadcast %50 : vector<2x8x1xf32> to vector<2x8x32xf32>
    %52 = arith.mulf %51, %0 : vector<2x8x32xf32>
    %cst_35 = arith.constant dense<0.000000e+00> : vector<2x32xf32>
    %53 = vector.multi_reduction <add>, %52, %cst_35 [1] : vector<2x8x32xf32> to vector<2x32xf32>
    %cst_36 = arith.constant dense<0.000000e+00> : vector<2x96xf32>
    %54 = tpu.matmul %53, %6, %cst_36 {dimension_numbers = #tpu.dot_dimension_numbers<[1], [0], [0], [1], [0, 0, 1, 1], [], []>} : vector<2x32xf32>, vector<32x96xf32>, vector<2x96xf32> -> vector<2x96xf32>
    %55 = vector.extract_strided_slice %19 {offsets = [0, 0], sizes = [2, 96], strides = [1, 1]} : vector<12x96xf32> to vector<2x96xf32>
    %56 = arith.addf %54, %55 : vector<2x96xf32>
    %57 = vector.extract_strided_slice %56 {offsets = [0, 0], sizes = [2, 32], strides = [1, 1]} : vector<2x96xf32> to vector<2x32xf32>
    %58 = vector.extract_strided_slice %32 {offsets = [0, 0], sizes = [2, 32], strides = [1, 1]} : vector<2x96xf32> to vector<2x32xf32>
    %59 = arith.addf %57, %58 : vector<2x32xf32>
    %60 = arith.negf %59 : vector<2x32xf32>
    %61 = math.exp %60 : vector<2x32xf32>
    %cst_37 = arith.constant 1.000000e+00 : f32
    %62 = vector.broadcast %cst_37 : f32 to vector<2x32xf32>
    %63 = arith.addf %62, %61 : vector<2x32xf32>
    %64 = arith.divf %62, %63 : vector<2x32xf32>
    %65 = vector.extract_strided_slice %56 {offsets = [0, 32], sizes = [2, 32], strides = [1, 1]} : vector<2x96xf32> to vector<2x32xf32>
    %66 = vector.extract_strided_slice %32 {offsets = [0, 32], sizes = [2, 32], strides = [1, 1]} : vector<2x96xf32> to vector<2x32xf32>
    %67 = arith.addf %65, %66 : vector<2x32xf32>
    %68 = arith.negf %67 : vector<2x32xf32>
    %69 = math.exp %68 : vector<2x32xf32>
    %cst_38 = arith.constant 1.000000e+00 : f32
    %70 = vector.broadcast %cst_38 : f32 to vector<2x32xf32>
    %71 = arith.addf %70, %69 : vector<2x32xf32>
    %72 = arith.divf %70, %71 : vector<2x32xf32>
    %73 = vector.extract_strided_slice %56 {offsets = [0, 64], sizes = [2, 32], strides = [1, 1]} : vector<2x96xf32> to vector<2x32xf32>
    %74 = vector.extract_strided_slice %32 {offsets = [0, 64], sizes = [2, 32], strides = [1, 1]} : vector<2x96xf32> to vector<2x32xf32>
    %75 = arith.mulf %64, %74 : vector<2x32xf32>
    %76 = arith.addf %73, %75 : vector<2x32xf32>
    %77 = math.tanh %76 : vector<2x32xf32>
    %cst_39 = arith.constant 1.000000e+00 : f32
    %78 = vector.broadcast %cst_39 : f32 to vector<2x32xf32>
    %79 = arith.subf %78, %72 : vector<2x32xf32>
    %80 = arith.mulf %79, %77 : vector<2x32xf32>
    %81 = arith.mulf %72, %21 : vector<2x32xf32>
    %82 = arith.addf %80, %81 : vector<2x32xf32>
    %cst_40 = arith.constant dense<0.000000e+00> : vector<2x96xf32>
    %83 = tpu.matmul %82, %7, %cst_40 {dimension_numbers = #tpu.dot_dimension_numbers<[1], [0], [0], [1], [0, 0, 1, 1], [], []>} : vector<2x32xf32>, vector<32x96xf32>, vector<2x96xf32> -> vector<2x96xf32>
    %84 = vector.broadcast %11 : vector<1x96xf32> to vector<2x96xf32>
    %85 = arith.addf %83, %84 : vector<2x96xf32>
    %86 = vector.extract_strided_slice %85 {offsets = [0, 0], sizes = [2, 32], strides = [1, 1]} : vector<2x96xf32> to vector<2x32xf32>
    %87 = vector.extract_strided_slice %29 {offsets = [0, 0], sizes = [2, 32], strides = [1, 1]} : vector<2x96xf32> to vector<2x32xf32>
    %88 = arith.addf %86, %87 : vector<2x32xf32>
    %89 = arith.negf %88 : vector<2x32xf32>
    %90 = math.exp %89 : vector<2x32xf32>
    %cst_41 = arith.constant 1.000000e+00 : f32
    %91 = vector.broadcast %cst_41 : f32 to vector<2x32xf32>
    %92 = arith.addf %91, %90 : vector<2x32xf32>
    %93 = arith.divf %91, %92 : vector<2x32xf32>
    %94 = vector.extract_strided_slice %85 {offsets = [0, 32], sizes = [2, 32], strides = [1, 1]} : vector<2x96xf32> to vector<2x32xf32>
    %95 = vector.extract_strided_slice %29 {offsets = [0, 32], sizes = [2, 32], strides = [1, 1]} : vector<2x96xf32> to vector<2x32xf32>
    %96 = arith.addf %94, %95 : vector<2x32xf32>
    %97 = arith.negf %96 : vector<2x32xf32>
    %98 = math.exp %97 : vector<2x32xf32>
    %cst_42 = arith.constant 1.000000e+00 : f32
    %99 = vector.broadcast %cst_42 : f32 to vector<2x32xf32>
    %100 = arith.addf %99, %98 : vector<2x32xf32>
    %101 = arith.divf %99, %100 : vector<2x32xf32>
    %102 = vector.extract_strided_slice %85 {offsets = [0, 64], sizes = [2, 32], strides = [1, 1]} : vector<2x96xf32> to vector<2x32xf32>
    %103 = vector.extract_strided_slice %29 {offsets = [0, 64], sizes = [2, 32], strides = [1, 1]} : vector<2x96xf32> to vector<2x32xf32>
    %104 = arith.mulf %93, %103 : vector<2x32xf32>
    %105 = arith.addf %102, %104 : vector<2x32xf32>
    %106 = math.tanh %105 : vector<2x32xf32>
    %cst_43 = arith.constant 1.000000e+00 : f32
    %107 = vector.broadcast %cst_43 : f32 to vector<2x32xf32>
    %108 = arith.subf %107, %101 : vector<2x32xf32>
    %109 = arith.mulf %108, %106 : vector<2x32xf32>
    %110 = arith.mulf %101, %23 : vector<2x32xf32>
    %111 = arith.addf %109, %110 : vector<2x32xf32>
    %112 = tpu.concatenate %82, %111 in 1 : vector<2x32xf32>, vector<2x32xf32> -> vector<2x64xf32>
    %cst_44 = arith.constant dense<0.000000e+00> : vector<2x224xf32>
    %113 = tpu.matmul %112, %3, %cst_44 {dimension_numbers = #tpu.dot_dimension_numbers<[1], [0], [0], [1], [0, 0, 1, 1], [], []>} : vector<2x64xf32>, vector<64x224xf32>, vector<2x224xf32> -> vector<2x224xf32>
    %114 = vector.extract_strided_slice %113 {offsets = [0, 0], sizes = [2, 32], strides = [1, 1]} : vector<2x224xf32> to vector<2x32xf32>
    %115 = vector.extract_strided_slice %113 {offsets = [0, 32], sizes = [2, 96], strides = [1, 1]} : vector<2x224xf32> to vector<2x96xf32>
    %116 = vector.broadcast %12 : vector<1x96xf32> to vector<2x96xf32>
    %117 = arith.addf %115, %116 : vector<2x96xf32>
    %118 = vector.extract_strided_slice %113 {offsets = [0, 128], sizes = [2, 96], strides = [1, 1]} : vector<2x224xf32> to vector<2x96xf32>
    %119 = vector.broadcast %10 : vector<1x96xf32> to vector<2x96xf32>
    %120 = arith.addf %118, %119 : vector<2x96xf32>
    %121 = vector.shape_cast %114 : vector<2x32xf32> to vector<2x1x32xf32>
    %122 = vector.broadcast %121 : vector<2x1x32xf32> to vector<2x8x32xf32>
    %123 = arith.addf %1, %122 : vector<2x8x32xf32>
    %124 = math.tanh %123 : vector<2x8x32xf32>
    %125 = vector.broadcast %5 : vector<1x1x32xf32> to vector<2x8x32xf32>
    %126 = arith.mulf %124, %125 : vector<2x8x32xf32>
    %cst_45 = arith.constant dense<0.000000e+00> : vector<2x8xf32>
    %127 = vector.multi_reduction <add>, %126, %cst_45 [2] : vector<2x8x32xf32> to vector<2x8xf32>
    %128 = vector.shape_cast %127 : vector<2x8xf32> to vector<2x8x1xf32>
    %129 = arith.addf %128, %2 : vector<2x8x1xf32>
    %cst_46 = arith.constant dense<0xFF800000> : vector<2x1xf32>
    %130 = vector.multi_reduction <maximumf>, %129, %cst_46 [1] : vector<2x8x1xf32> to vector<2x1xf32>
    %131 = vector.shape_cast %130 : vector<2x1xf32> to vector<2x1x1xf32>
    %132 = vector.broadcast %131 : vector<2x1x1xf32> to vector<2x8x1xf32>
    %133 = arith.subf %129, %132 : vector<2x8x1xf32>
    %134 = math.exp %133 : vector<2x8x1xf32>
    %cst_47 = arith.constant dense<0.000000e+00> : vector<2x1xf32>
    %135 = vector.multi_reduction <add>, %134, %cst_47 [1] : vector<2x8x1xf32> to vector<2x1xf32>
    %136 = vector.shape_cast %135 : vector<2x1xf32> to vector<2x1x1xf32>
    %137 = vector.broadcast %136 : vector<2x1x1xf32> to vector<2x8x1xf32>
    %138 = arith.divf %134, %137 : vector<2x8x1xf32>
    %139 = vector.broadcast %138 : vector<2x8x1xf32> to vector<2x8x32xf32>
    %140 = arith.mulf %139, %0 : vector<2x8x32xf32>
    %cst_48 = arith.constant dense<0.000000e+00> : vector<2x32xf32>
    %141 = vector.multi_reduction <add>, %140, %cst_48 [1] : vector<2x8x32xf32> to vector<2x32xf32>
    %cst_49 = arith.constant dense<0.000000e+00> : vector<2x96xf32>
    %142 = tpu.matmul %141, %6, %cst_49 {dimension_numbers = #tpu.dot_dimension_numbers<[1], [0], [0], [1], [0, 0, 1, 1], [], []>} : vector<2x32xf32>, vector<32x96xf32>, vector<2x96xf32> -> vector<2x96xf32>
    %143 = vector.extract_strided_slice %19 {offsets = [2, 0], sizes = [2, 96], strides = [1, 1]} : vector<12x96xf32> to vector<2x96xf32>
    %144 = arith.addf %142, %143 : vector<2x96xf32>
    %145 = vector.extract_strided_slice %144 {offsets = [0, 0], sizes = [2, 32], strides = [1, 1]} : vector<2x96xf32> to vector<2x32xf32>
    %146 = vector.extract_strided_slice %120 {offsets = [0, 0], sizes = [2, 32], strides = [1, 1]} : vector<2x96xf32> to vector<2x32xf32>
    %147 = arith.addf %145, %146 : vector<2x32xf32>
    %148 = arith.negf %147 : vector<2x32xf32>
    %149 = math.exp %148 : vector<2x32xf32>
    %cst_50 = arith.constant 1.000000e+00 : f32
    %150 = vector.broadcast %cst_50 : f32 to vector<2x32xf32>
    %151 = arith.addf %150, %149 : vector<2x32xf32>
    %152 = arith.divf %150, %151 : vector<2x32xf32>
    %153 = vector.extract_strided_slice %144 {offsets = [0, 32], sizes = [2, 32], strides = [1, 1]} : vector<2x96xf32> to vector<2x32xf32>
    %154 = vector.extract_strided_slice %120 {offsets = [0, 32], sizes = [2, 32], strides = [1, 1]} : vector<2x96xf32> to vector<2x32xf32>
    %155 = arith.addf %153, %154 : vector<2x32xf32>
    %156 = arith.negf %155 : vector<2x32xf32>
    %157 = math.exp %156 : vector<2x32xf32>
    %cst_51 = arith.constant 1.000000e+00 : f32
    %158 = vector.broadcast %cst_51 : f32 to vector<2x32xf32>
    %159 = arith.addf %158, %157 : vector<2x32xf32>
    %160 = arith.divf %158, %159 : vector<2x32xf32>
    %161 = vector.extract_strided_slice %144 {offsets = [0, 64], sizes = [2, 32], strides = [1, 1]} : vector<2x96xf32> to vector<2x32xf32>
    %162 = vector.extract_strided_slice %120 {offsets = [0, 64], sizes = [2, 32], strides = [1, 1]} : vector<2x96xf32> to vector<2x32xf32>
    %163 = arith.mulf %152, %162 : vector<2x32xf32>
    %164 = arith.addf %161, %163 : vector<2x32xf32>
    %165 = math.tanh %164 : vector<2x32xf32>
    %cst_52 = arith.constant 1.000000e+00 : f32
    %166 = vector.broadcast %cst_52 : f32 to vector<2x32xf32>
    %167 = arith.subf %166, %160 : vector<2x32xf32>
    %168 = arith.mulf %167, %165 : vector<2x32xf32>
    %169 = arith.mulf %160, %82 : vector<2x32xf32>
    %170 = arith.addf %168, %169 : vector<2x32xf32>
    %cst_53 = arith.constant dense<0.000000e+00> : vector<2x96xf32>
    %171 = tpu.matmul %170, %7, %cst_53 {dimension_numbers = #tpu.dot_dimension_numbers<[1], [0], [0], [1], [0, 0, 1, 1], [], []>} : vector<2x32xf32>, vector<32x96xf32>, vector<2x96xf32> -> vector<2x96xf32>
    %172 = vector.broadcast %11 : vector<1x96xf32> to vector<2x96xf32>
    %173 = arith.addf %171, %172 : vector<2x96xf32>
    %174 = vector.extract_strided_slice %173 {offsets = [0, 0], sizes = [2, 32], strides = [1, 1]} : vector<2x96xf32> to vector<2x32xf32>
    %175 = vector.extract_strided_slice %117 {offsets = [0, 0], sizes = [2, 32], strides = [1, 1]} : vector<2x96xf32> to vector<2x32xf32>
    %176 = arith.addf %174, %175 : vector<2x32xf32>
    %177 = arith.negf %176 : vector<2x32xf32>
    %178 = math.exp %177 : vector<2x32xf32>
    %cst_54 = arith.constant 1.000000e+00 : f32
    %179 = vector.broadcast %cst_54 : f32 to vector<2x32xf32>
    %180 = arith.addf %179, %178 : vector<2x32xf32>
    %181 = arith.divf %179, %180 : vector<2x32xf32>
    %182 = vector.extract_strided_slice %173 {offsets = [0, 32], sizes = [2, 32], strides = [1, 1]} : vector<2x96xf32> to vector<2x32xf32>
    %183 = vector.extract_strided_slice %117 {offsets = [0, 32], sizes = [2, 32], strides = [1, 1]} : vector<2x96xf32> to vector<2x32xf32>
    %184 = arith.addf %182, %183 : vector<2x32xf32>
    %185 = arith.negf %184 : vector<2x32xf32>
    %186 = math.exp %185 : vector<2x32xf32>
    %cst_55 = arith.constant 1.000000e+00 : f32
    %187 = vector.broadcast %cst_55 : f32 to vector<2x32xf32>
    %188 = arith.addf %187, %186 : vector<2x32xf32>
    %189 = arith.divf %187, %188 : vector<2x32xf32>
    %190 = vector.extract_strided_slice %173 {offsets = [0, 64], sizes = [2, 32], strides = [1, 1]} : vector<2x96xf32> to vector<2x32xf32>
    %191 = vector.extract_strided_slice %117 {offsets = [0, 64], sizes = [2, 32], strides = [1, 1]} : vector<2x96xf32> to vector<2x32xf32>
    %192 = arith.mulf %181, %191 : vector<2x32xf32>
    %193 = arith.addf %190, %192 : vector<2x32xf32>
    %194 = math.tanh %193 : vector<2x32xf32>
    %cst_56 = arith.constant 1.000000e+00 : f32
    %195 = vector.broadcast %cst_56 : f32 to vector<2x32xf32>
    %196 = arith.subf %195, %189 : vector<2x32xf32>
    %197 = arith.mulf %196, %194 : vector<2x32xf32>
    %198 = arith.mulf %189, %111 : vector<2x32xf32>
    %199 = arith.addf %197, %198 : vector<2x32xf32>
    %200 = tpu.concatenate %170, %199 in 1 : vector<2x32xf32>, vector<2x32xf32> -> vector<2x64xf32>
    %cst_57 = arith.constant dense<0.000000e+00> : vector<2x224xf32>
    %201 = tpu.matmul %200, %3, %cst_57 {dimension_numbers = #tpu.dot_dimension_numbers<[1], [0], [0], [1], [0, 0, 1, 1], [], []>} : vector<2x64xf32>, vector<64x224xf32>, vector<2x224xf32> -> vector<2x224xf32>
    %202 = vector.extract_strided_slice %201 {offsets = [0, 0], sizes = [2, 32], strides = [1, 1]} : vector<2x224xf32> to vector<2x32xf32>
    %203 = vector.extract_strided_slice %201 {offsets = [0, 32], sizes = [2, 96], strides = [1, 1]} : vector<2x224xf32> to vector<2x96xf32>
    %204 = vector.broadcast %12 : vector<1x96xf32> to vector<2x96xf32>
    %205 = arith.addf %203, %204 : vector<2x96xf32>
    %206 = vector.extract_strided_slice %201 {offsets = [0, 128], sizes = [2, 96], strides = [1, 1]} : vector<2x224xf32> to vector<2x96xf32>
    %207 = vector.broadcast %10 : vector<1x96xf32> to vector<2x96xf32>
    %208 = arith.addf %206, %207 : vector<2x96xf32>
    %209 = vector.shape_cast %202 : vector<2x32xf32> to vector<2x1x32xf32>
    %210 = vector.broadcast %209 : vector<2x1x32xf32> to vector<2x8x32xf32>
    %211 = arith.addf %1, %210 : vector<2x8x32xf32>
    %212 = math.tanh %211 : vector<2x8x32xf32>
    %213 = vector.broadcast %5 : vector<1x1x32xf32> to vector<2x8x32xf32>
    %214 = arith.mulf %212, %213 : vector<2x8x32xf32>
    %cst_58 = arith.constant dense<0.000000e+00> : vector<2x8xf32>
    %215 = vector.multi_reduction <add>, %214, %cst_58 [2] : vector<2x8x32xf32> to vector<2x8xf32>
    %216 = vector.shape_cast %215 : vector<2x8xf32> to vector<2x8x1xf32>
    %217 = arith.addf %216, %2 : vector<2x8x1xf32>
    %cst_59 = arith.constant dense<0xFF800000> : vector<2x1xf32>
    %218 = vector.multi_reduction <maximumf>, %217, %cst_59 [1] : vector<2x8x1xf32> to vector<2x1xf32>
    %219 = vector.shape_cast %218 : vector<2x1xf32> to vector<2x1x1xf32>
    %220 = vector.broadcast %219 : vector<2x1x1xf32> to vector<2x8x1xf32>
    %221 = arith.subf %217, %220 : vector<2x8x1xf32>
    %222 = math.exp %221 : vector<2x8x1xf32>
    %cst_60 = arith.constant dense<0.000000e+00> : vector<2x1xf32>
    %223 = vector.multi_reduction <add>, %222, %cst_60 [1] : vector<2x8x1xf32> to vector<2x1xf32>
    %224 = vector.shape_cast %223 : vector<2x1xf32> to vector<2x1x1xf32>
    %225 = vector.broadcast %224 : vector<2x1x1xf32> to vector<2x8x1xf32>
    %226 = arith.divf %222, %225 : vector<2x8x1xf32>
    %227 = vector.broadcast %226 : vector<2x8x1xf32> to vector<2x8x32xf32>
    %228 = arith.mulf %227, %0 : vector<2x8x32xf32>
    %cst_61 = arith.constant dense<0.000000e+00> : vector<2x32xf32>
    %229 = vector.multi_reduction <add>, %228, %cst_61 [1] : vector<2x8x32xf32> to vector<2x32xf32>
    %cst_62 = arith.constant dense<0.000000e+00> : vector<2x96xf32>
    %230 = tpu.matmul %229, %6, %cst_62 {dimension_numbers = #tpu.dot_dimension_numbers<[1], [0], [0], [1], [0, 0, 1, 1], [], []>} : vector<2x32xf32>, vector<32x96xf32>, vector<2x96xf32> -> vector<2x96xf32>
    %231 = vector.extract_strided_slice %19 {offsets = [4, 0], sizes = [2, 96], strides = [1, 1]} : vector<12x96xf32> to vector<2x96xf32>
    %232 = arith.addf %230, %231 : vector<2x96xf32>
    %233 = vector.extract_strided_slice %232 {offsets = [0, 0], sizes = [2, 32], strides = [1, 1]} : vector<2x96xf32> to vector<2x32xf32>
    %234 = vector.extract_strided_slice %208 {offsets = [0, 0], sizes = [2, 32], strides = [1, 1]} : vector<2x96xf32> to vector<2x32xf32>
    %235 = arith.addf %233, %234 : vector<2x32xf32>
    %236 = arith.negf %235 : vector<2x32xf32>
    %237 = math.exp %236 : vector<2x32xf32>
    %cst_63 = arith.constant 1.000000e+00 : f32
    %238 = vector.broadcast %cst_63 : f32 to vector<2x32xf32>
    %239 = arith.addf %238, %237 : vector<2x32xf32>
    %240 = arith.divf %238, %239 : vector<2x32xf32>
    %241 = vector.extract_strided_slice %232 {offsets = [0, 32], sizes = [2, 32], strides = [1, 1]} : vector<2x96xf32> to vector<2x32xf32>
    %242 = vector.extract_strided_slice %208 {offsets = [0, 32], sizes = [2, 32], strides = [1, 1]} : vector<2x96xf32> to vector<2x32xf32>
    %243 = arith.addf %241, %242 : vector<2x32xf32>
    %244 = arith.negf %243 : vector<2x32xf32>
    %245 = math.exp %244 : vector<2x32xf32>
    %cst_64 = arith.constant 1.000000e+00 : f32
    %246 = vector.broadcast %cst_64 : f32 to vector<2x32xf32>
    %247 = arith.addf %246, %245 : vector<2x32xf32>
    %248 = arith.divf %246, %247 : vector<2x32xf32>
    %249 = vector.extract_strided_slice %232 {offsets = [0, 64], sizes = [2, 32], strides = [1, 1]} : vector<2x96xf32> to vector<2x32xf32>
    %250 = vector.extract_strided_slice %208 {offsets = [0, 64], sizes = [2, 32], strides = [1, 1]} : vector<2x96xf32> to vector<2x32xf32>
    %251 = arith.mulf %240, %250 : vector<2x32xf32>
    %252 = arith.addf %249, %251 : vector<2x32xf32>
    %253 = math.tanh %252 : vector<2x32xf32>
    %cst_65 = arith.constant 1.000000e+00 : f32
    %254 = vector.broadcast %cst_65 : f32 to vector<2x32xf32>
    %255 = arith.subf %254, %248 : vector<2x32xf32>
    %256 = arith.mulf %255, %253 : vector<2x32xf32>
    %257 = arith.mulf %248, %170 : vector<2x32xf32>
    %258 = arith.addf %256, %257 : vector<2x32xf32>
    %cst_66 = arith.constant dense<0.000000e+00> : vector<2x96xf32>
    %259 = tpu.matmul %258, %7, %cst_66 {dimension_numbers = #tpu.dot_dimension_numbers<[1], [0], [0], [1], [0, 0, 1, 1], [], []>} : vector<2x32xf32>, vector<32x96xf32>, vector<2x96xf32> -> vector<2x96xf32>
    %260 = vector.broadcast %11 : vector<1x96xf32> to vector<2x96xf32>
    %261 = arith.addf %259, %260 : vector<2x96xf32>
    %262 = vector.extract_strided_slice %261 {offsets = [0, 0], sizes = [2, 32], strides = [1, 1]} : vector<2x96xf32> to vector<2x32xf32>
    %263 = vector.extract_strided_slice %205 {offsets = [0, 0], sizes = [2, 32], strides = [1, 1]} : vector<2x96xf32> to vector<2x32xf32>
    %264 = arith.addf %262, %263 : vector<2x32xf32>
    %265 = arith.negf %264 : vector<2x32xf32>
    %266 = math.exp %265 : vector<2x32xf32>
    %cst_67 = arith.constant 1.000000e+00 : f32
    %267 = vector.broadcast %cst_67 : f32 to vector<2x32xf32>
    %268 = arith.addf %267, %266 : vector<2x32xf32>
    %269 = arith.divf %267, %268 : vector<2x32xf32>
    %270 = vector.extract_strided_slice %261 {offsets = [0, 32], sizes = [2, 32], strides = [1, 1]} : vector<2x96xf32> to vector<2x32xf32>
    %271 = vector.extract_strided_slice %205 {offsets = [0, 32], sizes = [2, 32], strides = [1, 1]} : vector<2x96xf32> to vector<2x32xf32>
    %272 = arith.addf %270, %271 : vector<2x32xf32>
    %273 = arith.negf %272 : vector<2x32xf32>
    %274 = math.exp %273 : vector<2x32xf32>
    %cst_68 = arith.constant 1.000000e+00 : f32
    %275 = vector.broadcast %cst_68 : f32 to vector<2x32xf32>
    %276 = arith.addf %275, %274 : vector<2x32xf32>
    %277 = arith.divf %275, %276 : vector<2x32xf32>
    %278 = vector.extract_strided_slice %261 {offsets = [0, 64], sizes = [2, 32], strides = [1, 1]} : vector<2x96xf32> to vector<2x32xf32>
    %279 = vector.extract_strided_slice %205 {offsets = [0, 64], sizes = [2, 32], strides = [1, 1]} : vector<2x96xf32> to vector<2x32xf32>
    %280 = arith.mulf %269, %279 : vector<2x32xf32>
    %281 = arith.addf %278, %280 : vector<2x32xf32>
    %282 = math.tanh %281 : vector<2x32xf32>
    %cst_69 = arith.constant 1.000000e+00 : f32
    %283 = vector.broadcast %cst_69 : f32 to vector<2x32xf32>
    %284 = arith.subf %283, %277 : vector<2x32xf32>
    %285 = arith.mulf %284, %282 : vector<2x32xf32>
    %286 = arith.mulf %277, %199 : vector<2x32xf32>
    %287 = arith.addf %285, %286 : vector<2x32xf32>
    %288 = tpu.concatenate %258, %287 in 1 : vector<2x32xf32>, vector<2x32xf32> -> vector<2x64xf32>
    %cst_70 = arith.constant dense<0.000000e+00> : vector<2x224xf32>
    %289 = tpu.matmul %288, %3, %cst_70 {dimension_numbers = #tpu.dot_dimension_numbers<[1], [0], [0], [1], [0, 0, 1, 1], [], []>} : vector<2x64xf32>, vector<64x224xf32>, vector<2x224xf32> -> vector<2x224xf32>
    %290 = vector.extract_strided_slice %289 {offsets = [0, 0], sizes = [2, 32], strides = [1, 1]} : vector<2x224xf32> to vector<2x32xf32>
    %291 = vector.extract_strided_slice %289 {offsets = [0, 32], sizes = [2, 96], strides = [1, 1]} : vector<2x224xf32> to vector<2x96xf32>
    %292 = vector.broadcast %12 : vector<1x96xf32> to vector<2x96xf32>
    %293 = arith.addf %291, %292 : vector<2x96xf32>
    %294 = vector.extract_strided_slice %289 {offsets = [0, 128], sizes = [2, 96], strides = [1, 1]} : vector<2x224xf32> to vector<2x96xf32>
    %295 = vector.broadcast %10 : vector<1x96xf32> to vector<2x96xf32>
    %296 = arith.addf %294, %295 : vector<2x96xf32>
    %297 = vector.shape_cast %290 : vector<2x32xf32> to vector<2x1x32xf32>
    %298 = vector.broadcast %297 : vector<2x1x32xf32> to vector<2x8x32xf32>
    %299 = arith.addf %1, %298 : vector<2x8x32xf32>
    %300 = math.tanh %299 : vector<2x8x32xf32>
    %301 = vector.broadcast %5 : vector<1x1x32xf32> to vector<2x8x32xf32>
    %302 = arith.mulf %300, %301 : vector<2x8x32xf32>
    %cst_71 = arith.constant dense<0.000000e+00> : vector<2x8xf32>
    %303 = vector.multi_reduction <add>, %302, %cst_71 [2] : vector<2x8x32xf32> to vector<2x8xf32>
    %304 = vector.shape_cast %303 : vector<2x8xf32> to vector<2x8x1xf32>
    %305 = arith.addf %304, %2 : vector<2x8x1xf32>
    %cst_72 = arith.constant dense<0xFF800000> : vector<2x1xf32>
    %306 = vector.multi_reduction <maximumf>, %305, %cst_72 [1] : vector<2x8x1xf32> to vector<2x1xf32>
    %307 = vector.shape_cast %306 : vector<2x1xf32> to vector<2x1x1xf32>
    %308 = vector.broadcast %307 : vector<2x1x1xf32> to vector<2x8x1xf32>
    %309 = arith.subf %305, %308 : vector<2x8x1xf32>
    %310 = math.exp %309 : vector<2x8x1xf32>
    %cst_73 = arith.constant dense<0.000000e+00> : vector<2x1xf32>
    %311 = vector.multi_reduction <add>, %310, %cst_73 [1] : vector<2x8x1xf32> to vector<2x1xf32>
    %312 = vector.shape_cast %311 : vector<2x1xf32> to vector<2x1x1xf32>
    %313 = vector.broadcast %312 : vector<2x1x1xf32> to vector<2x8x1xf32>
    %314 = arith.divf %310, %313 : vector<2x8x1xf32>
    %315 = vector.broadcast %314 : vector<2x8x1xf32> to vector<2x8x32xf32>
    %316 = arith.mulf %315, %0 : vector<2x8x32xf32>
    %cst_74 = arith.constant dense<0.000000e+00> : vector<2x32xf32>
    %317 = vector.multi_reduction <add>, %316, %cst_74 [1] : vector<2x8x32xf32> to vector<2x32xf32>
    %cst_75 = arith.constant dense<0.000000e+00> : vector<2x96xf32>
    %318 = tpu.matmul %317, %6, %cst_75 {dimension_numbers = #tpu.dot_dimension_numbers<[1], [0], [0], [1], [0, 0, 1, 1], [], []>} : vector<2x32xf32>, vector<32x96xf32>, vector<2x96xf32> -> vector<2x96xf32>
    %319 = vector.extract_strided_slice %19 {offsets = [6, 0], sizes = [2, 96], strides = [1, 1]} : vector<12x96xf32> to vector<2x96xf32>
    %320 = arith.addf %318, %319 : vector<2x96xf32>
    %321 = vector.extract_strided_slice %320 {offsets = [0, 0], sizes = [2, 32], strides = [1, 1]} : vector<2x96xf32> to vector<2x32xf32>
    %322 = vector.extract_strided_slice %296 {offsets = [0, 0], sizes = [2, 32], strides = [1, 1]} : vector<2x96xf32> to vector<2x32xf32>
    %323 = arith.addf %321, %322 : vector<2x32xf32>
    %324 = arith.negf %323 : vector<2x32xf32>
    %325 = math.exp %324 : vector<2x32xf32>
    %cst_76 = arith.constant 1.000000e+00 : f32
    %326 = vector.broadcast %cst_76 : f32 to vector<2x32xf32>
    %327 = arith.addf %326, %325 : vector<2x32xf32>
    %328 = arith.divf %326, %327 : vector<2x32xf32>
    %329 = vector.extract_strided_slice %320 {offsets = [0, 32], sizes = [2, 32], strides = [1, 1]} : vector<2x96xf32> to vector<2x32xf32>
    %330 = vector.extract_strided_slice %296 {offsets = [0, 32], sizes = [2, 32], strides = [1, 1]} : vector<2x96xf32> to vector<2x32xf32>
    %331 = arith.addf %329, %330 : vector<2x32xf32>
    %332 = arith.negf %331 : vector<2x32xf32>
    %333 = math.exp %332 : vector<2x32xf32>
    %cst_77 = arith.constant 1.000000e+00 : f32
    %334 = vector.broadcast %cst_77 : f32 to vector<2x32xf32>
    %335 = arith.addf %334, %333 : vector<2x32xf32>
    %336 = arith.divf %334, %335 : vector<2x32xf32>
    %337 = vector.extract_strided_slice %320 {offsets = [0, 64], sizes = [2, 32], strides = [1, 1]} : vector<2x96xf32> to vector<2x32xf32>
    %338 = vector.extract_strided_slice %296 {offsets = [0, 64], sizes = [2, 32], strides = [1, 1]} : vector<2x96xf32> to vector<2x32xf32>
    %339 = arith.mulf %328, %338 : vector<2x32xf32>
    %340 = arith.addf %337, %339 : vector<2x32xf32>
    %341 = math.tanh %340 : vector<2x32xf32>
    %cst_78 = arith.constant 1.000000e+00 : f32
    %342 = vector.broadcast %cst_78 : f32 to vector<2x32xf32>
    %343 = arith.subf %342, %336 : vector<2x32xf32>
    %344 = arith.mulf %343, %341 : vector<2x32xf32>
    %345 = arith.mulf %336, %258 : vector<2x32xf32>
    %346 = arith.addf %344, %345 : vector<2x32xf32>
    %cst_79 = arith.constant dense<0.000000e+00> : vector<2x96xf32>
    %347 = tpu.matmul %346, %7, %cst_79 {dimension_numbers = #tpu.dot_dimension_numbers<[1], [0], [0], [1], [0, 0, 1, 1], [], []>} : vector<2x32xf32>, vector<32x96xf32>, vector<2x96xf32> -> vector<2x96xf32>
    %348 = vector.broadcast %11 : vector<1x96xf32> to vector<2x96xf32>
    %349 = arith.addf %347, %348 : vector<2x96xf32>
    %350 = vector.extract_strided_slice %349 {offsets = [0, 0], sizes = [2, 32], strides = [1, 1]} : vector<2x96xf32> to vector<2x32xf32>
    %351 = vector.extract_strided_slice %293 {offsets = [0, 0], sizes = [2, 32], strides = [1, 1]} : vector<2x96xf32> to vector<2x32xf32>
    %352 = arith.addf %350, %351 : vector<2x32xf32>
    %353 = arith.negf %352 : vector<2x32xf32>
    %354 = math.exp %353 : vector<2x32xf32>
    %cst_80 = arith.constant 1.000000e+00 : f32
    %355 = vector.broadcast %cst_80 : f32 to vector<2x32xf32>
    %356 = arith.addf %355, %354 : vector<2x32xf32>
    %357 = arith.divf %355, %356 : vector<2x32xf32>
    %358 = vector.extract_strided_slice %349 {offsets = [0, 32], sizes = [2, 32], strides = [1, 1]} : vector<2x96xf32> to vector<2x32xf32>
    %359 = vector.extract_strided_slice %293 {offsets = [0, 32], sizes = [2, 32], strides = [1, 1]} : vector<2x96xf32> to vector<2x32xf32>
    %360 = arith.addf %358, %359 : vector<2x32xf32>
    %361 = arith.negf %360 : vector<2x32xf32>
    %362 = math.exp %361 : vector<2x32xf32>
    %cst_81 = arith.constant 1.000000e+00 : f32
    %363 = vector.broadcast %cst_81 : f32 to vector<2x32xf32>
    %364 = arith.addf %363, %362 : vector<2x32xf32>
    %365 = arith.divf %363, %364 : vector<2x32xf32>
    %366 = vector.extract_strided_slice %349 {offsets = [0, 64], sizes = [2, 32], strides = [1, 1]} : vector<2x96xf32> to vector<2x32xf32>
    %367 = vector.extract_strided_slice %293 {offsets = [0, 64], sizes = [2, 32], strides = [1, 1]} : vector<2x96xf32> to vector<2x32xf32>
    %368 = arith.mulf %357, %367 : vector<2x32xf32>
    %369 = arith.addf %366, %368 : vector<2x32xf32>
    %370 = math.tanh %369 : vector<2x32xf32>
    %cst_82 = arith.constant 1.000000e+00 : f32
    %371 = vector.broadcast %cst_82 : f32 to vector<2x32xf32>
    %372 = arith.subf %371, %365 : vector<2x32xf32>
    %373 = arith.mulf %372, %370 : vector<2x32xf32>
    %374 = arith.mulf %365, %287 : vector<2x32xf32>
    %375 = arith.addf %373, %374 : vector<2x32xf32>
    %376 = tpu.concatenate %346, %375 in 1 : vector<2x32xf32>, vector<2x32xf32> -> vector<2x64xf32>
    %cst_83 = arith.constant dense<0.000000e+00> : vector<2x224xf32>
    %377 = tpu.matmul %376, %3, %cst_83 {dimension_numbers = #tpu.dot_dimension_numbers<[1], [0], [0], [1], [0, 0, 1, 1], [], []>} : vector<2x64xf32>, vector<64x224xf32>, vector<2x224xf32> -> vector<2x224xf32>
    %378 = vector.extract_strided_slice %377 {offsets = [0, 0], sizes = [2, 32], strides = [1, 1]} : vector<2x224xf32> to vector<2x32xf32>
    %379 = vector.extract_strided_slice %377 {offsets = [0, 32], sizes = [2, 96], strides = [1, 1]} : vector<2x224xf32> to vector<2x96xf32>
    %380 = vector.broadcast %12 : vector<1x96xf32> to vector<2x96xf32>
    %381 = arith.addf %379, %380 : vector<2x96xf32>
    %382 = vector.extract_strided_slice %377 {offsets = [0, 128], sizes = [2, 96], strides = [1, 1]} : vector<2x224xf32> to vector<2x96xf32>
    %383 = vector.broadcast %10 : vector<1x96xf32> to vector<2x96xf32>
    %384 = arith.addf %382, %383 : vector<2x96xf32>
    %385 = vector.shape_cast %378 : vector<2x32xf32> to vector<2x1x32xf32>
    %386 = vector.broadcast %385 : vector<2x1x32xf32> to vector<2x8x32xf32>
    %387 = arith.addf %1, %386 : vector<2x8x32xf32>
    %388 = math.tanh %387 : vector<2x8x32xf32>
    %389 = vector.broadcast %5 : vector<1x1x32xf32> to vector<2x8x32xf32>
    %390 = arith.mulf %388, %389 : vector<2x8x32xf32>
    %cst_84 = arith.constant dense<0.000000e+00> : vector<2x8xf32>
    %391 = vector.multi_reduction <add>, %390, %cst_84 [2] : vector<2x8x32xf32> to vector<2x8xf32>
    %392 = vector.shape_cast %391 : vector<2x8xf32> to vector<2x8x1xf32>
    %393 = arith.addf %392, %2 : vector<2x8x1xf32>
    %cst_85 = arith.constant dense<0xFF800000> : vector<2x1xf32>
    %394 = vector.multi_reduction <maximumf>, %393, %cst_85 [1] : vector<2x8x1xf32> to vector<2x1xf32>
    %395 = vector.shape_cast %394 : vector<2x1xf32> to vector<2x1x1xf32>
    %396 = vector.broadcast %395 : vector<2x1x1xf32> to vector<2x8x1xf32>
    %397 = arith.subf %393, %396 : vector<2x8x1xf32>
    %398 = math.exp %397 : vector<2x8x1xf32>
    %cst_86 = arith.constant dense<0.000000e+00> : vector<2x1xf32>
    %399 = vector.multi_reduction <add>, %398, %cst_86 [1] : vector<2x8x1xf32> to vector<2x1xf32>
    %400 = vector.shape_cast %399 : vector<2x1xf32> to vector<2x1x1xf32>
    %401 = vector.broadcast %400 : vector<2x1x1xf32> to vector<2x8x1xf32>
    %402 = arith.divf %398, %401 : vector<2x8x1xf32>
    %403 = vector.broadcast %402 : vector<2x8x1xf32> to vector<2x8x32xf32>
    %404 = arith.mulf %403, %0 : vector<2x8x32xf32>
    %cst_87 = arith.constant dense<0.000000e+00> : vector<2x32xf32>
    %405 = vector.multi_reduction <add>, %404, %cst_87 [1] : vector<2x8x32xf32> to vector<2x32xf32>
    %cst_88 = arith.constant dense<0.000000e+00> : vector<2x96xf32>
    %406 = tpu.matmul %405, %6, %cst_88 {dimension_numbers = #tpu.dot_dimension_numbers<[1], [0], [0], [1], [0, 0, 1, 1], [], []>} : vector<2x32xf32>, vector<32x96xf32>, vector<2x96xf32> -> vector<2x96xf32>
    %407 = vector.extract_strided_slice %19 {offsets = [8, 0], sizes = [2, 96], strides = [1, 1]} : vector<12x96xf32> to vector<2x96xf32>
    %408 = arith.addf %406, %407 : vector<2x96xf32>
    %409 = vector.extract_strided_slice %408 {offsets = [0, 0], sizes = [2, 32], strides = [1, 1]} : vector<2x96xf32> to vector<2x32xf32>
    %410 = vector.extract_strided_slice %384 {offsets = [0, 0], sizes = [2, 32], strides = [1, 1]} : vector<2x96xf32> to vector<2x32xf32>
    %411 = arith.addf %409, %410 : vector<2x32xf32>
    %412 = arith.negf %411 : vector<2x32xf32>
    %413 = math.exp %412 : vector<2x32xf32>
    %cst_89 = arith.constant 1.000000e+00 : f32
    %414 = vector.broadcast %cst_89 : f32 to vector<2x32xf32>
    %415 = arith.addf %414, %413 : vector<2x32xf32>
    %416 = arith.divf %414, %415 : vector<2x32xf32>
    %417 = vector.extract_strided_slice %408 {offsets = [0, 32], sizes = [2, 32], strides = [1, 1]} : vector<2x96xf32> to vector<2x32xf32>
    %418 = vector.extract_strided_slice %384 {offsets = [0, 32], sizes = [2, 32], strides = [1, 1]} : vector<2x96xf32> to vector<2x32xf32>
    %419 = arith.addf %417, %418 : vector<2x32xf32>
    %420 = arith.negf %419 : vector<2x32xf32>
    %421 = math.exp %420 : vector<2x32xf32>
    %cst_90 = arith.constant 1.000000e+00 : f32
    %422 = vector.broadcast %cst_90 : f32 to vector<2x32xf32>
    %423 = arith.addf %422, %421 : vector<2x32xf32>
    %424 = arith.divf %422, %423 : vector<2x32xf32>
    %425 = vector.extract_strided_slice %408 {offsets = [0, 64], sizes = [2, 32], strides = [1, 1]} : vector<2x96xf32> to vector<2x32xf32>
    %426 = vector.extract_strided_slice %384 {offsets = [0, 64], sizes = [2, 32], strides = [1, 1]} : vector<2x96xf32> to vector<2x32xf32>
    %427 = arith.mulf %416, %426 : vector<2x32xf32>
    %428 = arith.addf %425, %427 : vector<2x32xf32>
    %429 = math.tanh %428 : vector<2x32xf32>
    %cst_91 = arith.constant 1.000000e+00 : f32
    %430 = vector.broadcast %cst_91 : f32 to vector<2x32xf32>
    %431 = arith.subf %430, %424 : vector<2x32xf32>
    %432 = arith.mulf %431, %429 : vector<2x32xf32>
    %433 = arith.mulf %424, %346 : vector<2x32xf32>
    %434 = arith.addf %432, %433 : vector<2x32xf32>
    %cst_92 = arith.constant dense<0.000000e+00> : vector<2x96xf32>
    %435 = tpu.matmul %434, %7, %cst_92 {dimension_numbers = #tpu.dot_dimension_numbers<[1], [0], [0], [1], [0, 0, 1, 1], [], []>} : vector<2x32xf32>, vector<32x96xf32>, vector<2x96xf32> -> vector<2x96xf32>
    %436 = vector.broadcast %11 : vector<1x96xf32> to vector<2x96xf32>
    %437 = arith.addf %435, %436 : vector<2x96xf32>
    %438 = vector.extract_strided_slice %437 {offsets = [0, 0], sizes = [2, 32], strides = [1, 1]} : vector<2x96xf32> to vector<2x32xf32>
    %439 = vector.extract_strided_slice %381 {offsets = [0, 0], sizes = [2, 32], strides = [1, 1]} : vector<2x96xf32> to vector<2x32xf32>
    %440 = arith.addf %438, %439 : vector<2x32xf32>
    %441 = arith.negf %440 : vector<2x32xf32>
    %442 = math.exp %441 : vector<2x32xf32>
    %cst_93 = arith.constant 1.000000e+00 : f32
    %443 = vector.broadcast %cst_93 : f32 to vector<2x32xf32>
    %444 = arith.addf %443, %442 : vector<2x32xf32>
    %445 = arith.divf %443, %444 : vector<2x32xf32>
    %446 = vector.extract_strided_slice %437 {offsets = [0, 32], sizes = [2, 32], strides = [1, 1]} : vector<2x96xf32> to vector<2x32xf32>
    %447 = vector.extract_strided_slice %381 {offsets = [0, 32], sizes = [2, 32], strides = [1, 1]} : vector<2x96xf32> to vector<2x32xf32>
    %448 = arith.addf %446, %447 : vector<2x32xf32>
    %449 = arith.negf %448 : vector<2x32xf32>
    %450 = math.exp %449 : vector<2x32xf32>
    %cst_94 = arith.constant 1.000000e+00 : f32
    %451 = vector.broadcast %cst_94 : f32 to vector<2x32xf32>
    %452 = arith.addf %451, %450 : vector<2x32xf32>
    %453 = arith.divf %451, %452 : vector<2x32xf32>
    %454 = vector.extract_strided_slice %437 {offsets = [0, 64], sizes = [2, 32], strides = [1, 1]} : vector<2x96xf32> to vector<2x32xf32>
    %455 = vector.extract_strided_slice %381 {offsets = [0, 64], sizes = [2, 32], strides = [1, 1]} : vector<2x96xf32> to vector<2x32xf32>
    %456 = arith.mulf %445, %455 : vector<2x32xf32>
    %457 = arith.addf %454, %456 : vector<2x32xf32>
    %458 = math.tanh %457 : vector<2x32xf32>
    %cst_95 = arith.constant 1.000000e+00 : f32
    %459 = vector.broadcast %cst_95 : f32 to vector<2x32xf32>
    %460 = arith.subf %459, %453 : vector<2x32xf32>
    %461 = arith.mulf %460, %458 : vector<2x32xf32>
    %462 = arith.mulf %453, %375 : vector<2x32xf32>
    %463 = arith.addf %461, %462 : vector<2x32xf32>
    %464 = tpu.concatenate %434, %463 in 1 : vector<2x32xf32>, vector<2x32xf32> -> vector<2x64xf32>
    %cst_96 = arith.constant dense<0.000000e+00> : vector<2x224xf32>
    %465 = tpu.matmul %464, %3, %cst_96 {dimension_numbers = #tpu.dot_dimension_numbers<[1], [0], [0], [1], [0, 0, 1, 1], [], []>} : vector<2x64xf32>, vector<64x224xf32>, vector<2x224xf32> -> vector<2x224xf32>
    %466 = vector.extract_strided_slice %465 {offsets = [0, 0], sizes = [2, 32], strides = [1, 1]} : vector<2x224xf32> to vector<2x32xf32>
    %467 = vector.extract_strided_slice %465 {offsets = [0, 32], sizes = [2, 96], strides = [1, 1]} : vector<2x224xf32> to vector<2x96xf32>
    %468 = vector.broadcast %12 : vector<1x96xf32> to vector<2x96xf32>
    %469 = arith.addf %467, %468 : vector<2x96xf32>
    %470 = vector.extract_strided_slice %465 {offsets = [0, 128], sizes = [2, 96], strides = [1, 1]} : vector<2x224xf32> to vector<2x96xf32>
    %471 = vector.broadcast %10 : vector<1x96xf32> to vector<2x96xf32>
    %472 = arith.addf %470, %471 : vector<2x96xf32>
    %473 = vector.shape_cast %466 : vector<2x32xf32> to vector<2x1x32xf32>
    %474 = vector.broadcast %473 : vector<2x1x32xf32> to vector<2x8x32xf32>
    %475 = arith.addf %1, %474 : vector<2x8x32xf32>
    %476 = math.tanh %475 : vector<2x8x32xf32>
    %477 = vector.broadcast %5 : vector<1x1x32xf32> to vector<2x8x32xf32>
    %478 = arith.mulf %476, %477 : vector<2x8x32xf32>
    %cst_97 = arith.constant dense<0.000000e+00> : vector<2x8xf32>
    %479 = vector.multi_reduction <add>, %478, %cst_97 [2] : vector<2x8x32xf32> to vector<2x8xf32>
    %480 = vector.shape_cast %479 : vector<2x8xf32> to vector<2x8x1xf32>
    %481 = arith.addf %480, %2 : vector<2x8x1xf32>
    %cst_98 = arith.constant dense<0xFF800000> : vector<2x1xf32>
    %482 = vector.multi_reduction <maximumf>, %481, %cst_98 [1] : vector<2x8x1xf32> to vector<2x1xf32>
    %483 = vector.shape_cast %482 : vector<2x1xf32> to vector<2x1x1xf32>
    %484 = vector.broadcast %483 : vector<2x1x1xf32> to vector<2x8x1xf32>
    %485 = arith.subf %481, %484 : vector<2x8x1xf32>
    %486 = math.exp %485 : vector<2x8x1xf32>
    %cst_99 = arith.constant dense<0.000000e+00> : vector<2x1xf32>
    %487 = vector.multi_reduction <add>, %486, %cst_99 [1] : vector<2x8x1xf32> to vector<2x1xf32>
    %488 = vector.shape_cast %487 : vector<2x1xf32> to vector<2x1x1xf32>
    %489 = vector.broadcast %488 : vector<2x1x1xf32> to vector<2x8x1xf32>
    %490 = arith.divf %486, %489 : vector<2x8x1xf32>
    %491 = vector.broadcast %490 : vector<2x8x1xf32> to vector<2x8x32xf32>
    %492 = arith.mulf %491, %0 : vector<2x8x32xf32>
    %cst_100 = arith.constant dense<0.000000e+00> : vector<2x32xf32>
    %493 = vector.multi_reduction <add>, %492, %cst_100 [1] : vector<2x8x32xf32> to vector<2x32xf32>
    %cst_101 = arith.constant dense<0.000000e+00> : vector<2x96xf32>
    %494 = tpu.matmul %493, %6, %cst_101 {dimension_numbers = #tpu.dot_dimension_numbers<[1], [0], [0], [1], [0, 0, 1, 1], [], []>} : vector<2x32xf32>, vector<32x96xf32>, vector<2x96xf32> -> vector<2x96xf32>
    %495 = vector.extract_strided_slice %19 {offsets = [10, 0], sizes = [2, 96], strides = [1, 1]} : vector<12x96xf32> to vector<2x96xf32>
    %496 = arith.addf %494, %495 : vector<2x96xf32>
    %497 = vector.extract_strided_slice %496 {offsets = [0, 0], sizes = [2, 32], strides = [1, 1]} : vector<2x96xf32> to vector<2x32xf32>
    %498 = vector.extract_strided_slice %472 {offsets = [0, 0], sizes = [2, 32], strides = [1, 1]} : vector<2x96xf32> to vector<2x32xf32>
    %499 = arith.addf %497, %498 : vector<2x32xf32>
    %500 = arith.negf %499 : vector<2x32xf32>
    %501 = math.exp %500 : vector<2x32xf32>
    %cst_102 = arith.constant 1.000000e+00 : f32
    %502 = vector.broadcast %cst_102 : f32 to vector<2x32xf32>
    %503 = arith.addf %502, %501 : vector<2x32xf32>
    %504 = arith.divf %502, %503 : vector<2x32xf32>
    %505 = vector.extract_strided_slice %496 {offsets = [0, 32], sizes = [2, 32], strides = [1, 1]} : vector<2x96xf32> to vector<2x32xf32>
    %506 = vector.extract_strided_slice %472 {offsets = [0, 32], sizes = [2, 32], strides = [1, 1]} : vector<2x96xf32> to vector<2x32xf32>
    %507 = arith.addf %505, %506 : vector<2x32xf32>
    %508 = arith.negf %507 : vector<2x32xf32>
    %509 = math.exp %508 : vector<2x32xf32>
    %cst_103 = arith.constant 1.000000e+00 : f32
    %510 = vector.broadcast %cst_103 : f32 to vector<2x32xf32>
    %511 = arith.addf %510, %509 : vector<2x32xf32>
    %512 = arith.divf %510, %511 : vector<2x32xf32>
    %513 = vector.extract_strided_slice %496 {offsets = [0, 64], sizes = [2, 32], strides = [1, 1]} : vector<2x96xf32> to vector<2x32xf32>
    %514 = vector.extract_strided_slice %472 {offsets = [0, 64], sizes = [2, 32], strides = [1, 1]} : vector<2x96xf32> to vector<2x32xf32>
    %515 = arith.mulf %504, %514 : vector<2x32xf32>
    %516 = arith.addf %513, %515 : vector<2x32xf32>
    %517 = math.tanh %516 : vector<2x32xf32>
    %cst_104 = arith.constant 1.000000e+00 : f32
    %518 = vector.broadcast %cst_104 : f32 to vector<2x32xf32>
    %519 = arith.subf %518, %512 : vector<2x32xf32>
    %520 = arith.mulf %519, %517 : vector<2x32xf32>
    %521 = arith.mulf %512, %434 : vector<2x32xf32>
    %522 = arith.addf %520, %521 : vector<2x32xf32>
    %cst_105 = arith.constant dense<0.000000e+00> : vector<2x96xf32>
    %523 = tpu.matmul %522, %7, %cst_105 {dimension_numbers = #tpu.dot_dimension_numbers<[1], [0], [0], [1], [0, 0, 1, 1], [], []>} : vector<2x32xf32>, vector<32x96xf32>, vector<2x96xf32> -> vector<2x96xf32>
    %524 = vector.broadcast %11 : vector<1x96xf32> to vector<2x96xf32>
    %525 = arith.addf %523, %524 : vector<2x96xf32>
    %526 = vector.extract_strided_slice %525 {offsets = [0, 0], sizes = [2, 32], strides = [1, 1]} : vector<2x96xf32> to vector<2x32xf32>
    %527 = vector.extract_strided_slice %469 {offsets = [0, 0], sizes = [2, 32], strides = [1, 1]} : vector<2x96xf32> to vector<2x32xf32>
    %528 = arith.addf %526, %527 : vector<2x32xf32>
    %529 = arith.negf %528 : vector<2x32xf32>
    %530 = math.exp %529 : vector<2x32xf32>
    %cst_106 = arith.constant 1.000000e+00 : f32
    %531 = vector.broadcast %cst_106 : f32 to vector<2x32xf32>
    %532 = arith.addf %531, %530 : vector<2x32xf32>
    %533 = arith.divf %531, %532 : vector<2x32xf32>
    %534 = vector.extract_strided_slice %525 {offsets = [0, 32], sizes = [2, 32], strides = [1, 1]} : vector<2x96xf32> to vector<2x32xf32>
    %535 = vector.extract_strided_slice %469 {offsets = [0, 32], sizes = [2, 32], strides = [1, 1]} : vector<2x96xf32> to vector<2x32xf32>
    %536 = arith.addf %534, %535 : vector<2x32xf32>
    %537 = arith.negf %536 : vector<2x32xf32>
    %538 = math.exp %537 : vector<2x32xf32>
    %cst_107 = arith.constant 1.000000e+00 : f32
    %539 = vector.broadcast %cst_107 : f32 to vector<2x32xf32>
    %540 = arith.addf %539, %538 : vector<2x32xf32>
    %541 = arith.divf %539, %540 : vector<2x32xf32>
    %542 = vector.extract_strided_slice %525 {offsets = [0, 64], sizes = [2, 32], strides = [1, 1]} : vector<2x96xf32> to vector<2x32xf32>
    %543 = vector.extract_strided_slice %469 {offsets = [0, 64], sizes = [2, 32], strides = [1, 1]} : vector<2x96xf32> to vector<2x32xf32>
    %544 = arith.mulf %533, %543 : vector<2x32xf32>
    %545 = arith.addf %542, %544 : vector<2x32xf32>
    %546 = math.tanh %545 : vector<2x32xf32>
    %cst_108 = arith.constant 1.000000e+00 : f32
    %547 = vector.broadcast %cst_108 : f32 to vector<2x32xf32>
    %548 = arith.subf %547, %541 : vector<2x32xf32>
    %549 = arith.mulf %548, %546 : vector<2x32xf32>
    %550 = arith.mulf %541, %463 : vector<2x32xf32>
    %551 = arith.addf %549, %550 : vector<2x32xf32>
    %cst_109 = arith.constant 0.000000e+00 : f32
    %552 = vector.broadcast %cst_109 : f32 to vector<4x32xf32>
    %553 = tpu.concatenate %111, %199, %287, %375, %463, %551, %552 in 0 : vector<2x32xf32>, vector<2x32xf32>, vector<2x32xf32>, vector<2x32xf32>, vector<2x32xf32>, vector<2x32xf32>, vector<4x32xf32> -> vector<16x32xf32>
    %cst_110 = arith.constant dense<0.000000e+00> : vector<16x128xf32>
    %554 = tpu.matmul %553, %13, %cst_110 {dimension_numbers = #tpu.dot_dimension_numbers<[1], [0], [0], [1], [0, 0, 1, 1], [], []>} : vector<16x32xf32>, vector<32x128xf32>, vector<16x128xf32> -> vector<16x128xf32>
    %555 = vector.broadcast %14 : vector<1x128xf32> to vector<16x128xf32>
    %556 = arith.addf %554, %555 : vector<16x128xf32>
    %c0_111 = arith.constant 0 : index
    %c0_112 = arith.constant 0 : index
    %557 = vector.load %arg13[%c0_111, %c0_112] : memref<16x128xf32, #tpu.memory_space<vmem>>, vector<16x128xf32>
    tpu.vector_store %arg13[%c0_111, %c0_112], %556 {strides = array<i32>} : memref<16x128xf32, #tpu.memory_space<vmem>>, vector<16x128xf32>,
    %c0_113 = arith.constant 0 : index
    %c0_114 = arith.constant 0 : index
    %c0_115 = arith.constant 0 : index
    %558 = vector.load %arg14[%c0_113, %c0_114, %c0_115] : memref<2x2x32xf32, #tpu.memory_space<vmem>>, vector<1x2x32xf32>
    %559 = vector.shape_cast %558 : vector<1x2x32xf32> to vector<2x32xf32>
    %560 = vector.shape_cast %522 : vector<2x32xf32> to vector<1x2x32xf32>
    tpu.vector_store %arg14[%c0_113, %c0_114, %c0_115], %560 {strides = array<i32>} : memref<2x2x32xf32, #tpu.memory_space<vmem>>, vector<1x2x32xf32>,
    %c1_116 = arith.constant 1 : index
    %c0_117 = arith.constant 0 : index
    %c0_118 = arith.constant 0 : index
    %561 = vector.load %arg14[%c1_116, %c0_117, %c0_118] : memref<2x2x32xf32, #tpu.memory_space<vmem>>, vector<1x2x32xf32>
    %562 = vector.shape_cast %561 : vector<1x2x32xf32> to vector<2x32xf32>
    %563 = vector.shape_cast %551 : vector<2x32xf32> to vector<1x2x32xf32>
    tpu.vector_store %arg14[%c1_116, %c0_117, %c0_118], %563 {strides = array<i32>} : memref<2x2x32xf32, #tpu.memory_space<vmem>>, vector<1x2x32xf32>,
    return
  }
}

</mosaic_0001>

<bundles_post_ra>
// kernel: tpu_custom_call.1
= control target key start
LH: loop header
LB: loop body
LE: loop exit
PB: predicated region body
PF: predicated region fallthrough
CT: control target
= control target key end

     0   :  { %20 = vsyncpa [#allocation3], 0  ;;  %s3331_s0 = inlined_call_operand.vmem [shape: f32[2,8,32], index: 0, kind: input, shape index: {}]   ;;  %s3332_s1 = inlined_call_operand.hbm [shape: f32[2,8,32], index: 1, kind: input, shape index: {}]   ;;  %s3333_s2 = inlined_call_operand.vmem [shape: f32[2,8,1], index: 2, kind: input, shape index: {}]   ;;  %s3334_s3 = inlined_call_operand.vmem [shape: f32[2,2,32], index: 3, kind: input, shape index: {}]   ;;  %s3335_s4 = inlined_call_operand.hbm [shape: f32[12,16], index: 4, kind: input, shape index: {}]   ;;  %s3336_s5 = inlined_call_operand.hbm [shape: f32[64,224], index: 5, kind: input, shape index: {}]   ;;  %s3337_s6 = inlined_call_operand.hbm [shape: f32[1,32], index: 6, kind: input, shape index: {}]   ;;  %s3338_s7 = inlined_call_operand.hbm [shape: f32[32,96], index: 7, kind: input, shape index: {}]   ;;  %s3339_s8 = inlined_call_operand.hbm [shape: f32[16,96], index: 8, kind: input, shape index: {}]   ;;  %s3340_s9 = inlined_call_operand.hbm [shape: f32[32,96], index: 9, kind: input, shape index: {}]   ;;  %s3341_s10 = inlined_call_operand.vmem [shape: f32[4,96], index: 10, kind: input, shape index: {}]   ;;  %s3342_s11 = inlined_call_operand.hbm [shape: f32[32,128], index: 11, kind: input, shape index: {}]   ;;  %s3343_s12 = inlined_call_operand.vmem [shape: f32[1,128], index: 12, kind: input, shape index: {}]   ;;  %s3344_s13 = inlined_call_operand.hbm [shape: f32[16,128], index: 13, kind: output, shape index: {0}]   ;;  %s3345_s14 = inlined_call_operand.hbm [shape: f32[2,2,32], index: 14, kind: output, shape index: {1}]  }
   0x1   :  { %21 = vsyncpa [#allocation6], 0 }
   0x2   :  { %22 = vsyncpa [#allocation9], 0 }
   0x3   :  { %23 = vsyncpa [#allocation12], 0 }
   0x4   :  { %24 = vsyncpa [#allocation15], 0 }
   0x5   :  { %25 = vsyncpa [#allocation4], 0 }
   0x6   :  { %26 = vsyncpa [#allocation18], 0  ;;  %s50_s15 = sshll.u32 %s3335_s4, 4  ;;  %s2611_s16 = smov [#allocation5]   ;;  %s51_s15 = int_to_ptr.hbm [resolvable:$true] %s50_s15 }
   0x7   :  { %s52_s17 = sshll.u32 %s2611_s16, 4  ;;  %s77_s20 = sshll.u32 %s3337_s6, 4  ;;  %s53_s17 = int_to_ptr.vmem [resolvable:$true] %s52_s17  ;;  %s78_s20 = int_to_ptr.hbm [resolvable:$true] %s77_s20 }
   0x8   :  { %s2612_s21 = smov 128   ;;  %s2613_s22 = smov 8  }
   0x9   :  { %58 = dma.hbm_to_vmem [thread:$0]  %s51_s15, 256, %s53_s17, [#allocation6], %s2612_s21, %s2612_s21, %s2613_s22  }
   0xa   :  { %s2614_s23 = smov [#allocation8]   ;;  %s100_s4 = sshll.u32 %s3339_s8, 4  ;;  %s101_s4 = int_to_ptr.hbm [resolvable:$true] %s100_s4 }
   0xb   :  { %s79_s24 = sshll.u32 %s2614_s23, 4  ;;  %s33_s6 = sshll.u32 %s3332_s1, 4  ;;  %s80_s24 = int_to_ptr.vmem [resolvable:$true] %s79_s24  ;;  %s34_s6 = int_to_ptr.hbm [resolvable:$true] %s33_s6 }
   0xc   :  { %82 = dma.hbm_to_vmem [thread:$0]  %s78_s20, 16, %s80_s24, [#allocation9]  }
   0xd   :  { %s2615_s29 = smov [#allocation11]   ;;  %s2616_s15 = smov [#allocation2]  }
   0xe   :  { %s102_s30 = sshll.u32 %s2615_s29, 4  ;;  %s35_s16 = sshll.u32 %s2616_s15, 4  ;;  %s103_s30 = int_to_ptr.vmem [resolvable:$true] %s102_s30  ;;  %s36_s16 = int_to_ptr.vmem [resolvable:$true] %s35_s16 }
   0xf   :  { %108 = dma.hbm_to_vmem [thread:$0]  %s101_s4, 256, %s103_s30, [#allocation12], %s2612_s21, %s2612_s21, %s2613_s22  }
  0x10   :  { %s63_s8 = sshll.u32 %s3336_s5, 4  ;;  %s2617_s1 = smov [#allocation7]   ;;  %s64_s8 = int_to_ptr.hbm [resolvable:$true] %s63_s8 }
  0x11   :  { %41 = dma.hbm_to_vmem [thread:$0]  %s34_s6, 256, %s36_s16, [#allocation3], %s2612_s21, %s2612_s21, %s2613_s22  }
  0x12   :  { %s65_s19 = sshll.u32 %s2617_s1, 4  ;;  %s87_s24 = sshll.u32 %s3338_s7, 4  ;;  %s66_s19 = int_to_ptr.vmem [resolvable:$true] %s65_s19  ;;  %s88_s24 = int_to_ptr.hbm [resolvable:$true] %s87_s24 }
  0x13   :  { %s2618_s25 = smov 256   ;;  %s2619_s26 = smov 16  }
  0x14   :  { %71 = dma.hbm_to_vmem [thread:$0]  %s64_s8, 2048, %s66_s19, [#allocation6], %s2618_s25, %s2618_s25, %s2619_s26  }
  0x15   :  { %s2620_s4 = smov [#allocation10]   ;;  %s113_s29 = sshll.u32 %s3340_s9, 4  ;;  %s114_s29 = int_to_ptr.hbm [resolvable:$true] %s113_s29 }
  0x16   :  { %s89_s27 = sshll.u32 %s2620_s4, 4  ;;  %s128_s7 = sshll.u32 %s3342_s11, 4  ;;  %s90_s27 = int_to_ptr.vmem [resolvable:$true] %s89_s27  ;;  %s129_s7 = int_to_ptr.hbm [resolvable:$true] %s128_s7 }
  0x17   :  { %95 = dma.hbm_to_vmem [thread:$0]  %s88_s24, 512, %s90_s27, [#allocation9], %s2612_s21, %s2612_s21, %s2613_s22  }
  0x18   :  { %s2621_s15 = smov [#allocation13]   ;;  %s2622_s17 = smov [#allocation14]  }
  0x19   :  { %s115_s16 = sshll.u32 %s2621_s15, 4  ;;  %s130_s9 = sshll.u32 %s2622_s17, 4  ;;  %s116_s16 = int_to_ptr.vmem [resolvable:$true] %s115_s16  ;;  %s131_s9 = int_to_ptr.vmem [resolvable:$true] %s130_s9 }
  0x1a   :  { %121 = dma.hbm_to_vmem [thread:$0]  %s114_s29, 512, %s116_s16, [#allocation12], %s2612_s21, %s2612_s21, %s2613_s22  }
  0x1b   :  { %136 = dma.hbm_to_vmem [thread:$0]  %s129_s7, 512, %s131_s9, [#allocation15], %s2612_s21, %s2612_s21, %s2613_s22  }
  0x1c   :  { %2597 = dma.done.wait [#allocation3], 256  }
  0x1d   :  { %2598 = vsyncadd [#allocation3], 4294967040 }
  0x1e   :  { %2599 = dma.done.wait [#allocation6], 2304  }
  0x1f   :  { %2600 = vsyncadd [#allocation6], 4294964992 }
  0x20   :  { %2601 = dma.done.wait [#allocation9], 528  }
  0x21   :  { %2602 = vsyncadd [#allocation9], 4294966768 }
  0x22   :  { %2603 = dma.done.wait [#allocation12], 768  }
  0x23   :  { %2604 = vsyncadd [#allocation12], 4294966528 }
  0x24   :  { %2605 = dma.done.wait [#allocation15], 512  }
  0x25   :  { %2606 = vsyncadd [#allocation15], 4294966784  ;;  %v2114_v0 = vld [vmem:[%s3334_s3 + $0x2] sm:$0x3]  ;;  %v2750_v1 = vld [vmem:[#allocation7 + $0x70] sm:$0xff]  ;;  %s2623_s8 = smov 32  }
  0x26   :  { %v2752_v2 = vld [vmem:[#allocation7 + $0x78] sm:$0xff]  ;;  %247 = vrot.lane.b32.xlu0 %v2114_v0, %s2623_s8  ;;  %264 = vmatpush.msra.mxu1 %v2750_v1  ;;  %v2756_v3 = vld [vmem:[#allocation7 + $0x60] sm:$0xff]  ;;  %v2758_v4 = vld [vmem:[#allocation7 + $0x68] sm:$0xff]  ;;  %vm250_vm0 = vcmask 261120   ;;  %vm252_vm1 = vcmask 523264   ;;  %vm327_vm2 = vcmask 7168  }
  0x27   :  { %284 = vmatpush.msra.mxu2 %v2752_v2  ;;  %v2761_v5 = vld [vmem:[#allocation7 + $0x50] sm:$0xff]  ;;  %v2764_v6 = vld [vmem:[#allocation7 + $0x58] sm:$0xff]  ;;  %v2767_v7 = vld [vmem:[#allocation7 + $0x40] sm:$0xff]  ;;  %v2624_v50 = vmov 0   ;;  %s2625_s4 = smov 64   ;;  %vm213_vm11 = vcmask 130048  }
  0x28   :  { %265 = vmatpush.msra.mxu1 %v2756_v3  ;;  %v2770_v8 = vld [vmem:[#allocation7 + $0x48] sm:$0xff]  ;;  %v2773_v9 = vld [vmem:[#allocation7 + $0x30] sm:$0xff]  ;;  %v2776_v10 = vld [vmem:[#allocation7 + $0x38] sm:$0xff]  ;;  %2172 = vset.pattern.permute.xlu1 %v2624_v50  ;;  %vm420_vm12 = vcmask 1041409   ;;  %s2626_s29 = smov 96   ;;  %s2090_s25 = sshll.u32 %s3345_s14, 4  ;;  %s2091_s25 = int_to_ptr.hbm [resolvable:$true] %s2090_s25 }
  0x29   :  { %285 = vmatpush.msra.mxu2 %v2758_v4  ;;  %v2779_v11 = vld [vmem:[#allocation7 + $0x20] sm:$0xff]  ;;  %v2782_v12 = vld [vmem:[#allocation7 + $0x28] sm:$0xff]  ;;  %v2785_v13 = vld [vmem:[#allocation7 + $0x10] sm:$0xff]  ;;  %2173 = vset.pattern.permute.xlu2 %v2624_v50  ;;  %s2628_s26 = smov 2   ;;  %s2077_s28 = sshll.u32 %s3344_s13, 4  ;;  %s2078_s28 = int_to_ptr.hbm [resolvable:$true] %s2077_s28 }
  0x2a   :  { %266 = vmatpush.msra.mxu1 %v2761_v5  ;;  %v2788_v14 = vld [vmem:[#allocation7 + $0x18] sm:$0xff]  ;;  %v2793_v15 = vld [vmem:[#allocation7] sm:$0xff]  ;;  %v2795_v16 = vld [vmem:[#allocation7 + $0x8] sm:$0xff]  ;;  %2174 = vset.pattern.permute.xlu0 %v2624_v50 }
  0x2b   :  { %286 = vmatpush.msra.mxu2 %v2764_v6  ;;  %v2810_v17 = vld [vmem:[%s3334_s3] sm:$0x3]  ;;  %v2825_v24 = vld [vmem:[#allocation2 + $0x8] sm:$0xff] }
  0x2c   :  { %267 = vmatpush.msra.mxu1 %v2767_v7  ;;  %v2819_v20 = vld [vmem:[#allocation2] sm:$0xff]  ;;  %v2843_v37 = vld [vmem:[%s3333_s2 + $0x8] sm:$0xff] }
  0x2d   :  { %287 = vmatpush.msra.mxu2 %v2770_v8  ;;  %v2829_v28 = vld [vmem:[#allocation8] ss:$0 sm:$0xff] }
  0x2e   :  { %268 = vmatpush.msra.mxu1 %v2773_v9  ;;  %v2838_v35 = vld [vmem:[%s3333_s2] sm:$0xff] }
  0x2f   :  { %288 = vmatpush.msra.mxu2 %v2776_v10 }
  0x30   :  { %269 = vmatpush.msra.mxu1 %v2779_v11 }
  0x31   :  { %289 = vmatpush.msra.mxu2 %v2782_v12 }
  0x32   :  { %270 = vmatpush.msra.mxu1 %v2785_v13 }
  0x33   :  { %290 = vmatpush.msra.mxu2 %v2788_v14 }
  0x34   :  { %271 = vmatpush.msra.mxu1 %v2793_v15 }
  0x35   :  { %291 = vmatpush.msra.mxu2 %v2795_v16 }
  0x36   :  { %588 = vmatpush.msrb.mxu1 %v2752_v2 }
  0x38   :  { %589 = vmatpush.msrb.mxu1 %v2758_v4 }
  0x3a   :  { %590 = vmatpush.msrb.mxu1 %v2764_v6 }
  0x3c   :  { %591 = vmatpush.msrb.mxu1 %v2770_v8 }
  0x3e   :  { %592 = vmatpush.msrb.mxu1 %v2776_v10 }
  0x40   :  { %593 = vmatpush.msrb.mxu1 %v2782_v12 }
  0x42   :  { %594 = vmatpush.msrb.mxu1 %v2788_v14 }
  0x44   :  { %595 = vmatpush.msrb.mxu1 %v2795_v16 }
  0x98   :  { %v2812_v18 = vpop.permute.xlu0 %247 }
  0x99   :  { %v251_v19 = vsel %vm250_vm0, %v2810_v17, %v2812_v18 }
  0x9a   :  { %2115 = vmatmul.msk.f32.vlgmr.msra.gmra.mxu1 %vm252_vm1, %v251_v19  ;;  %2116 = vmatmul.msk.f32.vlgmr.msra.gmra.mxu2 %vm252_vm1, %v251_v19 }
 0x117   :  { %v2821_v21 = vpop.f32.mrf.mxu1 }
 0x118   :  { %v305_v22 = vrot.slane %v2821_v21, 1  ;;  %v306_v23 = vperm.slane %v2821_v21, 0 }
 0x11a   :  { %v307_v25 = vperm.slane %v305_v22, 0  ;;  %v310_v26 = vadd.f32 %v306_v23, %v2819_v20 }
 0x11c   :  { %v311_v27 = vadd.f32 %v307_v25, %v2825_v24  ;;  %2177 = vtanh.f32 %v310_v26 }
 0x11e   :  { %2179 = vtanh.f32 %v311_v27 }
 0x122   :  { %v2178_v29 = vpop.eup %2177 }
 0x123   :  { %v317_v30 = vmul.f32 %v2178_v29, %v2829_v28 }
 0x124   :  { %v2180_v31 = vpop.eup %2179 }
 0x125   :  { %v319_v32 = vsel %vm250_vm0, %v317_v30, 0.0  ;;  %v318_v33 = vmul.f32 %v2180_v31, %v2829_v28 }
 0x126   :  { %320 = vadd.xlane.f32.xlu0 %v319_v32 }
 0x127   :  { %v322_v34 = vsel %vm250_vm0, %v318_v33, 0.0 }
 0x128   :  { %323 = vadd.xlane.f32.xlu1 %v322_v34 }
 0x199   :  { %v321_v36 = vpop.xlane.xlu0 %320 }
 0x19a   :  { %v325_v38 = vadd.f32 %v321_v36, %v2838_v35 }
 0x19b   :  { %v324_v39 = vpop.xlane.xlu1 %323 }
 0x19c   :  { %v328_v40 = vsel %vm327_vm2, %v325_v38, -inf  ;;  %v326_v41 = vadd.f32 %v324_v39, %v2843_v37 }
 0x19d   :  { %v329_v42 = vrot.slane %v328_v40, 4 }
 0x19e   :  { %v335_v43 = vsel %vm327_vm2, %v326_v41, -inf }
 0x19f   :  { %v330_v44 = vmax.f32 %v328_v40, %v329_v42  ;;  %v336_v45 = vrot.slane %v335_v43, 4 }
 0x1a1   :  { %v331_v46 = vrot.slane %v330_v44, 2  ;;  %v337_v47 = vmax.f32 %v335_v43, %v336_v45 }
 0x1a3   :  { %v332_v48 = vmax.f32 %v330_v44, %v331_v46  ;;  %v338_v49 = vrot.slane %v337_v47, 2 }
 0x1a5   :  { %v333_v51 = vrot.slane %v332_v48, 1  ;;  %v339_v52 = vmax.f32 %v337_v47, %v338_v49 }
 0x1a7   :  { %v334_v53 = vmax.f32 %v332_v48, %v333_v51  ;;  %v340_v54 = vrot.slane %v339_v52, 1 }
 0x1a9   :  { %v342_v55 = vsub.f32 %v325_v38, %v334_v53  ;;  %v341_v56 = vmax.f32 %v339_v52, %v340_v54 }
 0x1ab   :  { %v344_v57 = vmul.f32 1.442695, %v342_v55  ;;  %v343_v58 = vsub.f32 %v326_v41, %v341_v56 }
 0x1ad   :  { %2181 = vpow2.f32 %v344_v57  ;;  %v346_v59 = vmul.f32 1.442695, %v343_v58  ;;  %v2854_v58 = vld [vmem:[%s3341_s10] sm:$0xf] }
 0x1af   :  { %2183 = vpow2.f32 %v346_v59  ;;  %v2857_v59 = vperm.slane %v2854_v58, 1 }
 0x1b3   :  { %v2182_v60 = vpop.eup %2181 }
 0x1b4   :  { %v348_v61 = vsel %vm327_vm2, %v2182_v60, 0.0 }
 0x1b5   :  { %v2184_v62 = vpop.eup %2183  ;;  %v349_v63 = vrot.slane %v348_v61, 4 }
 0x1b6   :  { %v355_v0 = vsel %vm327_vm2, %v2184_v62, 0.0 }
 0x1b7   :  { %v350_v19 = vadd.f32 %v349_v63, %v348_v61  ;;  %v356_v22 = vrot.slane %v355_v0, 4  ;;  %v293_v61 = vpop.f32.mrf.mxu2 }
 0x1b8   :  { %v2860_v63 = vadd.f32 %v2857_v59, %v293_v61 }
 0x1b9   :  { %v351_v23 = vrot.slane %v350_v19, 2  ;;  %v357_v25 = vadd.f32 %v356_v22, %v355_v0  ;;  %v2870_v0 = vld [vmem:[#allocation10 + $0x8] sm:$0xff] }
 0x1bb   :  { %v352_v26 = vadd.f32 %v351_v23, %v350_v19  ;;  %v358_v27 = vrot.slane %v357_v25, 2  ;;  %v2875_v19 = vld [vmem:[#allocation10] sm:$0xff] }
 0x1bc   :  { %v2883_v23 = vld [vmem:[%s3331_s0 + $0x8] sm:$0xff] }
 0x1bd   :  { %v353_v29 = vrot.slane %v352_v26, 1  ;;  %v359_v30 = vadd.f32 %v358_v27, %v357_v25  ;;  %v211_v25 = vld [vmem:[#allocation11 + $0x8] sm:$0xff] }
 0x1be   :  { %234 = vmatpush.msra.mxu0 %v211_v25  ;;  %v208_v27 = vld [vmem:[#allocation5] sm:$0xff] }
 0x1bf   :  { %v354_v31 = vadd.f32 %v353_v29, %v352_v26  ;;  %v360_v32 = vrot.slane %v359_v30, 1  ;;  %v210_v26 = vld [vmem:[#allocation11] sm:$0xff] }
 0x1c0   :  { %235 = vmatpush.msra.mxu0 %v210_v26 }
 0x1c1   :  { %2185 = vrcp.f32 %v354_v31  ;;  %v361_v33 = vadd.f32 %v360_v32, %v359_v30  ;;  %v373_v41 = vand.u32 2147483648, %v354_v31  ;;  %v371_v43 = vand.u32 2147483647, %v354_v31  ;;  %2112 = vmatmul.msk.f32.vlgmr.msra.gmra.mxu0 %vm213_vm11, %v208_v27 }
 0x1c2   :  { %vm367_vm4 = vweird.f32 %v354_v31  ;;  %568 = vmatpush.msrb.mxu0 %v2750_v1 }
 0x1c3   :  { %2187 = vrcp.f32 %v361_v33  ;;  %v388_v45 = vand.u32 2147483648, %v361_v33  ;;  %v386_v48 = vand.u32 2147483647, %v361_v33  ;;  %v374_v49 = vor.u32 1.1754944e-38, %v373_v41 }
 0x1c4   :  { %vm372_vm7 = vcmp.eq.f32.partialorder %v371_v43, 8.507059e+37  ;;  %vm382_vm8 = vweird.f32 %v361_v33  ;;  %569 = vmatpush.msrb.mxu0 %v2756_v3 }
 0x1c5   :  { %v389_v53 = vor.u32 1.1754944e-38, %v388_v45  ;;  %vm387_vm10 = vcmp.eq.f32.partialorder %v386_v48, 8.507059e+37 }
 0x1c6   :  { %570 = vmatpush.msrb.mxu0 %v2761_v5 }
 0x1c7   :  { %v2186_v34 = vpop.eup %2185 }
 0x1c8   :  { %v363_v36 = vmul.f32 %v2186_v34, %v354_v31  ;;  %vm368_vm3 = vweird.f32 %v2186_v34  ;;  %571 = vmatpush.msrb.mxu0 %v2767_v7 }
 0x1c9   :  { %v2188_v38 = vpop.eup %2187  ;;  %vm369_vm6 = vmor %vm367_vm4, %vm368_vm3 }
 0x1ca   :  { %v364_v39 = vsub.f32 1.0, %v363_v36  ;;  %v378_v40 = vmul.f32 %v2188_v38, %v361_v33  ;;  %vm383_vm5 = vweird.f32 %v2188_v38  ;;  %v2905_v33 = vld [vmem:[%s3331_s0] sm:$0xff]  ;;  %572 = vmatpush.msrb.mxu0 %v2773_v9 }
 0x1cb   :  { %vm384_vm9 = vmor %vm382_vm8, %vm383_vm5 }
 0x1cc   :  { %v365_v42 = vmul.f32 %v2186_v34, %v364_v39  ;;  %v379_v44 = vsub.f32 1.0, %v378_v40  ;;  %573 = vmatpush.msrb.mxu0 %v2779_v11 }
 0x1ce   :  { %v366_v46 = vadd.f32 %v2186_v34, %v365_v42  ;;  %v380_v47 = vmul.f32 %v2188_v38, %v379_v44  ;;  %574 = vmatpush.msrb.mxu0 %v2785_v13 }
 0x1d0   :  { %v370_v50 = vsel %vm369_vm6, %v2186_v34, %v366_v46  ;;  %v381_v51 = vadd.f32 %v2188_v38, %v380_v47  ;;  %575 = vmatpush.msrb.mxu0 %v2793_v15 }
 0x1d1   :  { %v375_v52 = vsel %vm372_vm7, %v374_v49, %v370_v50  ;;  %v212_v50 = vperm.slane %v2854_v58, 0 }
 0x1d2   :  { %v376_v54 = vmul.f32 %v2182_v60, %v375_v52  ;;  %v385_v55 = vsel %vm384_vm9, %v2188_v38, %v381_v51  ;;  %v2864_v60 = vld [vmem:[#allocation10 + $0x18] sm:$0xff]  ;;  %859 = vmatpush.msra.mxu0 %v2750_v1 }
 0x1d3   :  { %v390_v56 = vsel %vm387_vm10, %v389_v53, %v385_v55  ;;  %436 = vmatpush.msra.mxu3 %v2864_v60  ;;  %732 = vmatpush.msrb.mxu2 %v2864_v60 }
 0x1d4   :  { %394 = vperm.xlu1 %2172, %v376_v54   ;;  %v391_v57 = vmul.f32 %v2184_v62, %v390_v56  ;;  %v2868_v62 = vld [vmem:[#allocation10 + $0x10] sm:$0xff]  ;;  %1312 = vmatpush.msra.mxu1 %v2864_v60 }
 0x1d5   :  { %437 = vmatpush.msra.mxu3 %v2868_v62  ;;  %733 = vmatpush.msrb.mxu2 %v2868_v62 }
 0x1d6   :  { %399 = vperm.xlu2 %2173, %v391_v57   ;;  %1313 = vmatpush.msra.mxu1 %v2868_v62 }
 0x1d7   :  { %438 = vmatpush.msra.mxu3 %v2870_v0  ;;  %734 = vmatpush.msrb.mxu2 %v2870_v0 }
 0x1d8   :  { %1314 = vmatpush.msra.mxu1 %v2870_v0  ;;  %860 = vmatpush.msra.mxu0 %v2756_v3 }
 0x1d9   :  { %439 = vmatpush.msra.mxu3 %v2875_v19  ;;  %735 = vmatpush.msrb.mxu2 %v2875_v19 }
 0x1da   :  { %1315 = vmatpush.msra.mxu1 %v2875_v19  ;;  %861 = vmatpush.msra.mxu0 %v2761_v5 }
 0x1db   :  { %879 = vmatpush.msra.mxu2 %v2752_v2 }
 0x1dc   :  { %862 = vmatpush.msra.mxu0 %v2767_v7 }
 0x1dd   :  { %880 = vmatpush.msra.mxu2 %v2758_v4 }
 0x1de   :  { %465 = vrot.lane.b32.xlu2 %v2860_v63, %s2625_s4  ;;  %863 = vmatpush.msra.mxu0 %v2773_v9 }
 0x1df   :  { %881 = vmatpush.msra.mxu2 %v2764_v6 }
 0x1e0   :  { %864 = vmatpush.msra.mxu0 %v2779_v11 }
 0x1e1   :  { %882 = vmatpush.msra.mxu2 %v2770_v8 }
 0x1e2   :  { %865 = vmatpush.msra.mxu0 %v2785_v13 }
 0x1e3   :  { %883 = vmatpush.msra.mxu2 %v2776_v10 }
 0x1e4   :  { %866 = vmatpush.msra.mxu0 %v2793_v15 }
 0x1e5   :  { %884 = vmatpush.msra.mxu2 %v2782_v12 }
 0x1e7   :  { %885 = vmatpush.msra.mxu2 %v2788_v14 }
 0x1e9   :  { %886 = vmatpush.msra.mxu2 %v2795_v16 }
 0x230   :  { %v400_v22 = vpop.permute.xlu2 %399 }
 0x231   :  { %v403_v29 = vmul.f32 %v400_v22, %v2883_v23 }
 0x233   :  { %v411_v30 = vsel %vm250_vm0, %v403_v29, 0.0 }
 0x234   :  { %v412_v31 = vrot.slane %v411_v30, 4 }
 0x236   :  { %v413_v32 = vadd.f32 %v412_v31, %v411_v30 }
 0x238   :  { %v414_v38 = vrot.slane %v413_v32, 2 }
 0x23a   :  { %v415_v41 = vadd.f32 %v414_v38, %v413_v32 }
 0x23c   :  { %v416_v44 = vrot.slane %v415_v41, 1 }
 0x23e   :  { %v417_v48 = vadd.f32 %v416_v44, %v415_v41  ;;  %v237_v51 = vpop.f32.mrf.mxu0 }
 0x23f   :  { %v2928_v52 = vadd.f32 %v237_v51, %v212_v50 }
 0x246   :  { %v395_v34 = vpop.permute.xlu1 %394 }
 0x247   :  { %v402_v36 = vmul.f32 %v395_v34, %v2905_v33 }
 0x249   :  { %v404_v39 = vsel %vm250_vm0, %v402_v36, 0.0  ;;  %v466_v36 = vpop.permute.xlu2 %465 }
 0x24a   :  { %v405_v40 = vrot.slane %v404_v39, 4 }
 0x24c   :  { %v406_v42 = vadd.f32 %v405_v40, %v404_v39 }
 0x24e   :  { %v407_v43 = vrot.slane %v406_v42, 2 }
 0x250   :  { %v408_v45 = vadd.f32 %v407_v43, %v406_v42  ;;  %v296_v42 = vperm.slane %v2854_v58, 3 }
 0x252   :  { %v409_v46 = vrot.slane %v408_v45, 1 }
 0x254   :  { %v410_v47 = vadd.f32 %v409_v46, %v408_v45 }
 0x256   :  { %v421_v49 = vsel %vm420_vm12, %v417_v48, %v410_v47 }
 0x257   :  { %2117 = vmatmul.msk.f32.vlgmr.msra.gmra.mxu3 %vm250_vm0, %v421_v49 }
 0x2da   :  { %v441_v53 = vpop.f32.mrf.mxu3 }
 0x2db   :  { %v442_v54 = vadd.f32 %v441_v53, %v2928_v52  ;;  %v2950_v53 = vld [vmem:[#allocation13 + $0x10] sm:$0xff] }
 0x2dd   :  { %v444_v55 = vadd.f32 %v442_v54, %v2860_v63 }
 0x2df   :  { %v2118_v56 = vmul.f32 -1.442695, %v444_v55  ;;  %v2956_v55 = vld [vmem:[#allocation13] sm:$0xff] }
 0x2e1   :  { %2189 = vpow2.f32 %v2118_v56  ;;  %v2970_v56 = vperm.slane %v2854_v58, 2 }
 0x2e7   :  { %v2190_v57 = vpop.eup %2189 }
 0x2e8   :  { %v448_v61 = vadd.f32 1.0, %v2190_v57 }
 0x2ea   :  { %2191 = vrcp.f32 %v448_v61  ;;  %v460_v27 = vand.u32 2147483648, %v448_v61  ;;  %v458_v30 = vand.u32 2147483647, %v448_v61  ;;  %vm454_vm14 = vweird.f32 %v448_v61 }
 0x2ec   :  { %v461_v32 = vor.u32 1.1754944e-38, %v460_v27  ;;  %vm459_vm3 = vcmp.eq.f32.partialorder %v458_v30, 8.507059e+37 }
 0x2f0   :  { %v2192_v22 = vpop.eup %2191 }
 0x2f1   :  { %v450_v25 = vmul.f32 %v2192_v22, %v448_v61  ;;  %vm455_vm13 = vweird.f32 %v2192_v22 }
 0x2f2   :  { %vm456_vm15 = vmor %vm454_vm14, %vm455_vm13 }
 0x2f3   :  { %v451_v26 = vsub.f32 1.0, %v450_v25 }
 0x2f5   :  { %v452_v29 = vmul.f32 %v2192_v22, %v451_v26 }
 0x2f7   :  { %v453_v31 = vadd.f32 %v2192_v22, %v452_v29 }
 0x2f9   :  { %v457_v34 = vsel %vm456_vm15, %v2192_v22, %v453_v31 }
 0x2fa   :  { %v462_v63 = vsel %vm459_vm3, %v461_v32, %v457_v34 }
 0x2fb   :  { %v468_v38 = vmul.f32 %v466_v36, %v462_v63  ;;  %v475_v44 = vsub.f32 1.0, %v462_v63 }
 0x2fd   :  { %470 = vrot.lane.b32.xlu2 %v468_v38, %s2625_s4 }
 0x357   :  { %v471_v39 = vpop.permute.xlu2 %470 }
 0x358   :  { %v473_v40 = vadd.f32 %v471_v39, %v442_v54  ;;  %v2953_v54 = vld [vmem:[#allocation13 + $0x8] sm:$0xff] }
 0x35a   :  { %2193 = vtanh.f32 %v473_v40  ;;  %v209_v40 = vld [vmem:[#allocation5 + $0x8] sm:$0xf] }
 0x35b   :  { %2113 = vmatmul.msk.f32.gmra.mxu0 %vm213_vm11, %v209_v40 }
 0x360   :  { %v2194_v41 = vpop.eup %2193 }
 0x361   :  { %477 = vrot.lane.b32.xlu2 %v2194_v41, %s2626_s29 }
 0x369   :  { %482 = vrot.lane.b32.xlu2 %v2810_v17, %s2623_s8  ;;  %v2948_v17 = vld [vmem:[#allocation13 + $0x18] sm:$0xff] }
 0x36a   :  { %505 = vmatpush.msrb.mxu3 %v2948_v17 }
 0x36c   :  { %506 = vmatpush.msrb.mxu3 %v2950_v53 }
 0x36e   :  { %507 = vmatpush.msrb.mxu3 %v2953_v54 }
 0x370   :  { %508 = vmatpush.msrb.mxu3 %v2956_v55 }
 0x371   :  { %298 = vrot.lane.b32.xlu2 %v296_v42, %s2623_s8 }
 0x372   :  { %796 = vmatpush.msra.mxu3 %v2948_v17 }
 0x374   :  { %797 = vmatpush.msra.mxu3 %v2950_v53 }
 0x376   :  { %798 = vmatpush.msra.mxu3 %v2953_v54 }
 0x378   :  { %799 = vmatpush.msra.mxu3 %v2956_v55 }
 0x3bb   :  { %v478_v43 = vpop.permute.xlu2 %477 }
 0x3bc   :  { %v480_v46 = vmul.f32 %v478_v43, %v475_v44 }
 0x3c3   :  { %v483_v45 = vpop.permute.xlu2 %482 }
 0x3c4   :  { %v485_v47 = vmul.f32 %v483_v45, %v462_v63 }
 0x3c6   :  { %v2938_v48 = vadd.f32 %v485_v47, %v480_v46 }
 0x3c8   :  { %489 = vrot.lane.b32.xlu1 %v2938_v48, %s2626_s29 }
 0x3cb   :  { %v2942_v49 = vpop.permute.xlu2 %298 }
 0x3cc   :  { %v301_v51 = vadd.f32 %v2942_v49, %v2821_v21 }
 0x3ce   :  { %537 = vrot.lane.b32.xlu2 %v301_v51, %s2623_s8 }
 0x3d0   :  { %514 = vrot.lane.b32.xlu1 %v301_v51, %s2626_s29 }
 0x428   :  { %v538_v63 = vpop.permute.xlu2 %537 }
 0x43a   :  { %v490_v21 = vpop.permute.xlu1 %489 }
 0x43b   :  { %2119 = vmatmul.msk.f32.vlgmr.msrb.gmra.mxu3 %vm250_vm0, %v490_v21 }
 0x43c   :  { %1022 = vmatpush.msrb.mxu3 %v2864_v60 }
 0x43e   :  { %1023 = vmatpush.msrb.mxu3 %v2868_v62 }
 0x440   :  { %1024 = vmatpush.msrb.mxu3 %v2870_v0 }
 0x442   :  { %1025 = vmatpush.msrb.mxu3 %v2875_v19  ;;  %v515_v22 = vpop.permute.xlu1 %514 }
 0x4be   :  { %v510_v57 = vpop.f32.mrf.mxu3 }
 0x4bf   :  { %v511_v61 = vadd.f32 %v510_v57, %v2970_v56 }
 0x4c1   :  { %v517_v25 = vadd.f32 %v515_v22, %v511_v61 }
 0x4c3   :  { %v2120_v26 = vmul.f32 -1.442695, %v517_v25 }
 0x4c5   :  { %2195 = vpow2.f32 %v2120_v26 }
 0x4cb   :  { %v2196_v27 = vpop.eup %2195 }
 0x4cc   :  { %v521_v29 = vadd.f32 1.0, %v2196_v27 }
 0x4ce   :  { %2197 = vrcp.f32 %v521_v29  ;;  %v533_v31 = vand.u32 2147483648, %v521_v29  ;;  %v531_v19 = vand.u32 2147483647, %v521_v29  ;;  %vm527_vm5 = vweird.f32 %v521_v29 }
 0x4d0   :  { %v534_v34 = vor.u32 1.1754944e-38, %v533_v31  ;;  %vm532_vm7 = vcmp.eq.f32.partialorder %v531_v19, 8.507059e+37 }
 0x4d4   :  { %v2198_v60 = vpop.eup %2197 }
 0x4d5   :  { %v523_v30 = vmul.f32 %v2198_v60, %v521_v29  ;;  %vm528_vm4 = vweird.f32 %v2198_v60 }
 0x4d6   :  { %vm529_vm6 = vmor %vm527_vm5, %vm528_vm4 }
 0x4d7   :  { %v524_v62 = vsub.f32 1.0, %v523_v30 }
 0x4d9   :  { %v525_v0 = vmul.f32 %v2198_v60, %v524_v62 }
 0x4db   :  { %v526_v32 = vadd.f32 %v2198_v60, %v525_v0 }
 0x4dd   :  { %v530_v36 = vsel %vm529_vm6, %v2198_v60, %v526_v32 }
 0x4de   :  { %v535_v38 = vsel %vm532_vm7, %v534_v34, %v530_v36 }
 0x4df   :  { %v540_v39 = vmul.f32 %v538_v63, %v535_v38  ;;  %v547_v44 = vsub.f32 1.0, %v535_v38  ;;  %v553_v46 = vmul.f32 %v535_v38, %v2812_v18 }
 0x4e1   :  { %542 = vrot.lane.b32.xlu1 %v540_v39, %s2625_s4 }
 0x553   :  { %v543_v41 = vpop.permute.xlu1 %542 }
 0x554   :  { %v545_v42 = vadd.f32 %v543_v41, %v511_v61 }
 0x556   :  { %2199 = vtanh.f32 %v545_v42 }
 0x55c   :  { %v2200_v43 = vpop.eup %2199 }
 0x55d   :  { %549 = vrot.lane.b32.xlu0 %v2200_v43, %s2626_s29 }
 0x5cf   :  { %v550_v45 = vpop.permute.xlu0 %549 }
 0x5d0   :  { %v552_v47 = vmul.f32 %v550_v45, %v547_v44 }
 0x5d2   :  { %v2977_v51 = vadd.f32 %v553_v46, %v552_v47 }
 0x5d4   :  { %v556_v57 = vsel %vm250_vm0, %v490_v21, %v2977_v51 }
 0x5d5   :  { %2121 = vmatmul.msk.f32.vlgmr.msrb.gmra.mxu0 %vm252_vm1, %v556_v57  ;;  %2122 = vmatmul.msk.f32.vlgmr.msrb.gmra.mxu1 %vm252_vm1, %v556_v57 }
 0x5d6   :  { %1169 = vmatpush.msrb.mxu0 %v2752_v2  ;;  %1439 = vmatpush.msrb.mxu1 %v2750_v1  ;;  %v2999_v2 = vpop.f32.mrf.mxu0 }
 0x5d8   :  { %1170 = vmatpush.msrb.mxu0 %v2758_v4  ;;  %1440 = vmatpush.msrb.mxu1 %v2756_v3 }
 0x5da   :  { %1171 = vmatpush.msrb.mxu0 %v2764_v6  ;;  %1441 = vmatpush.msrb.mxu1 %v2761_v5 }
 0x5dc   :  { %1172 = vmatpush.msrb.mxu0 %v2770_v8  ;;  %1442 = vmatpush.msrb.mxu1 %v2767_v7 }
 0x5de   :  { %1173 = vmatpush.msrb.mxu0 %v2776_v10  ;;  %1443 = vmatpush.msrb.mxu1 %v2773_v9 }
 0x5e0   :  { %1174 = vmatpush.msrb.mxu0 %v2782_v12  ;;  %1444 = vmatpush.msrb.mxu1 %v2779_v11 }
 0x5e2   :  { %1175 = vmatpush.msrb.mxu0 %v2788_v14  ;;  %1445 = vmatpush.msrb.mxu1 %v2785_v13 }
 0x5e4   :  { %1176 = vmatpush.msrb.mxu0 %v2795_v16  ;;  %1446 = vmatpush.msrb.mxu1 %v2793_v15 }
 0x652   :  { %v3001_v4 = vpop.f32.mrf.mxu0 }
 0x653   :  { %v603_v6 = vrot.slane %v3001_v4, 1  ;;  %v604_v8 = vperm.slane %v3001_v4, 0 }
 0x655   :  { %v605_v10 = vperm.slane %v603_v6, 0  ;;  %v608_v12 = vadd.f32 %v604_v8, %v2819_v20 }
 0x657   :  { %v609_v18 = vadd.f32 %v605_v10, %v2825_v24  ;;  %2201 = vtanh.f32 %v608_v12 }
 0x659   :  { %2203 = vtanh.f32 %v609_v18 }
 0x65d   :  { %v2202_v14 = vpop.eup %2201 }
 0x65e   :  { %v612_v16 = vmul.f32 %v2202_v14, %v2829_v28 }
 0x65f   :  { %v2204_v21 = vpop.eup %2203 }
 0x660   :  { %v614_v61 = vsel %vm250_vm0, %v612_v16, 0.0  ;;  %v613_v22 = vmul.f32 %v2204_v21, %v2829_v28 }
 0x661   :  { %615 = vadd.xlane.f32.xlu2 %v614_v61 }
 0x662   :  { %v617_v25 = vsel %vm250_vm0, %v613_v22, 0.0 }
 0x663   :  { %618 = vadd.xlane.f32.xlu1 %v617_v25 }
 0x6d4   :  { %v616_v26 = vpop.xlane.xlu2 %615 }
 0x6d5   :  { %v620_v27 = vadd.f32 %v616_v26, %v2838_v35 }
 0x6d6   :  { %v619_v20 = vpop.xlane.xlu1 %618 }
 0x6d7   :  { %v622_v24 = vsel %vm327_vm2, %v620_v27, -inf  ;;  %v621_v29 = vadd.f32 %v619_v20, %v2843_v37 }
 0x6d8   :  { %v623_v60 = vrot.slane %v622_v24, 4 }
 0x6d9   :  { %v629_v30 = vsel %vm327_vm2, %v621_v29, -inf }
 0x6da   :  { %v624_v62 = vmax.f32 %v622_v24, %v623_v60  ;;  %v630_v31 = vrot.slane %v629_v30, 4 }
 0x6dc   :  { %v625_v0 = vrot.slane %v624_v62, 2  ;;  %v631_v19 = vmax.f32 %v629_v30, %v630_v31 }
 0x6de   :  { %v626_v28 = vmax.f32 %v624_v62, %v625_v0  ;;  %v632_v32 = vrot.slane %v631_v19, 2 }
 0x6e0   :  { %v627_v34 = vrot.slane %v626_v28, 1  ;;  %v633_v36 = vmax.f32 %v631_v19, %v632_v32 }
 0x6e2   :  { %v628_v63 = vmax.f32 %v626_v28, %v627_v34  ;;  %v634_v38 = vrot.slane %v633_v36, 1 }
 0x6e4   :  { %v636_v39 = vsub.f32 %v620_v27, %v628_v63  ;;  %v635_v35 = vmax.f32 %v633_v36, %v634_v38 }
 0x6e6   :  { %v638_v40 = vmul.f32 1.442695, %v636_v39  ;;  %v637_v41 = vsub.f32 %v621_v29, %v635_v35 }
 0x6e8   :  { %2205 = vpow2.f32 %v638_v40  ;;  %v640_v42 = vmul.f32 1.442695, %v637_v41  ;;  %v597_v41 = vpop.f32.mrf.mxu1 }
 0x6ea   :  { %2207 = vpow2.f32 %v640_v42  ;;  %v601_v42 = vadd.f32 %v597_v41, %v2857_v59 }
 0x6ee   :  { %v2206_v37 = vpop.eup %2205 }
 0x6ef   :  { %v642_v43 = vsel %vm327_vm2, %v2206_v37, 0.0 }
 0x6f0   :  { %v2208_v44 = vpop.eup %2207  ;;  %v643_v45 = vrot.slane %v642_v43, 4 }
 0x6f1   :  { %v649_v46 = vsel %vm327_vm2, %v2208_v44, 0.0 }
 0x6f2   :  { %v644_v47 = vadd.f32 %v643_v45, %v642_v43  ;;  %v650_v57 = vrot.slane %v649_v46, 4 }
 0x6f4   :  { %v645_v6 = vrot.slane %v644_v47, 2  ;;  %v651_v8 = vadd.f32 %v650_v57, %v649_v46 }
 0x6f6   :  { %v646_v10 = vadd.f32 %v645_v6, %v644_v47  ;;  %v652_v12 = vrot.slane %v651_v8, 2 }
 0x6f8   :  { %v647_v18 = vrot.slane %v646_v10, 1  ;;  %v653_v14 = vadd.f32 %v652_v12, %v651_v8 }
 0x6fa   :  { %v648_v16 = vadd.f32 %v647_v18, %v646_v10  ;;  %v654_v21 = vrot.slane %v653_v14, 1 }
 0x6fc   :  { %2209 = vrcp.f32 %v648_v16  ;;  %v655_v61 = vadd.f32 %v654_v21, %v653_v14  ;;  %v667_v24 = vand.u32 2147483648, %v648_v16  ;;  %v665_v60 = vand.u32 2147483647, %v648_v16 }
 0x6fd   :  { %vm661_vm9 = vweird.f32 %v648_v16 }
 0x6fe   :  { %2211 = vrcp.f32 %v655_v61  ;;  %v668_v0 = vor.u32 1.1754944e-38, %v667_v24  ;;  %vm666_vm11 = vcmp.eq.f32.partialorder %v665_v60, 8.507059e+37  ;;  %v682_v34 = vand.u32 2147483648, %v655_v61 }
 0x6ff   :  { %vm676_vm14 = vweird.f32 %v655_v61  ;;  %v680_v63 = vand.u32 2147483647, %v655_v61 }
 0x700   :  { %v683_v39 = vor.u32 1.1754944e-38, %v682_v34 }
 0x701   :  { %vm681_vm3 = vcmp.eq.f32.partialorder %v680_v63, 8.507059e+37 }
 0x702   :  { %v2210_v22 = vpop.eup %2209 }
 0x703   :  { %v657_v25 = vmul.f32 %v2210_v22, %v648_v16  ;;  %vm662_vm8 = vweird.f32 %v2210_v22 }
 0x704   :  { %v2212_v26 = vpop.eup %2211  ;;  %vm663_vm10 = vmor %vm661_vm9, %vm662_vm8 }
 0x705   :  { %v658_v27 = vsub.f32 1.0, %v657_v25  ;;  %v672_v20 = vmul.f32 %v2212_v26, %v655_v61  ;;  %vm677_vm13 = vweird.f32 %v2212_v26 }
 0x706   :  { %vm678_vm15 = vmor %vm676_vm14, %vm677_vm13 }
 0x707   :  { %v659_v29 = vmul.f32 %v2210_v22, %v658_v27  ;;  %v673_v30 = vsub.f32 1.0, %v672_v20  ;;  %v716_v27 = vrot.slane %v2928_v52, 2 }
 0x709   :  { %v660_v62 = vadd.f32 %v2210_v22, %v659_v29  ;;  %v674_v31 = vmul.f32 %v2212_v26, %v673_v30 }
 0x70b   :  { %v664_v19 = vsel %vm663_vm10, %v2210_v22, %v660_v62  ;;  %v675_v28 = vadd.f32 %v2212_v26, %v674_v31 }
 0x70c   :  { %v669_v32 = vsel %vm666_vm11, %v668_v0, %v664_v19 }
 0x70d   :  { %v670_v36 = vmul.f32 %v2206_v37, %v669_v32  ;;  %v679_v38 = vsel %vm678_vm15, %v2212_v26, %v675_v28 }
 0x70e   :  { %v684_v35 = vsel %vm681_vm3, %v683_v39, %v679_v38 }
 0x70f   :  { %688 = vperm.xlu0 %2174, %v670_v36   ;;  %v685_v40 = vmul.f32 %v2208_v44, %v684_v35 }
 0x717   :  { %693 = vperm.xlu0 %2174, %v685_v40  }
 0x71f   :  { %761 = vrot.lane.b32.xlu0 %v601_v42, %s2625_s4 }
 0x781   :  { %v689_v43 = vpop.permute.xlu0 %688 }
 0x782   :  { %v696_v45 = vmul.f32 %v689_v43, %v2905_v33 }
 0x784   :  { %v698_v37 = vsel %vm250_vm0, %v696_v45, 0.0 }
 0x785   :  { %v699_v46 = vrot.slane %v698_v37, 4 }
 0x787   :  { %v700_v47 = vadd.f32 %v699_v46, %v698_v37 }
 0x789   :  { %v694_v57 = vpop.permute.xlu0 %693  ;;  %v701_v8 = vrot.slane %v700_v47, 2 }
 0x78a   :  { %v697_v6 = vmul.f32 %v694_v57, %v2883_v23 }
 0x78b   :  { %v702_v12 = vadd.f32 %v701_v8, %v700_v47 }
 0x78c   :  { %v705_v10 = vsel %vm250_vm0, %v697_v6, 0.0  ;;  %v600_v6 = vadd.f32 %v3001_v4, %v2942_v49 }
 0x78d   :  { %v706_v44 = vrot.slane %v705_v10, 4  ;;  %v703_v16 = vrot.slane %v702_v12, 1 }
 0x78f   :  { %v707_v18 = vadd.f32 %v706_v44, %v705_v10  ;;  %v704_v22 = vadd.f32 %v703_v16, %v702_v12 }
 0x791   :  { %v708_v14 = vrot.slane %v707_v18, 2  ;;  %v762_v39 = vpop.permute.xlu0 %761 }
 0x793   :  { %v709_v21 = vadd.f32 %v708_v14, %v707_v18 }
 0x795   :  { %v710_v61 = vrot.slane %v709_v21, 1 }
 0x797   :  { %v711_v25 = vadd.f32 %v710_v61, %v709_v21 }
 0x799   :  { %v714_v26 = vsel %vm420_vm12, %v711_v25, %v704_v22 }
 0x79a   :  { %2123 = vmatmul.msk.f32.vlgmr.msrb.gmra.mxu2 %vm250_vm0, %v714_v26 }
 0x79b   :  { %1086 = vmatpush.msrb.mxu2 %v2948_v17 }
 0x79d   :  { %1087 = vmatpush.msrb.mxu2 %v2950_v53 }
 0x79f   :  { %1088 = vmatpush.msrb.mxu2 %v2953_v54 }
 0x7a1   :  { %1089 = vmatpush.msrb.mxu2 %v2956_v55 }
 0x81d   :  { %v737_v20 = vpop.f32.mrf.mxu2 }
 0x81e   :  { %v738_v24 = vadd.f32 %v737_v20, %v716_v27 }
 0x820   :  { %v740_v29 = vadd.f32 %v738_v24, %v601_v42 }
 0x822   :  { %v2124_v60 = vmul.f32 -1.442695, %v740_v29 }
 0x824   :  { %2213 = vpow2.f32 %v2124_v60 }
 0x82a   :  { %v2214_v30 = vpop.eup %2213 }
 0x82b   :  { %v744_v62 = vadd.f32 1.0, %v2214_v30 }
 0x82d   :  { %2215 = vrcp.f32 %v744_v62  ;;  %v756_v28 = vand.u32 2147483648, %v744_v62  ;;  %v754_v34 = vand.u32 2147483647, %v744_v62  ;;  %vm750_vm5 = vweird.f32 %v744_v62 }
 0x82f   :  { %v757_v63 = vor.u32 1.1754944e-38, %v756_v28  ;;  %vm755_vm7 = vcmp.eq.f32.partialorder %v754_v34, 8.507059e+37  ;;  %v3071_v34 = vld [vmem:[#allocation2 + $0x8] sm:$0xff] }
 0x833   :  { %v2216_v31 = vpop.eup %2215 }
 0x834   :  { %v746_v0 = vmul.f32 %v2216_v31, %v744_v62  ;;  %vm751_vm4 = vweird.f32 %v2216_v31 }
 0x835   :  { %vm752_vm6 = vmor %vm750_vm5, %vm751_vm4 }
 0x836   :  { %v747_v19 = vsub.f32 1.0, %v746_v0 }
 0x838   :  { %v748_v32 = vmul.f32 %v2216_v31, %v747_v19 }
 0x83a   :  { %v749_v36 = vadd.f32 %v2216_v31, %v748_v32  ;;  %v3068_v32 = vld [vmem:[#allocation2] sm:$0xff] }
 0x83c   :  { %v753_v38 = vsel %vm752_vm6, %v2216_v31, %v749_v36 }
 0x83d   :  { %v758_v35 = vsel %vm755_vm7, %v757_v63, %v753_v38 }
 0x83e   :  { %v764_v40 = vmul.f32 %v762_v39, %v758_v35  ;;  %v771_v45 = vsub.f32 1.0, %v758_v35  ;;  %v777_v46 = vmul.f32 %v758_v35, %v2938_v48 }
 0x840   :  { %766 = vrot.lane.b32.xlu2 %v764_v40, %s2625_s4 }
 0x89a   :  { %v767_v41 = vpop.permute.xlu2 %766 }
 0x89b   :  { %v769_v42 = vadd.f32 %v767_v41, %v738_v24 }
 0x89d   :  { %2217 = vtanh.f32 %v769_v42  ;;  %v3088_v42 = vld [vmem:[%s3333_s2] sm:$0xff] }
 0x8a3   :  { %v2218_v43 = vpop.eup %2217 }
 0x8a4   :  { %773 = vrot.lane.b32.xlu1 %v2218_v43, %s2626_s29 }
 0x916   :  { %v774_v37 = vpop.permute.xlu1 %773 }
 0x917   :  { %v776_v47 = vmul.f32 %v774_v37, %v771_v45 }
 0x919   :  { %v3033_v57 = vadd.f32 %v777_v46, %v776_v47  ;;  %v3095_v46 = vld [vmem:[%s3333_s2 + $0x8] sm:$0xff] }
 0x91b   :  { %780 = vrot.lane.b32.xlu0 %v3033_v57, %s2626_s29 }
 0x923   :  { %805 = vrot.lane.b32.xlu0 %v600_v6, %s2626_s29 }
 0x92b   :  { %828 = vrot.lane.b32.xlu0 %v600_v6, %s2623_s8 }
 0x98d   :  { %v781_v8 = vpop.permute.xlu0 %780 }
 0x98e   :  { %2125 = vmatmul.msk.f32.vlgmr.msra.gmra.mxu3 %vm250_vm0, %v781_v8 }
 0x98f   :  { %1149 = vmatpush.msra.mxu3 %v2750_v1 }
 0x991   :  { %1150 = vmatpush.msra.mxu3 %v2756_v3 }
 0x993   :  { %1151 = vmatpush.msra.mxu3 %v2761_v5 }
 0x995   :  { %1152 = vmatpush.msra.mxu3 %v2767_v7  ;;  %v806_v10 = vpop.permute.xlu0 %805 }
 0x997   :  { %1153 = vmatpush.msra.mxu3 %v2773_v9 }
 0x999   :  { %1154 = vmatpush.msra.mxu3 %v2779_v11 }
 0x99b   :  { %1155 = vmatpush.msra.mxu3 %v2785_v13 }
 0x99d   :  { %1156 = vmatpush.msra.mxu3 %v2793_v15  ;;  %v829_v21 = vpop.permute.xlu0 %828 }
 0xa11   :  { %v801_v48 = vpop.f32.mrf.mxu3 }
 0xa12   :  { %v802_v4 = vadd.f32 %v801_v48, %v2970_v56 }
 0xa14   :  { %v808_v44 = vadd.f32 %v806_v10, %v802_v4 }
 0xa16   :  { %v2126_v1 = vmul.f32 -1.442695, %v808_v44 }
 0xa18   :  { %2219 = vpow2.f32 %v2126_v1 }
 0xa1e   :  { %v2220_v3 = vpop.eup %2219 }
 0xa1f   :  { %v812_v12 = vadd.f32 1.0, %v2220_v3 }
 0xa21   :  { %2221 = vrcp.f32 %v812_v12  ;;  %v824_v9 = vand.u32 2147483648, %v812_v12  ;;  %v822_v11 = vand.u32 2147483647, %v812_v12  ;;  %vm818_vm9 = vweird.f32 %v812_v12 }
 0xa23   :  { %v825_v15 = vor.u32 1.1754944e-38, %v824_v9  ;;  %vm823_vm11 = vcmp.eq.f32.partialorder %v822_v11, 8.507059e+37 }
 0xa27   :  { %v2222_v5 = vpop.eup %2221 }
 0xa28   :  { %v814_v7 = vmul.f32 %v2222_v5, %v812_v12  ;;  %vm819_vm8 = vweird.f32 %v2222_v5 }
 0xa29   :  { %vm820_vm10 = vmor %vm818_vm9, %vm819_vm8 }
 0xa2a   :  { %v815_v18 = vsub.f32 1.0, %v814_v7 }
 0xa2c   :  { %v816_v14 = vmul.f32 %v2222_v5, %v815_v18 }
 0xa2e   :  { %v817_v13 = vadd.f32 %v2222_v5, %v816_v14 }
 0xa30   :  { %v821_v16 = vsel %vm820_vm10, %v2222_v5, %v817_v13 }
 0xa31   :  { %v826_v61 = vsel %vm823_vm11, %v825_v15, %v821_v16 }
 0xa32   :  { %v831_v22 = vmul.f32 %v829_v21, %v826_v61  ;;  %v838_v20 = vsub.f32 1.0, %v826_v61  ;;  %v844_v29 = vmul.f32 %v826_v61, %v2977_v51 }
 0xa34   :  { %833 = vrot.lane.b32.xlu2 %v831_v22, %s2625_s4 }
 0xa8e   :  { %v834_v25 = vpop.permute.xlu2 %833 }
 0xa8f   :  { %v836_v26 = vadd.f32 %v834_v25, %v802_v4 }
 0xa91   :  { %2223 = vtanh.f32 %v836_v26 }
 0xa97   :  { %v2224_v27 = vpop.eup %2223 }
 0xa98   :  { %840 = vrot.lane.b32.xlu1 %v2224_v27, %s2626_s29 }
 0xb0a   :  { %v841_v24 = vpop.permute.xlu1 %840 }
 0xb0b   :  { %v843_v60 = vmul.f32 %v841_v24, %v838_v20 }
 0xb0d   :  { %v3054_v30 = vadd.f32 %v844_v29, %v843_v60 }
 0xb0f   :  { %v847_v62 = vsel %vm250_vm0, %v781_v8, %v3054_v30 }
 0xb10   :  { %2127 = vmatmul.msk.f32.vlgmr.msra.gmra.mxu0 %vm252_vm1, %v847_v62  ;;  %2128 = vmatmul.msk.f32.vlgmr.msra.gmra.mxu2 %vm252_vm1, %v847_v62 }
 0xb11   :  { %1376 = vmatpush.msra.mxu2 %v2948_v17  ;;  %1664 = vmatpush.msra.mxu0 %v2948_v17 }
 0xb13   :  { %1377 = vmatpush.msra.mxu2 %v2950_v53  ;;  %1665 = vmatpush.msra.mxu0 %v2950_v53 }
 0xb15   :  { %1378 = vmatpush.msra.mxu2 %v2953_v54  ;;  %1666 = vmatpush.msra.mxu0 %v2953_v54  ;;  %v3074_v54 = vld [vmem:[#allocation8] ss:$0 sm:$0xff] }
 0xb17   :  { %1379 = vmatpush.msra.mxu2 %v2956_v55  ;;  %1667 = vmatpush.msra.mxu0 %v2956_v55 }
 0xb8d   :  { %v868_v31 = vpop.f32.mrf.mxu0 }
 0xb8e   :  { %v894_v0 = vrot.slane %v868_v31, 1  ;;  %v895_v19 = vperm.slane %v868_v31, 0  ;;  %v3081_v40 = vadd.f32 %v868_v31, %v2942_v49 }
 0xb90   :  { %v896_v28 = vperm.slane %v894_v0, 0  ;;  %v899_v17 = vadd.f32 %v3068_v32, %v895_v19 }
 0xb92   :  { %v900_v53 = vadd.f32 %v3071_v34, %v896_v28  ;;  %2225 = vtanh.f32 %v899_v17 }
 0xb94   :  { %2227 = vtanh.f32 %v900_v53 }
 0xb98   :  { %v2226_v36 = vpop.eup %2225 }
 0xb99   :  { %v903_v63 = vmul.f32 %v3074_v54, %v2226_v36 }
 0xb9a   :  { %v2228_v55 = vpop.eup %2227 }
 0xb9b   :  { %v905_v38 = vsel %vm250_vm0, %v903_v63, 0.0  ;;  %v904_v39 = vmul.f32 %v3074_v54, %v2228_v55 }
 0xb9c   :  { %906 = vadd.xlane.f32.xlu0 %v905_v38 }
 0xb9d   :  { %v908_v35 = vsel %vm250_vm0, %v904_v39, 0.0 }
 0xb9e   :  { %909 = vadd.xlane.f32.xlu2 %v908_v35 }
 0xbb6   :  { %1095 = vrot.lane.b32.xlu2 %v3081_v40, %s2626_s29 }
 0xc0f   :  { %v907_v41 = vpop.xlane.xlu0 %906 }
 0xc10   :  { %v911_v43 = vadd.f32 %v3088_v42, %v907_v41 }
 0xc11   :  { %v910_v45 = vpop.xlane.xlu2 %909 }
 0xc12   :  { %v913_v37 = vsel %vm327_vm2, %v911_v43, -inf  ;;  %v912_v47 = vadd.f32 %v3095_v46, %v910_v45 }
 0xc13   :  { %v914_v6 = vrot.slane %v913_v37, 4 }
 0xc14   :  { %v920_v8 = vsel %vm327_vm2, %v912_v47, -inf }
 0xc15   :  { %v915_v48 = vmax.f32 %v913_v37, %v914_v6  ;;  %v921_v4 = vrot.slane %v920_v8, 4 }
 0xc17   :  { %v916_v10 = vrot.slane %v915_v48, 2  ;;  %v922_v44 = vmax.f32 %v920_v8, %v921_v4 }
 0xc19   :  { %v917_v1 = vmax.f32 %v915_v48, %v916_v10  ;;  %v923_v3 = vrot.slane %v922_v44, 2 }
 0xc1b   :  { %v918_v12 = vrot.slane %v917_v1, 1  ;;  %v924_v5 = vmax.f32 %v922_v44, %v923_v3 }
 0xc1d   :  { %v919_v7 = vmax.f32 %v917_v1, %v918_v12  ;;  %v925_v18 = vrot.slane %v924_v5, 1 }
 0xc1f   :  { %v927_v9 = vsub.f32 %v911_v43, %v919_v7  ;;  %v926_v14 = vmax.f32 %v924_v5, %v925_v18  ;;  %v888_v5 = vpop.f32.mrf.mxu2 }
 0xc20   :  { %v892_v7 = vadd.f32 %v888_v5, %v2857_v59 }
 0xc21   :  { %v929_v11 = vmul.f32 1.442695, %v927_v9  ;;  %v928_v13 = vsub.f32 %v912_v47, %v926_v14 }
 0xc23   :  { %2229 = vpow2.f32 %v929_v11  ;;  %v931_v15 = vmul.f32 1.442695, %v928_v13 }
 0xc25   :  { %2231 = vpow2.f32 %v931_v15 }
 0xc29   :  { %v2230_v16 = vpop.eup %2229 }
 0xc2a   :  { %v933_v21 = vsel %vm327_vm2, %v2230_v16, 0.0 }
 0xc2b   :  { %v2232_v61 = vpop.eup %2231  ;;  %v934_v22 = vrot.slane %v933_v21, 4 }
 0xc2c   :  { %v940_v25 = vsel %vm327_vm2, %v2232_v61, 0.0 }
 0xc2d   :  { %v935_v26 = vadd.f32 %v934_v22, %v933_v21  ;;  %v941_v27 = vrot.slane %v940_v25, 4 }
 0xc2f   :  { %v936_v20 = vrot.slane %v935_v26, 2  ;;  %v942_v24 = vadd.f32 %v941_v27, %v940_v25 }
 0xc31   :  { %v937_v29 = vadd.f32 %v936_v20, %v935_v26  ;;  %v943_v60 = vrot.slane %v942_v24, 2 }
 0xc33   :  { %v938_v62 = vrot.slane %v937_v29, 1  ;;  %v944_v31 = vadd.f32 %v943_v60, %v942_v24 }
 0xc35   :  { %v939_v0 = vadd.f32 %v938_v62, %v937_v29  ;;  %v945_v19 = vrot.slane %v944_v31, 1 }
 0xc37   :  { %2233 = vrcp.f32 %v939_v0  ;;  %v946_v28 = vadd.f32 %v945_v19, %v944_v31  ;;  %v958_v38 = vand.u32 2147483648, %v939_v0  ;;  %v956_v35 = vand.u32 2147483647, %v939_v0  ;;  %v3109_v31 = vld [vmem:[#allocation10 + $0x18] sm:$0xff]  ;;  %v3118_v19 = vld [vmem:[#allocation10] sm:$0xff] }
 0xc38   :  { %vm952_vm14 = vweird.f32 %v939_v0 }
 0xc39   :  { %2235 = vrcp.f32 %v946_v28  ;;  %v959_v37 = vor.u32 1.1754944e-38, %v958_v38  ;;  %vm957_vm3 = vcmp.eq.f32.partialorder %v956_v35, 8.507059e+37  ;;  %v973_v48 = vand.u32 2147483648, %v946_v28 }
 0xc3a   :  { %vm967_vm5 = vweird.f32 %v946_v28  ;;  %v971_v10 = vand.u32 2147483647, %v946_v28 }
 0xc3b   :  { %v974_v1 = vor.u32 1.1754944e-38, %v973_v48 }
 0xc3c   :  { %vm972_vm7 = vcmp.eq.f32.partialorder %v971_v10, 8.507059e+37 }
 0xc3d   :  { %v2234_v17 = vpop.eup %2233 }
 0xc3e   :  { %v948_v53 = vmul.f32 %v2234_v17, %v939_v0  ;;  %vm953_vm13 = vweird.f32 %v2234_v17  ;;  %v3115_v0 = vld [vmem:[#allocation10 + $0x8] sm:$0xff] }
 0xc3f   :  { %v2236_v36 = vpop.eup %2235  ;;  %vm954_vm15 = vmor %vm952_vm14, %vm953_vm13 }
 0xc40   :  { %v949_v63 = vsub.f32 1.0, %v948_v53  ;;  %v963_v55 = vmul.f32 %v2236_v36, %v946_v28  ;;  %vm968_vm4 = vweird.f32 %v2236_v36  ;;  %v1006_v28 = vrot.slane %v2928_v52, 4 }
 0xc41   :  { %vm969_vm6 = vmor %vm967_vm5, %vm968_vm4 }
 0xc42   :  { %v950_v39 = vmul.f32 %v2234_v17, %v949_v63  ;;  %v964_v41 = vsub.f32 1.0, %v963_v55 }
 0xc44   :  { %v951_v43 = vadd.f32 %v2234_v17, %v950_v39  ;;  %v965_v45 = vmul.f32 %v2236_v36, %v964_v41 }
 0xc46   :  { %v955_v47 = vsel %vm954_vm15, %v2234_v17, %v951_v43  ;;  %v966_v6 = vadd.f32 %v2236_v36, %v965_v45 }
 0xc47   :  { %v960_v8 = vsel %vm957_vm3, %v959_v37, %v955_v47 }
 0xc48   :  { %v961_v4 = vmul.f32 %v2230_v16, %v960_v8  ;;  %v970_v44 = vsel %vm969_vm6, %v2236_v36, %v966_v6 }
 0xc49   :  { %v975_v3 = vsel %vm972_vm7, %v974_v1, %v970_v44 }
 0xc4a   :  { %979 = vperm.xlu1 %2172, %v961_v4   ;;  %v976_v12 = vmul.f32 %v2232_v61, %v975_v3 }
 0xc52   :  { %984 = vperm.xlu1 %2172, %v976_v12  }
 0xc5a   :  { %1051 = vrot.lane.b32.xlu1 %v892_v7, %s2625_s4 }
 0xcbc   :  { %v980_v18 = vpop.permute.xlu1 %979 }
 0xcbd   :  { %v987_v9 = vmul.f32 %v980_v18, %v2905_v33 }
 0xcbf   :  { %v989_v14 = vsel %vm250_vm0, %v987_v9, 0.0 }
 0xcc0   :  { %v990_v11 = vrot.slane %v989_v14, 4 }
 0xcc2   :  { %v991_v13 = vadd.f32 %v990_v11, %v989_v14  ;;  %v2330_v11 = vld [vmem:[#allocation7 + $0x78] sm:$0xff] }
 0xcc4   :  { %v985_v15 = vpop.permute.xlu1 %984  ;;  %v992_v21 = vrot.slane %v991_v13, 2 }
 0xcc5   :  { %v988_v16 = vmul.f32 %v985_v15, %v2883_v23  ;;  %v3112_v23 = vld [vmem:[#allocation10 + $0x10] sm:$0xff] }
 0xcc6   :  { %v993_v25 = vadd.f32 %v992_v21, %v991_v13  ;;  %v2331_v13 = vld [vmem:[#allocation7 + $0x68] sm:$0xff]  ;;  %v2332_v15 = vld [vmem:[#allocation7 + $0x58] sm:$0xff] }
 0xcc7   :  { %v996_v22 = vsel %vm250_vm0, %v988_v16, 0.0  ;;  %v2334_v16 = vld [vmem:[#allocation7 + $0x38] sm:$0xff] }
 0xcc8   :  { %v997_v61 = vrot.slane %v996_v22, 4  ;;  %v994_v20 = vrot.slane %v993_v25, 1  ;;  %v2336_v21 = vld [vmem:[#allocation7 + $0x18] sm:$0xff] }
 0xcca   :  { %v998_v26 = vadd.f32 %v997_v61, %v996_v22  ;;  %v995_v60 = vadd.f32 %v994_v20, %v993_v25  ;;  %v3132_v22 = vld [vmem:[#allocation7 + $0x8] sm:$0xff] }
 0xccc   :  { %v999_v27 = vrot.slane %v998_v26, 2  ;;  %v1052_v48 = vpop.permute.xlu1 %1051 }
 0xcce   :  { %v1000_v24 = vadd.f32 %v999_v27, %v998_v26  ;;  %v1096_v26 = vpop.permute.xlu2 %1095 }
 0xcd0   :  { %v1001_v29 = vrot.slane %v1000_v24, 1 }
 0xcd2   :  { %v1002_v62 = vadd.f32 %v1001_v29, %v1000_v24 }
 0xcd4   :  { %v1005_v33 = vsel %vm420_vm12, %v1002_v62, %v995_v60 }
 0xcd5   :  { %2129 = vmatmul.msk.f32.vlgmr.msrb.gmra.mxu3 %vm250_vm0, %v1005_v33 }
 0xcd6   :  { %1600 = vmatpush.msrb.mxu3 %v3109_v31 }
 0xcd8   :  { %1601 = vmatpush.msrb.mxu3 %v3112_v23 }
 0xcda   :  { %1602 = vmatpush.msrb.mxu3 %v3115_v0 }
 0xcdc   :  { %1603 = vmatpush.msrb.mxu3 %v3118_v19 }
 0xd58   :  { %v1027_v17 = vpop.f32.mrf.mxu3 }
 0xd59   :  { %v1028_v53 = vadd.f32 %v1027_v17, %v1006_v28 }
 0xd5b   :  { %v1030_v36 = vadd.f32 %v1028_v53, %v892_v7 }
 0xd5d   :  { %v2130_v63 = vmul.f32 -1.442695, %v1030_v36 }
 0xd5f   :  { %2237 = vpow2.f32 %v2130_v63 }
 0xd65   :  { %v2238_v55 = vpop.eup %2237 }
 0xd66   :  { %v1034_v38 = vadd.f32 1.0, %v2238_v55 }
 0xd68   :  { %2239 = vrcp.f32 %v1034_v38  ;;  %v1046_v43 = vand.u32 2147483648, %v1034_v38  ;;  %v1044_v37 = vand.u32 2147483647, %v1034_v38  ;;  %vm1040_vm9 = vweird.f32 %v1034_v38 }
 0xd6a   :  { %v1047_v6 = vor.u32 1.1754944e-38, %v1046_v43  ;;  %vm1045_vm11 = vcmp.eq.f32.partialorder %v1044_v37, 8.507059e+37 }
 0xd6e   :  { %v2240_v39 = vpop.eup %2239 }
 0xd6f   :  { %v1036_v35 = vmul.f32 %v2240_v39, %v1034_v38  ;;  %vm1041_vm8 = vweird.f32 %v2240_v39 }
 0xd70   :  { %vm1042_vm10 = vmor %vm1040_vm9, %vm1041_vm8 }
 0xd71   :  { %v1037_v41 = vsub.f32 1.0, %v1036_v35 }
 0xd73   :  { %v1038_v45 = vmul.f32 %v2240_v39, %v1037_v41 }
 0xd75   :  { %v1039_v47 = vadd.f32 %v2240_v39, %v1038_v45 }
 0xd77   :  { %v1043_v8 = vsel %vm1042_vm10, %v2240_v39, %v1039_v47 }
 0xd78   :  { %v1048_v4 = vsel %vm1045_vm11, %v1047_v6, %v1043_v8 }
 0xd79   :  { %v1054_v10 = vmul.f32 %v1052_v48, %v1048_v4  ;;  %v1061_v12 = vsub.f32 1.0, %v1048_v4  ;;  %v1067_v7 = vmul.f32 %v1048_v4, %v3033_v57  ;;  %v2335_v57 = vld [vmem:[#allocation7 + $0x28] sm:$0xff] }
 0xd7b   :  { %1056 = vrot.lane.b32.xlu1 %v1054_v10, %s2625_s4  ;;  %v2338_v10 = vld [vmem:[#allocation7 + $0x70] sm:$0xff] }
 0xded   :  { %v1057_v44 = vpop.permute.xlu1 %1056 }
 0xdee   :  { %v1059_v1 = vadd.f32 %v1057_v44, %v1028_v53  ;;  %v2339_v44 = vld [vmem:[#allocation7 + $0x60] sm:$0xff] }
 0xdf0   :  { %2241 = vtanh.f32 %v1059_v1  ;;  %v2340_v1 = vld [vmem:[#allocation7 + $0x50] sm:$0xff] }
 0xdf6   :  { %v2242_v3 = vpop.eup %2241 }
 0xdf7   :  { %1063 = vrot.lane.b32.xlu1 %v2242_v3, %s2626_s29  ;;  %v2341_v3 = vld [vmem:[#allocation7 + $0x40] sm:$0xff] }
 0xdff   :  { %1118 = vrot.lane.b32.xlu1 %v3081_v40, %s2623_s8  ;;  %v2333_v40 = vld [vmem:[#allocation7 + $0x48] sm:$0xff] }
 0xe69   :  { %v1064_v5 = vpop.permute.xlu1 %1063 }
 0xe6a   :  { %v1066_v18 = vmul.f32 %v1064_v5, %v1061_v12  ;;  %v2342_v12 = vld [vmem:[#allocation7 + $0x30] sm:$0xff]  ;;  %v2343_v5 = vld [vmem:[#allocation7 + $0x20] sm:$0xff] }
 0xe6c   :  { %v3127_v9 = vadd.f32 %v1067_v7, %v1066_v18  ;;  %v2344_v7 = vld [vmem:[#allocation7 + $0x10] sm:$0xff]  ;;  %v2345_v18 = vld [vmem:[#allocation7] sm:$0xff] }
 0xe6e   :  { %1070 = vrot.lane.b32.xlu0 %v3127_v9, %s2626_s29 }
 0xe71   :  { %v1119_v38 = vpop.permute.xlu1 %1118 }
 0xee0   :  { %v1071_v14 = vpop.permute.xlu0 %1070 }
 0xee1   :  { %2131 = vmatmul.msk.f32.vlgmr.msrb.gmra.mxu2 %vm250_vm0, %v1071_v14 }
 0xee2   :  { %1459 = vmatpush.msrb.mxu2 %v2330_v11 }
 0xee4   :  { %1460 = vmatpush.msrb.mxu2 %v2331_v13 }
 0xee6   :  { %1461 = vmatpush.msrb.mxu2 %v2332_v15 }
 0xee8   :  { %1462 = vmatpush.msrb.mxu2 %v2333_v40 }
 0xeea   :  { %1463 = vmatpush.msrb.mxu2 %v2334_v16 }
 0xeec   :  { %1464 = vmatpush.msrb.mxu2 %v2335_v57 }
 0xeee   :  { %1465 = vmatpush.msrb.mxu2 %v2336_v21 }
 0xef0   :  { %1466 = vmatpush.msrb.mxu2 %v3132_v22 }
 0xf64   :  { %v1091_v61 = vpop.f32.mrf.mxu2 }
 0xf65   :  { %v1092_v25 = vadd.f32 %v1091_v61, %v2970_v56 }
 0xf67   :  { %v1098_v27 = vadd.f32 %v1096_v26, %v1092_v25 }
 0xf69   :  { %v2132_v20 = vmul.f32 -1.442695, %v1098_v27 }
 0xf6b   :  { %2243 = vpow2.f32 %v2132_v20 }
 0xf71   :  { %v2244_v24 = vpop.eup %2243 }
 0xf72   :  { %v1102_v29 = vadd.f32 1.0, %v2244_v24 }
 0xf74   :  { %2245 = vrcp.f32 %v1102_v29  ;;  %v1114_v28 = vand.u32 2147483648, %v1102_v29  ;;  %v1112_v53 = vand.u32 2147483647, %v1102_v29  ;;  %vm1108_vm14 = vweird.f32 %v1102_v29 }
 0xf76   :  { %v1115_v63 = vor.u32 1.1754944e-38, %v1114_v28  ;;  %vm1113_vm3 = vcmp.eq.f32.partialorder %v1112_v53, 8.507059e+37 }
 0xf7a   :  { %v2246_v60 = vpop.eup %2245 }
 0xf7b   :  { %v1104_v62 = vmul.f32 %v2246_v60, %v1102_v29  ;;  %vm1109_vm13 = vweird.f32 %v2246_v60 }
 0xf7c   :  { %vm1110_vm15 = vmor %vm1108_vm14, %vm1109_vm13 }
 0xf7d   :  { %v1105_v33 = vsub.f32 1.0, %v1104_v62 }
 0xf7f   :  { %v1106_v17 = vmul.f32 %v2246_v60, %v1105_v33 }
 0xf81   :  { %v1107_v36 = vadd.f32 %v2246_v60, %v1106_v17 }
 0xf83   :  { %v1111_v55 = vsel %vm1110_vm15, %v2246_v60, %v1107_v36 }
 0xf84   :  { %v1116_v39 = vsel %vm1113_vm3, %v1115_v63, %v1111_v55 }
 0xf85   :  { %v1121_v35 = vmul.f32 %v1119_v38, %v1116_v39  ;;  %v1128_v37 = vsub.f32 1.0, %v1116_v39  ;;  %v1134_v6 = vmul.f32 %v1116_v39, %v3054_v30 }
 0xf87   :  { %1123 = vrot.lane.b32.xlu1 %v1121_v35, %s2625_s4 }
 0xff9   :  { %v1124_v41 = vpop.permute.xlu1 %1123 }
 0xffa   :  { %v1126_v43 = vadd.f32 %v1124_v41, %v1092_v25 }
 0xffc   :  { %2247 = vtanh.f32 %v1126_v43 }
0x1002   :  { %v2248_v45 = vpop.eup %2247 }
0x1003   :  { %1130 = vrot.lane.b32.xlu0 %v2248_v45, %s2626_s29 }
0x1075   :  { %v1131_v47 = vpop.permute.xlu0 %1130 }
0x1076   :  { %v1133_v8 = vmul.f32 %v1131_v47, %v1128_v37 }
0x1078   :  { %v3139_v48 = vadd.f32 %v1134_v6, %v1133_v8 }
0x107a   :  { %v1137_v4 = vsel %vm250_vm0, %v1071_v14, %v3139_v48 }
0x107b   :  { %2133 = vmatmul.msk.f32.vlgmr.msra.gmra.mxu3 %vm252_vm1, %v1137_v4  ;;  %2134 = vmatmul.msk.f32.vlgmr.msrb.gmra.mxu0 %vm252_vm1, %v1137_v4 }
0x107c   :  { %1727 = vmatpush.msra.mxu3 %v2338_v10  ;;  %1747 = vmatpush.msrb.mxu0 %v2330_v11 }
0x107e   :  { %1728 = vmatpush.msra.mxu3 %v2339_v44  ;;  %1748 = vmatpush.msrb.mxu0 %v2331_v13 }
0x1080   :  { %1729 = vmatpush.msra.mxu3 %v2340_v1  ;;  %1749 = vmatpush.msrb.mxu0 %v2332_v15 }
0x1082   :  { %1730 = vmatpush.msra.mxu3 %v2341_v3  ;;  %1750 = vmatpush.msrb.mxu0 %v2333_v40 }
0x1084   :  { %1731 = vmatpush.msra.mxu3 %v2342_v12  ;;  %1751 = vmatpush.msrb.mxu0 %v2334_v16 }
0x1086   :  { %1732 = vmatpush.msra.mxu3 %v2343_v5  ;;  %1752 = vmatpush.msrb.mxu0 %v2335_v57 }
0x1088   :  { %1733 = vmatpush.msra.mxu3 %v2344_v7  ;;  %1753 = vmatpush.msrb.mxu0 %v2336_v21 }
0x108a   :  { %1734 = vmatpush.msra.mxu3 %v2345_v18  ;;  %1754 = vmatpush.msrb.mxu0 %v3132_v22 }
0x10fe   :  { %v1158_v14 = vpop.f32.mrf.mxu3 }
0x10ff   :  { %v1184_v11 = vrot.slane %v1158_v14, 1  ;;  %v1185_v13 = vperm.slane %v1158_v14, 0  ;;  %v3153_v27 = vadd.f32 %v1158_v14, %v2942_v49 }
0x1101   :  { %v1186_v15 = vperm.slane %v1184_v11, 0  ;;  %v1189_v61 = vadd.f32 %v3068_v32, %v1185_v13 }
0x1103   :  { %v1190_v40 = vadd.f32 %v3071_v34, %v1186_v15  ;;  %2249 = vtanh.f32 %v1189_v61 }
0x1105   :  { %2251 = vtanh.f32 %v1190_v40 }
0x1109   :  { %v2250_v16 = vpop.eup %2249 }
0x110a   :  { %v1193_v57 = vmul.f32 %v3074_v54, %v2250_v16 }
0x110b   :  { %v2252_v25 = vpop.eup %2251 }
0x110c   :  { %v1195_v21 = vsel %vm250_vm0, %v1193_v57, 0.0  ;;  %v1194_v26 = vmul.f32 %v3074_v54, %v2252_v25 }
0x110d   :  { %1196 = vadd.xlane.f32.xlu1 %v1195_v21 }
0x110e   :  { %v1198_v22 = vsel %vm250_vm0, %v1194_v26, 0.0 }
0x110f   :  { %1199 = vadd.xlane.f32.xlu2 %v1198_v22 }
0x1127   :  { %1385 = vrot.lane.b32.xlu2 %v3153_v27, %s2626_s29 }
0x1180   :  { %v1197_v20 = vpop.xlane.xlu1 %1196 }
0x1181   :  { %v1201_v24 = vadd.f32 %v3088_v42, %v1197_v20 }
0x1182   :  { %v1200_v29 = vpop.xlane.xlu2 %1199 }
0x1183   :  { %v1203_v60 = vsel %vm327_vm2, %v1201_v24, -inf  ;;  %v1202_v62 = vadd.f32 %v3095_v46, %v1200_v29 }
0x1184   :  { %v1204_v33 = vrot.slane %v1203_v60, 4 }
0x1185   :  { %v1210_v28 = vsel %vm327_vm2, %v1202_v62, -inf }
0x1186   :  { %v1205_v17 = vmax.f32 %v1203_v60, %v1204_v33  ;;  %v1211_v53 = vrot.slane %v1210_v28, 4 }
0x1188   :  { %v1206_v36 = vrot.slane %v1205_v17, 2  ;;  %v1212_v63 = vmax.f32 %v1210_v28, %v1211_v53 }
0x118a   :  { %v1207_v55 = vmax.f32 %v1205_v17, %v1206_v36  ;;  %v1213_v38 = vrot.slane %v1212_v63, 2 }
0x118c   :  { %v1208_v39 = vrot.slane %v1207_v55, 1  ;;  %v1214_v35 = vmax.f32 %v1212_v63, %v1213_v38 }
0x118e   :  { %v1209_v41 = vmax.f32 %v1207_v55, %v1208_v39  ;;  %v1215_v43 = vrot.slane %v1214_v35, 1 }
0x1190   :  { %v1217_v45 = vsub.f32 %v1201_v24, %v1209_v41  ;;  %v1216_v37 = vmax.f32 %v1214_v35, %v1215_v43 }
0x1192   :  { %v1219_v47 = vmul.f32 1.442695, %v1217_v45  ;;  %v1218_v6 = vsub.f32 %v1202_v62, %v1216_v37  ;;  %v1178_v45 = vpop.f32.mrf.mxu0 }
0x1193   :  { %v1182_v37 = vadd.f32 %v1178_v45, %v2857_v59 }
0x1194   :  { %2253 = vpow2.f32 %v1219_v47  ;;  %v1221_v8 = vmul.f32 1.442695, %v1218_v6  ;;  %v3168_v6 = vld [vmem:[%s3331_s0] sm:$0xff] }
0x1196   :  { %2255 = vpow2.f32 %v1221_v8 }
0x119a   :  { %v2254_v4 = vpop.eup %2253 }
0x119b   :  { %v1223_v10 = vsel %vm327_vm2, %v2254_v4, 0.0 }
0x119c   :  { %v2256_v44 = vpop.eup %2255  ;;  %v1224_v1 = vrot.slane %v1223_v10, 4 }
0x119d   :  { %v1230_v3 = vsel %vm327_vm2, %v2256_v44, 0.0 }
0x119e   :  { %v1225_v12 = vadd.f32 %v1224_v1, %v1223_v10  ;;  %v1231_v5 = vrot.slane %v1230_v3, 4 }
0x11a0   :  { %v1226_v7 = vrot.slane %v1225_v12, 2  ;;  %v1232_v18 = vadd.f32 %v1231_v5, %v1230_v3 }
0x11a2   :  { %v1227_v14 = vadd.f32 %v1226_v7, %v1225_v12  ;;  %v1233_v11 = vrot.slane %v1232_v18, 2 }
0x11a4   :  { %v1228_v13 = vrot.slane %v1227_v14, 1  ;;  %v1234_v15 = vadd.f32 %v1233_v11, %v1232_v18 }
0x11a6   :  { %v1229_v61 = vadd.f32 %v1228_v13, %v1227_v14  ;;  %v1235_v40 = vrot.slane %v1234_v15, 1 }
0x11a8   :  { %2257 = vrcp.f32 %v1229_v61  ;;  %v1236_v16 = vadd.f32 %v1235_v40, %v1234_v15  ;;  %v1248_v20 = vand.u32 2147483648, %v1229_v61  ;;  %v1246_v29 = vand.u32 2147483647, %v1229_v61 }
0x11a9   :  { %vm1242_vm5 = vweird.f32 %v1229_v61 }
0x11aa   :  { %2259 = vrcp.f32 %v1236_v16  ;;  %v1249_v28 = vor.u32 1.1754944e-38, %v1248_v20  ;;  %vm1247_vm7 = vcmp.eq.f32.partialorder %v1246_v29, 8.507059e+37  ;;  %v1263_v63 = vand.u32 2147483648, %v1236_v16 }
0x11ab   :  { %vm1257_vm9 = vweird.f32 %v1236_v16  ;;  %v1261_v38 = vand.u32 2147483647, %v1236_v16 }
0x11ac   :  { %v1264_v35 = vor.u32 1.1754944e-38, %v1263_v63 }
0x11ad   :  { %vm1262_vm11 = vcmp.eq.f32.partialorder %v1261_v38, 8.507059e+37 }
0x11ae   :  { %v2258_v57 = vpop.eup %2257 }
0x11af   :  { %v1238_v25 = vmul.f32 %v2258_v57, %v1229_v61  ;;  %vm1243_vm4 = vweird.f32 %v2258_v57 }
0x11b0   :  { %v2260_v21 = vpop.eup %2259  ;;  %vm1244_vm6 = vmor %vm1242_vm5, %vm1243_vm4 }
0x11b1   :  { %v1239_v26 = vsub.f32 1.0, %v1238_v25  ;;  %v1253_v22 = vmul.f32 %v2260_v21, %v1236_v16  ;;  %vm1258_vm8 = vweird.f32 %v2260_v21 }
0x11b2   :  { %vm1259_vm10 = vmor %vm1257_vm9, %vm1258_vm8 }
0x11b3   :  { %v1240_v24 = vmul.f32 %v2258_v57, %v1239_v26  ;;  %v1254_v60 = vsub.f32 1.0, %v1253_v22 }
0x11b5   :  { %v1241_v62 = vadd.f32 %v2258_v57, %v1240_v24  ;;  %v1255_v33 = vmul.f32 %v2260_v21, %v1254_v60 }
0x11b7   :  { %v1245_v17 = vsel %vm1244_vm6, %v2258_v57, %v1241_v62  ;;  %v1256_v53 = vadd.f32 %v2260_v21, %v1255_v33 }
0x11b8   :  { %v1250_v36 = vsel %vm1247_vm7, %v1249_v28, %v1245_v17 }
0x11b9   :  { %v1251_v55 = vmul.f32 %v2254_v4, %v1250_v36  ;;  %v1260_v39 = vsel %vm1259_vm10, %v2260_v21, %v1256_v53  ;;  %v1296_v21 = vrot.slane %v2928_v52, 6 }
0x11ba   :  { %v1265_v41 = vsel %vm1262_vm11, %v1264_v35, %v1260_v39 }
0x11bb   :  { %1269 = vperm.xlu0 %2174, %v1251_v55   ;;  %v1266_v43 = vmul.f32 %v2256_v44, %v1265_v41  ;;  %v3175_v44 = vld [vmem:[%s3331_s0 + $0x8] sm:$0xff] }
0x11c3   :  { %1274 = vperm.xlu0 %2174, %v1266_v43  }
0x11cb   :  { %1341 = vrot.lane.b32.xlu0 %v1182_v37, %s2625_s4 }
0x122d   :  { %v1270_v47 = vpop.permute.xlu0 %1269 }
0x122e   :  { %v1277_v8 = vmul.f32 %v3168_v6, %v1270_v47 }
0x1230   :  { %v1279_v4 = vsel %vm250_vm0, %v1277_v8, 0.0  ;;  %v2348_v8 = vld [vmem:[#allocation13 + $0x18] sm:$0xff] }
0x1231   :  { %v1280_v10 = vrot.slane %v1279_v4, 4 }
0x1233   :  { %v1281_v1 = vadd.f32 %v1280_v10, %v1279_v4  ;;  %v2349_v4 = vld [vmem:[#allocation13 + $0x10] sm:$0xff]  ;;  %v2350_v10 = vld [vmem:[#allocation13 + $0x8] sm:$0xff] }
0x1235   :  { %v1275_v3 = vpop.permute.xlu0 %1274  ;;  %v1282_v5 = vrot.slane %v1281_v1, 2 }
0x1236   :  { %v1278_v12 = vmul.f32 %v3175_v44, %v1275_v3  ;;  %v1386_v3 = vpop.permute.xlu2 %1385 }
0x1237   :  { %v1283_v14 = vadd.f32 %v1282_v5, %v1281_v1 }
0x1238   :  { %v1286_v7 = vsel %vm250_vm0, %v1278_v12, 0.0 }
0x1239   :  { %v1287_v18 = vrot.slane %v1286_v7, 4  ;;  %v1284_v15 = vrot.slane %v1283_v14, 1 }
0x123b   :  { %v1288_v11 = vadd.f32 %v1287_v18, %v1286_v7  ;;  %v1285_v16 = vadd.f32 %v1284_v15, %v1283_v14 }
0x123d   :  { %v1289_v13 = vrot.slane %v1288_v11, 2  ;;  %v1342_v53 = vpop.permute.xlu0 %1341 }
0x123f   :  { %v1290_v61 = vadd.f32 %v1289_v13, %v1288_v11 }
0x1241   :  { %v1291_v40 = vrot.slane %v1290_v61, 1 }
0x1243   :  { %v1292_v57 = vadd.f32 %v1291_v40, %v1290_v61 }
0x1245   :  { %v1295_v25 = vsel %vm420_vm12, %v1292_v57, %v1285_v16 }
0x1246   :  { %2135 = vmatmul.msk.f32.vlgmr.msra.gmra.mxu1 %vm250_vm0, %v1295_v25 }
0x1247   :  { %1891 = vmatpush.msra.mxu1 %v3109_v31 }
0x1249   :  { %1892 = vmatpush.msra.mxu1 %v3112_v23 }
0x124b   :  { %1893 = vmatpush.msra.mxu1 %v3115_v0 }
0x124d   :  { %1894 = vmatpush.msra.mxu1 %v3118_v19 }
0x12c3   :  { %v1317_v26 = vpop.f32.mrf.mxu1 }
0x12c4   :  { %v1318_v22 = vadd.f32 %v1317_v26, %v1296_v21 }
0x12c6   :  { %v1320_v20 = vadd.f32 %v1318_v22, %v1182_v37 }
0x12c8   :  { %v2136_v24 = vmul.f32 -1.442695, %v1320_v20 }
0x12ca   :  { %2261 = vpow2.f32 %v2136_v24 }
0x12d0   :  { %v2262_v29 = vpop.eup %2261 }
0x12d1   :  { %v1324_v60 = vadd.f32 1.0, %v2262_v29 }
0x12d3   :  { %2263 = vrcp.f32 %v1324_v60  ;;  %v1336_v31 = vand.u32 2147483648, %v1324_v60  ;;  %v1334_v23 = vand.u32 2147483647, %v1324_v60  ;;  %vm1330_vm14 = vweird.f32 %v1324_v60 }
0x12d5   :  { %v1337_v19 = vor.u32 1.1754944e-38, %v1336_v31  ;;  %vm1335_vm3 = vcmp.eq.f32.partialorder %v1334_v23, 8.507059e+37 }
0x12d9   :  { %v2264_v62 = vpop.eup %2263 }
0x12da   :  { %v1326_v33 = vmul.f32 %v2264_v62, %v1324_v60  ;;  %vm1331_vm13 = vweird.f32 %v2264_v62 }
0x12db   :  { %vm1332_vm15 = vmor %vm1330_vm14, %vm1331_vm13 }
0x12dc   :  { %v1327_v28 = vsub.f32 1.0, %v1326_v33 }
0x12de   :  { %v1328_v17 = vmul.f32 %v2264_v62, %v1327_v28 }
0x12e0   :  { %v1329_v0 = vadd.f32 %v2264_v62, %v1328_v17 }
0x12e2   :  { %v1333_v52 = vsel %vm1332_vm15, %v2264_v62, %v1329_v0 }
0x12e3   :  { %v1338_v36 = vsel %vm1335_vm3, %v1337_v19, %v1333_v52 }
0x12e4   :  { %v1344_v63 = vmul.f32 %v1342_v53, %v1338_v36  ;;  %v1351_v35 = vsub.f32 1.0, %v1338_v36  ;;  %v1357_v43 = vmul.f32 %v1338_v36, %v3127_v9 }
0x12e6   :  { %1346 = vrot.lane.b32.xlu0 %v1344_v63, %s2625_s4 }
0x1358   :  { %v1347_v55 = vpop.permute.xlu0 %1346 }
0x1359   :  { %v1349_v38 = vadd.f32 %v1347_v55, %v1318_v22 }
0x135b   :  { %2265 = vtanh.f32 %v1349_v38 }
0x1361   :  { %v2266_v39 = vpop.eup %2265 }
0x1362   :  { %1353 = vrot.lane.b32.xlu0 %v2266_v39, %s2626_s29 }
0x136a   :  { %1408 = vrot.lane.b32.xlu0 %v3153_v27, %s2623_s8  ;;  %v2351_v27 = vld [vmem:[#allocation13] sm:$0xff] }
0x13d4   :  { %v1354_v41 = vpop.permute.xlu0 %1353 }
0x13d5   :  { %v1356_v45 = vmul.f32 %v1354_v41, %v1351_v35 }
0x13d7   :  { %v3191_v37 = vadd.f32 %v1357_v43, %v1356_v45 }
0x13d9   :  { %1360 = vrot.lane.b32.xlu1 %v3191_v37, %s2626_s29 }
0x13dc   :  { %v1409_v21 = vpop.permute.xlu0 %1408 }
0x144b   :  { %v1361_v47 = vpop.permute.xlu1 %1360 }
0x144c   :  { %2137 = vmatmul.msk.f32.vlgmr.msra.gmra.mxu2 %vm250_vm0, %v1361_v47 }
0x144d   :  { %1955 = vmatpush.msra.mxu2 %v2348_v8 }
0x144f   :  { %1956 = vmatpush.msra.mxu2 %v2349_v4 }
0x1451   :  { %1957 = vmatpush.msra.mxu2 %v2350_v10 }
0x1453   :  { %1958 = vmatpush.msra.mxu2 %v2351_v27 }
0x14cf   :  { %v1381_v1 = vpop.f32.mrf.mxu2 }
0x14d0   :  { %v1382_v9 = vadd.f32 %v1381_v1, %v2970_v56 }
0x14d2   :  { %v1388_v12 = vadd.f32 %v1386_v3, %v1382_v9 }
0x14d4   :  { %v2138_v5 = vmul.f32 -1.442695, %v1388_v12 }
0x14d6   :  { %2267 = vpow2.f32 %v2138_v5 }
0x14dc   :  { %v2268_v7 = vpop.eup %2267 }
0x14dd   :  { %v1392_v18 = vadd.f32 1.0, %v2268_v7 }
0x14df   :  { %2269 = vrcp.f32 %v1392_v18  ;;  %v1404_v15 = vand.u32 2147483648, %v1392_v18  ;;  %v1402_v40 = vand.u32 2147483647, %v1392_v18  ;;  %vm1398_vm5 = vweird.f32 %v1392_v18 }
0x14e1   :  { %v1405_v57 = vor.u32 1.1754944e-38, %v1404_v15  ;;  %vm1403_vm7 = vcmp.eq.f32.partialorder %v1402_v40, 8.507059e+37 }
0x14e5   :  { %v2270_v14 = vpop.eup %2269 }
0x14e6   :  { %v1394_v11 = vmul.f32 %v2270_v14, %v1392_v18  ;;  %vm1399_vm4 = vweird.f32 %v2270_v14 }
0x14e7   :  { %vm1400_vm6 = vmor %vm1398_vm5, %vm1399_vm4 }
0x14e8   :  { %v1395_v13 = vsub.f32 1.0, %v1394_v11 }
0x14ea   :  { %v1396_v61 = vmul.f32 %v2270_v14, %v1395_v13 }
0x14ec   :  { %v1397_v16 = vadd.f32 %v2270_v14, %v1396_v61 }
0x14ee   :  { %v1401_v25 = vsel %vm1400_vm6, %v2270_v14, %v1397_v16 }
0x14ef   :  { %v1406_v26 = vsel %vm1403_vm7, %v1405_v57, %v1401_v25 }
0x14f0   :  { %v1411_v22 = vmul.f32 %v1409_v21, %v1406_v26  ;;  %v1418_v60 = vsub.f32 1.0, %v1406_v26  ;;  %v1424_v33 = vmul.f32 %v1406_v26, %v3139_v48 }
0x14f2   :  { %1413 = vrot.lane.b32.xlu0 %v1411_v22, %s2625_s4 }
0x1564   :  { %v1414_v20 = vpop.permute.xlu0 %1413 }
0x1565   :  { %v1416_v24 = vadd.f32 %v1414_v20, %v1382_v9 }
0x1567   :  { %2271 = vtanh.f32 %v1416_v24 }
0x156d   :  { %v2272_v29 = vpop.eup %2271 }
0x156e   :  { %1420 = vrot.lane.b32.xlu0 %v2272_v29, %s2626_s29 }
0x15e0   :  { %v1421_v62 = vpop.permute.xlu0 %1420 }
0x15e1   :  { %v1423_v28 = vmul.f32 %v1421_v62, %v1418_v60 }
0x15e3   :  { %v3200_v31 = vadd.f32 %v1424_v33, %v1423_v28 }
0x15e5   :  { %v1427_v17 = vsel %vm250_vm0, %v1361_v47, %v3200_v31 }
0x15e6   :  { %2139 = vmatmul.msk.f32.vlgmr.msrb.gmra.mxu1 %vm252_vm1, %v1427_v17  ;;  %2140 = vmatmul.msk.f32.vlgmr.msrb.gmra.mxu2 %vm252_vm1, %v1427_v17 }
0x1663   :  { %v1448_v23 = vpop.f32.mrf.mxu1 }
0x1664   :  { %v1474_v0 = vrot.slane %v1448_v23, 1  ;;  %v1475_v19 = vperm.slane %v1448_v23, 0  ;;  %v3213_v43 = vadd.f32 %v1448_v23, %v2942_v49 }
0x1666   :  { %v1476_v52 = vperm.slane %v1474_v0, 0  ;;  %v1479_v53 = vadd.f32 %v3068_v32, %v1475_v19 }
0x1668   :  { %v1480_v36 = vadd.f32 %v3071_v34, %v1476_v52  ;;  %2273 = vtanh.f32 %v1479_v53 }
0x166a   :  { %2275 = vtanh.f32 %v1480_v36 }
0x166e   :  { %v2274_v63 = vpop.eup %2273 }
0x166f   :  { %v1483_v55 = vmul.f32 %v3074_v54, %v2274_v63 }
0x1670   :  { %v2276_v38 = vpop.eup %2275 }
0x1671   :  { %v1485_v39 = vsel %vm250_vm0, %v1483_v55, 0.0  ;;  %v1484_v35 = vmul.f32 %v3074_v54, %v2276_v38 }
0x1672   :  { %1486 = vadd.xlane.f32.xlu1 %v1485_v39 }
0x1673   :  { %v1488_v41 = vsel %vm250_vm0, %v1484_v35, 0.0 }
0x1674   :  { %1489 = vadd.xlane.f32.xlu2 %v1488_v41 }
0x168c   :  { %1696 = vrot.lane.b32.xlu2 %v3213_v43, %s2623_s8 }
0x16e5   :  { %v1487_v32 = vpop.xlane.xlu1 %1486 }
0x16e6   :  { %v1491_v34 = vadd.f32 %v3088_v42, %v1487_v32 }
0x16e7   :  { %v1490_v45 = vpop.xlane.xlu2 %1489 }
0x16e8   :  { %v1493_v47 = vsel %vm327_vm2, %v1491_v34, -inf  ;;  %v1492_v8 = vadd.f32 %v3095_v46, %v1490_v45 }
0x16e9   :  { %v1494_v4 = vrot.slane %v1493_v47, 4 }
0x16ea   :  { %v1500_v54 = vsel %vm327_vm2, %v1492_v8, -inf }
0x16eb   :  { %v1495_v10 = vmax.f32 %v1493_v47, %v1494_v4  ;;  %v1501_v27 = vrot.slane %v1500_v54, 4 }
0x16ed   :  { %v1496_v1 = vrot.slane %v1495_v10, 2  ;;  %v1502_v9 = vmax.f32 %v1500_v54, %v1501_v27 }
0x16ef   :  { %v1497_v3 = vmax.f32 %v1495_v10, %v1496_v1  ;;  %v1503_v12 = vrot.slane %v1502_v9, 2 }
0x16f1   :  { %v1498_v5 = vrot.slane %v1497_v3, 1  ;;  %v1504_v7 = vmax.f32 %v1502_v9, %v1503_v12  ;;  %v1468_v9 = vpop.f32.mrf.mxu2 }
0x16f3   :  { %v1499_v18 = vmax.f32 %v1497_v3, %v1498_v5  ;;  %v1505_v14 = vrot.slane %v1504_v7, 1  ;;  %v1472_v3 = vadd.f32 %v1468_v9, %v2857_v59 }
0x16f5   :  { %v1507_v11 = vsub.f32 %v1491_v34, %v1499_v18  ;;  %v1506_v42 = vmax.f32 %v1504_v7, %v1505_v14 }
0x16f7   :  { %v1509_v13 = vmul.f32 1.442695, %v1507_v11  ;;  %v1508_v15 = vsub.f32 %v1492_v8, %v1506_v42 }
0x16f9   :  { %2277 = vpow2.f32 %v1509_v13  ;;  %v1511_v61 = vmul.f32 1.442695, %v1508_v15 }
0x16fb   :  { %2279 = vpow2.f32 %v1511_v61 }
0x16ff   :  { %v2278_v46 = vpop.eup %2277 }
0x1700   :  { %v1513_v40 = vsel %vm327_vm2, %v2278_v46, 0.0 }
0x1701   :  { %v2280_v16 = vpop.eup %2279  ;;  %v1514_v57 = vrot.slane %v1513_v40, 4 }
0x1702   :  { %v1520_v25 = vsel %vm327_vm2, %v2280_v16, 0.0 }
0x1703   :  { %v1515_v21 = vadd.f32 %v1514_v57, %v1513_v40  ;;  %v1521_v26 = vrot.slane %v1520_v25, 4 }
0x1705   :  { %v1516_v22 = vrot.slane %v1515_v21, 2  ;;  %v1522_v20 = vadd.f32 %v1521_v26, %v1520_v25 }
0x1707   :  { %v1517_v24 = vadd.f32 %v1516_v22, %v1515_v21  ;;  %v1523_v29 = vrot.slane %v1522_v20, 2 }
0x1709   :  { %v1518_v60 = vrot.slane %v1517_v24, 1  ;;  %v1524_v62 = vadd.f32 %v1523_v29, %v1522_v20 }
0x170b   :  { %v1519_v33 = vadd.f32 %v1518_v60, %v1517_v24  ;;  %v1525_v28 = vrot.slane %v1524_v62, 1  ;;  %v3234_v24 = vadd.f32 %v2999_v2, %v212_v50 }
0x170d   :  { %2281 = vrcp.f32 %v1519_v33  ;;  %v1526_v17 = vadd.f32 %v1525_v28, %v1524_v62  ;;  %v1538_v36 = vand.u32 2147483648, %v1519_v33  ;;  %v1536_v55 = vand.u32 2147483647, %v1519_v33 }
0x170e   :  { %vm1532_vm9 = vweird.f32 %v1519_v33 }
0x170f   :  { %2283 = vrcp.f32 %v1526_v17  ;;  %v1539_v41 = vor.u32 1.1754944e-38, %v1538_v36  ;;  %vm1537_vm11 = vcmp.eq.f32.partialorder %v1536_v55, 8.507059e+37  ;;  %v1553_v47 = vand.u32 2147483648, %v1526_v17 }
0x1710   :  { %vm1547_vm14 = vweird.f32 %v1526_v17  ;;  %v1551_v4 = vand.u32 2147483647, %v1526_v17 }
0x1711   :  { %v1554_v10 = vor.u32 1.1754944e-38, %v1553_v47 }
0x1712   :  { %vm1552_vm3 = vcmp.eq.f32.partialorder %v1551_v4, 8.507059e+37 }
0x1713   :  { %v2282_v23 = vpop.eup %2281 }
0x1714   :  { %v1528_v0 = vmul.f32 %v2282_v23, %v1519_v33  ;;  %vm1533_vm8 = vweird.f32 %v2282_v23 }
0x1715   :  { %v2284_v19 = vpop.eup %2283  ;;  %vm1534_vm10 = vmor %vm1532_vm9, %vm1533_vm8 }
0x1716   :  { %v1529_v52 = vsub.f32 1.0, %v1528_v0  ;;  %v1543_v53 = vmul.f32 %v2284_v19, %v1526_v17  ;;  %vm1548_vm13 = vweird.f32 %v2284_v19 }
0x1717   :  { %vm1549_vm15 = vmor %vm1547_vm14, %vm1548_vm13  ;;  %vm2019_vm13 = vcmask 1043456   ;;  %vm2021_vm14 = vcmask 1045504  }
0x1718   :  { %v1530_v63 = vmul.f32 %v2282_v23, %v1529_v52  ;;  %v1544_v38 = vsub.f32 1.0, %v1543_v53 }
0x171a   :  { %v1531_v39 = vadd.f32 %v2282_v23, %v1530_v63  ;;  %v1545_v35 = vmul.f32 %v2284_v19, %v1544_v38 }
0x171c   :  { %v1535_v32 = vsel %vm1534_vm10, %v2282_v23, %v1531_v39  ;;  %v1546_v34 = vadd.f32 %v2284_v19, %v1545_v35 }
0x171d   :  { %v1540_v45 = vsel %vm1537_vm11, %v1539_v41, %v1535_v32 }
0x171e   :  { %v1541_v8 = vmul.f32 %v2278_v46, %v1540_v45  ;;  %v1550_v54 = vsel %vm1549_vm15, %v2284_v19, %v1546_v34 }
0x171f   :  { %v1555_v27 = vsel %vm1552_vm3, %v1554_v10, %v1550_v54 }
0x1720   :  { %1559 = vperm.xlu0 %2174, %v1541_v8   ;;  %v1556_v1 = vmul.f32 %v2280_v16, %v1555_v27 }
0x1728   :  { %1564 = vperm.xlu0 %2174, %v1556_v1  }
0x1730   :  { %1629 = vrot.lane.b32.xlu0 %v1472_v3, %s2625_s4 }
0x1792   :  { %v1560_v12 = vpop.permute.xlu0 %1559 }
0x1793   :  { %v1567_v5 = vmul.f32 %v3168_v6, %v1560_v12 }
0x1795   :  { %v1569_v7 = vsel %vm250_vm0, %v1567_v5, 0.0 }
0x1796   :  { %v1570_v18 = vrot.slane %v1569_v7, 4 }
0x1798   :  { %v1571_v14 = vadd.f32 %v1570_v18, %v1569_v7 }
0x179a   :  { %v1565_v11 = vpop.permute.xlu0 %1564  ;;  %v1572_v13 = vrot.slane %v1571_v14, 2 }
0x179b   :  { %v1568_v42 = vmul.f32 %v3175_v44, %v1565_v11 }
0x179c   :  { %v1573_v46 = vadd.f32 %v1572_v13, %v1571_v14 }
0x179d   :  { %v1576_v15 = vsel %vm250_vm0, %v1568_v42, 0.0 }
0x179e   :  { %v1577_v61 = vrot.slane %v1576_v15, 4  ;;  %v1574_v57 = vrot.slane %v1573_v46, 1 }
0x17a0   :  { %v1578_v40 = vadd.f32 %v1577_v61, %v1576_v15  ;;  %v1575_v26 = vadd.f32 %v1574_v57, %v1573_v46  ;;  %v1697_v15 = vpop.permute.xlu2 %1696 }
0x17a2   :  { %v1579_v16 = vrot.slane %v1578_v40, 2  ;;  %v1630_v63 = vpop.permute.xlu0 %1629 }
0x17a4   :  { %v1580_v25 = vadd.f32 %v1579_v16, %v1578_v40 }
0x17a6   :  { %v1581_v21 = vrot.slane %v1580_v25, 1 }
0x17a8   :  { %v1582_v22 = vadd.f32 %v1581_v21, %v1580_v25 }
0x17aa   :  { %v1585_v20 = vsel %vm420_vm12, %v1582_v22, %v1575_v26 }
0x17ab   :  { %2141 = vmatmul.msk.f32.vlgmr.msrb.gmra.mxu3 %vm250_vm0, %v1585_v20 }
0x182e   :  { %v1605_v29 = vpop.f32.mrf.mxu3 }
0x182f   :  { %v1606_v60 = vadd.f32 %v1605_v29, %v3234_v24 }
0x1831   :  { %v1608_v62 = vadd.f32 %v1606_v60, %v1472_v3 }
0x1833   :  { %v2142_v33 = vmul.f32 -1.442695, %v1608_v62 }
0x1835   :  { %2285 = vpow2.f32 %v2142_v33 }
0x183b   :  { %v2286_v28 = vpop.eup %2285 }
0x183c   :  { %v1612_v17 = vadd.f32 1.0, %v2286_v28 }
0x183e   :  { %2287 = vrcp.f32 %v1612_v17  ;;  %v1624_v52 = vand.u32 2147483648, %v1612_v17  ;;  %v1622_v36 = vand.u32 2147483647, %v1612_v17  ;;  %vm1618_vm5 = vweird.f32 %v1612_v17 }
0x1840   :  { %v1625_v50 = vor.u32 1.1754944e-38, %v1624_v52  ;;  %vm1623_vm7 = vcmp.eq.f32.partialorder %v1622_v36, 8.507059e+37 }
0x1844   :  { %v2288_v23 = vpop.eup %2287 }
0x1845   :  { %v1614_v0 = vmul.f32 %v2288_v23, %v1612_v17  ;;  %vm1619_vm4 = vweird.f32 %v2288_v23  ;;  %v2352_v17 = vld [vmem:[#allocation2] sm:$0xff] }
0x1846   :  { %vm1620_vm6 = vmor %vm1618_vm5, %vm1619_vm4 }
0x1847   :  { %v1615_v19 = vsub.f32 1.0, %v1614_v0  ;;  %v2353_v0 = vld [vmem:[#allocation2 + $0x8] sm:$0xff] }
0x1849   :  { %v1616_v53 = vmul.f32 %v2288_v23, %v1615_v19 }
0x184b   :  { %v1617_v58 = vadd.f32 %v2288_v23, %v1616_v53  ;;  %v2354_v53 = vld [vmem:[#allocation8] ss:$0 sm:$0xff] }
0x184d   :  { %v1621_v2 = vsel %vm1620_vm6, %v2288_v23, %v1617_v58 }
0x184e   :  { %v1626_v55 = vsel %vm1623_vm7, %v1625_v50, %v1621_v2 }
0x184f   :  { %v1632_v38 = vmul.f32 %v1630_v63, %v1626_v55  ;;  %v1639_v32 = vsub.f32 1.0, %v1626_v55  ;;  %v1645_v45 = vmul.f32 %v1626_v55, %v3191_v37 }
0x1851   :  { %1634 = vrot.lane.b32.xlu0 %v1632_v38, %s2625_s4  ;;  %v2006_v38 = vrot.slane %v3054_v30, 6  ;;  %v2355_v30 = vld [vmem:[%s3333_s2] sm:$0xff] }
0x18c3   :  { %v1635_v39 = vpop.permute.xlu0 %1634 }
0x18c4   :  { %v1637_v35 = vadd.f32 %v1635_v39, %v1606_v60  ;;  %v2009_v39 = vrot.slane %v3139_v48, 4 }
0x18c6   :  { %2289 = vtanh.f32 %v1637_v35  ;;  %v2012_v35 = vrot.slane %v3200_v31, 2 }
0x18cc   :  { %v2290_v41 = vpop.eup %2289 }
0x18cd   :  { %1641 = vrot.lane.b32.xlu0 %v2290_v41, %s2626_s29 }
0x18d5   :  { %1673 = vrot.lane.b32.xlu0 %v3213_v43, %s2626_s29 }
0x193f   :  { %v1642_v34 = vpop.permute.xlu0 %1641 }
0x1940   :  { %v1644_v47 = vmul.f32 %v1642_v34, %v1639_v32 }
0x1942   :  { %v3242_v8 = vadd.f32 %v1645_v45, %v1644_v47 }
0x1944   :  { %1648 = vrot.lane.b32.xlu1 %v3242_v8, %s2626_s29 }
0x1947   :  { %v1674_v27 = vpop.permute.xlu0 %1673 }
0x19b6   :  { %v1649_v4 = vpop.permute.xlu1 %1648 }
0x19b7   :  { %2143 = vmatmul.msk.f32.vlgmr.msra.gmra.mxu0 %vm250_vm0, %v1649_v4 }
0x1a34   :  { %v1669_v54 = vpop.f32.mrf.mxu0 }
0x1a35   :  { %v1670_v10 = vadd.f32 %v1669_v54, %v2970_v56 }
0x1a37   :  { %v1676_v1 = vadd.f32 %v1674_v27, %v1670_v10 }
0x1a39   :  { %v2144_v9 = vmul.f32 -1.442695, %v1676_v1 }
0x1a3b   :  { %2291 = vpow2.f32 %v2144_v9 }
0x1a41   :  { %v2292_v43 = vpop.eup %2291 }
0x1a42   :  { %v1680_v3 = vadd.f32 1.0, %v2292_v43 }
0x1a44   :  { %2293 = vrcp.f32 %v1680_v3  ;;  %v1692_v7 = vand.u32 2147483648, %v1680_v3  ;;  %v1690_v14 = vand.u32 2147483647, %v1680_v3  ;;  %vm1686_vm9 = vweird.f32 %v1680_v3 }
0x1a46   :  { %v1693_v42 = vor.u32 1.1754944e-38, %v1692_v7  ;;  %vm1691_vm11 = vcmp.eq.f32.partialorder %v1690_v14, 8.507059e+37 }
0x1a4a   :  { %v2294_v37 = vpop.eup %2293 }
0x1a4b   :  { %v1682_v12 = vmul.f32 %v2294_v37, %v1680_v3  ;;  %vm1687_vm8 = vweird.f32 %v2294_v37 }
0x1a4c   :  { %vm1688_vm10 = vmor %vm1686_vm9, %vm1687_vm8 }
0x1a4d   :  { %v1683_v5 = vsub.f32 1.0, %v1682_v12 }
0x1a4f   :  { %v1684_v18 = vmul.f32 %v2294_v37, %v1683_v5 }
0x1a51   :  { %v1685_v11 = vadd.f32 %v2294_v37, %v1684_v18 }
0x1a53   :  { %v1689_v13 = vsel %vm1688_vm10, %v2294_v37, %v1685_v11 }
0x1a54   :  { %v1694_v61 = vsel %vm1691_vm11, %v1693_v42, %v1689_v13 }
0x1a55   :  { %v1699_v46 = vmul.f32 %v1697_v15, %v1694_v61  ;;  %v1706_v25 = vsub.f32 1.0, %v1694_v61  ;;  %v1712_v26 = vmul.f32 %v1694_v61, %v3200_v31  ;;  %v2356_v31 = vld [vmem:[%s3333_s2 + $0x8] sm:$0xff] }
0x1a57   :  { %1701 = vrot.lane.b32.xlu0 %v1699_v46, %s2625_s4 }
0x1ac9   :  { %v1702_v40 = vpop.permute.xlu0 %1701 }
0x1aca   :  { %v1704_v16 = vadd.f32 %v1702_v40, %v1670_v10 }
0x1acc   :  { %2295 = vtanh.f32 %v1704_v16 }
0x1ad2   :  { %v2296_v57 = vpop.eup %2295 }
0x1ad3   :  { %1708 = vrot.lane.b32.xlu0 %v2296_v57, %s2626_s29 }
0x1b45   :  { %v1709_v21 = vpop.permute.xlu0 %1708 }
0x1b46   :  { %v1711_v22 = vmul.f32 %v1709_v21, %v1706_v25 }
0x1b48   :  { %v3251_v20 = vadd.f32 %v1712_v26, %v1711_v22 }
0x1b4a   :  { %v1715_v29 = vsel %vm250_vm0, %v1649_v4, %v3251_v20 }
0x1b4b   :  { %2145 = vmatmul.msk.f32.vlgmr.msra.gmra.mxu3 %vm252_vm1, %v1715_v29  ;;  %2146 = vmatmul.msk.f32.vlgmr.msrb.gmra.mxu0 %vm252_vm1, %v1715_v29  ;;  %vm2017_vm1 = vcmask 1041408  }
0x1b4c   :  { %v2018_v41 = vsel %vm2017_vm1, %v2977_v51, %v2006_v38 }
0x1b4d   :  { %v2020_v32 = vsel %vm2019_vm13, %v2018_v41, %v2009_v39 }
0x1b4e   :  { %v2022_v34 = vsel %vm2021_vm14, %v2020_v32, %v2012_v35  ;;  %vm2064_vm14 = vcmask 254976  }
0x1bce   :  { %v1736_v60 = vpop.f32.mrf.mxu3 }
0x1bcf   :  { %v1762_v62 = vrot.slane %v1736_v60, 1  ;;  %v1763_v33 = vperm.slane %v1736_v60, 0  ;;  %v3260_v55 = vadd.f32 %v1736_v60, %v2942_v49 }
0x1bd1   :  { %v1764_v28 = vperm.slane %v1762_v62, 0  ;;  %v1767_v23 = vadd.f32 %v2352_v17, %v1763_v33 }
0x1bd3   :  { %v1768_v19 = vadd.f32 %v2353_v0, %v1764_v28  ;;  %2297 = vtanh.f32 %v1767_v23 }
0x1bd5   :  { %2299 = vtanh.f32 %v1768_v19 }
0x1bd9   :  { %v2298_v52 = vpop.eup %2297 }
0x1bda   :  { %v1771_v36 = vmul.f32 %v2354_v53, %v2298_v52 }
0x1bdb   :  { %v2300_v58 = vpop.eup %2299 }
0x1bdc   :  { %v1773_v50 = vsel %vm250_vm0, %v1771_v36, 0.0  ;;  %v1772_v2 = vmul.f32 %v2354_v53, %v2300_v58 }
0x1bdd   :  { %1774 = vadd.xlane.f32.xlu1 %v1773_v50 }
0x1bde   :  { %v1776_v63 = vsel %vm250_vm0, %v1772_v2, 0.0 }
0x1bdf   :  { %1777 = vadd.xlane.f32.xlu0 %v1776_v63 }
0x1bf3   :  { %1987 = vrot.lane.b32.xlu0 %v3260_v55, %s2623_s8 }
0x1bfb   :  { %2030 = vrot.lane.b32.xlu0 %v2022_v34, %s2626_s29 }
0x1c50   :  { %v1775_v49 = vpop.xlane.xlu1 %1774 }
0x1c51   :  { %v1779_v45 = vadd.f32 %v2355_v30, %v1775_v49 }
0x1c52   :  { %v1778_v48 = vpop.xlane.xlu0 %1777 }
0x1c53   :  { %v1781_v47 = vsel %vm327_vm2, %v1779_v45, -inf  ;;  %v1780_v4 = vadd.f32 %v2356_v31, %v1778_v48 }
0x1c54   :  { %v1782_v51 = vrot.slane %v1781_v47, 4 }
0x1c55   :  { %v1788_v54 = vsel %vm327_vm2, %v1780_v4, -inf }
0x1c56   :  { %v1783_v10 = vmax.f32 %v1781_v47, %v1782_v51  ;;  %v1789_v27 = vrot.slane %v1788_v54, 4 }
0x1c58   :  { %v1784_v1 = vrot.slane %v1783_v10, 2  ;;  %v1790_v9 = vmax.f32 %v1788_v54, %v1789_v27  ;;  %v206_v54 = vld [vmem:[#allocation14 + $0x18] sm:$0xff]  ;;  %v204_v27 = vld [vmem:[#allocation14 + $0x8] sm:$0xff] }
0x1c59   :  { %2050 = vmatpush.msrb.mxu1 %v206_v54 }
0x1c5a   :  { %v1785_v43 = vmax.f32 %v1783_v10, %v1784_v1  ;;  %v1791_v3 = vrot.slane %v1790_v9, 2  ;;  %v205_v10 = vld [vmem:[#allocation14 + $0x10] sm:$0xff]  ;;  %v203_v1 = vld [vmem:[#allocation14] sm:$0xff] }
0x1c5b   :  { %2051 = vmatpush.msrb.mxu1 %v205_v10 }
0x1c5c   :  { %v1786_v37 = vrot.slane %v1785_v43, 1  ;;  %v1792_v12 = vmax.f32 %v1790_v9, %v1791_v3 }
0x1c5d   :  { %2052 = vmatpush.msrb.mxu1 %v204_v27 }
0x1c5e   :  { %v1787_v5 = vmax.f32 %v1785_v43, %v1786_v37  ;;  %v1793_v7 = vrot.slane %v1792_v12, 1 }
0x1c5f   :  { %2053 = vmatpush.msrb.mxu1 %v203_v1 }
0x1c60   :  { %v1795_v18 = vsub.f32 %v1779_v45, %v1787_v5  ;;  %v1794_v14 = vmax.f32 %v1792_v12, %v1793_v7 }
0x1c62   :  { %v1797_v11 = vmul.f32 1.442695, %v1795_v18  ;;  %v1796_v42 = vsub.f32 %v1780_v4, %v1794_v14  ;;  %v1756_v4 = vpop.f32.mrf.mxu0 }
0x1c63   :  { %v1760_v51 = vadd.f32 %v1756_v4, %v2857_v59 }
0x1c64   :  { %2301 = vpow2.f32 %v1797_v11  ;;  %v1799_v13 = vmul.f32 1.442695, %v1796_v42 }
0x1c66   :  { %2303 = vpow2.f32 %v1799_v13 }
0x1c6a   :  { %v2302_v15 = vpop.eup %2301 }
0x1c6b   :  { %v1801_v61 = vsel %vm327_vm2, %v2302_v15, 0.0 }
0x1c6c   :  { %v2304_v46 = vpop.eup %2303  ;;  %v1802_v40 = vrot.slane %v1801_v61, 4 }
0x1c6d   :  { %v1808_v16 = vsel %vm327_vm2, %v2304_v46, 0.0 }
0x1c6e   :  { %v1803_v57 = vadd.f32 %v1802_v40, %v1801_v61  ;;  %v1809_v25 = vrot.slane %v1808_v16, 4  ;;  %v3287_v40 = vpop.permute.xlu0 %1987 }
0x1c70   :  { %v1804_v21 = vrot.slane %v1803_v57, 2  ;;  %v1810_v26 = vadd.f32 %v1809_v25, %v1808_v16 }
0x1c72   :  { %v1805_v22 = vadd.f32 %v1804_v21, %v1803_v57  ;;  %v1811_v29 = vrot.slane %v1810_v26, 2 }
0x1c74   :  { %v1806_v60 = vrot.slane %v1805_v22, 1  ;;  %v1812_v62 = vadd.f32 %v1811_v29, %v1810_v26 }
0x1c76   :  { %v1807_v33 = vadd.f32 %v1806_v60, %v1805_v22  ;;  %v1813_v28 = vrot.slane %v1812_v62, 1  ;;  %v2031_v25 = vpop.permute.xlu0 %2030  ;;  %v3296_v60 = vld [vmem:[%s3343_s12] ss:$0 sm:$0xff]  ;;  %s2627_s12 = smov [#allocation17]  }
0x1c77   :  { %s2088_s20 = sshll.u32 %s2627_s12, 4  ;;  %s2089_s20 = int_to_ptr.vmem [resolvable:$true] %s2088_s20 }
0x1c78   :  { %2305 = vrcp.f32 %v1807_v33  ;;  %v1814_v17 = vadd.f32 %v1813_v28, %v1812_v62  ;;  %v1826_v36 = vand.u32 2147483648, %v1807_v33  ;;  %v1824_v50 = vand.u32 2147483647, %v1807_v33 }
0x1c79   :  { %vm1820_vm15 = vweird.f32 %v1807_v33 }
0x1c7a   :  { %2307 = vrcp.f32 %v1814_v17  ;;  %v1827_v39 = vor.u32 1.1754944e-38, %v1826_v36  ;;  %vm1825_vm4 = vcmp.eq.f32.partialorder %v1824_v50, 8.507059e+37  ;;  %v1841_v34 = vand.u32 2147483648, %v1814_v17 }
0x1c7b   :  { %vm1835_vm6 = vweird.f32 %v1814_v17  ;;  %v1839_v30 = vand.u32 2147483647, %v1814_v17 }
0x1c7c   :  { %v1842_v48 = vor.u32 1.1754944e-38, %v1841_v34 }
0x1c7d   :  { %vm1840_vm8 = vcmp.eq.f32.partialorder %v1839_v30, 8.507059e+37 }
0x1c7e   :  { %v2306_v23 = vpop.eup %2305 }
0x1c7f   :  { %v1816_v0 = vmul.f32 %v2306_v23, %v1807_v33  ;;  %vm1821_vm2 = vweird.f32 %v2306_v23 }
0x1c80   :  { %v2308_v19 = vpop.eup %2307  ;;  %vm1822_vm3 = vmor %vm1820_vm15, %vm1821_vm2 }
0x1c81   :  { %v1817_v52 = vsub.f32 1.0, %v1816_v0  ;;  %v1831_v53 = vmul.f32 %v2308_v19, %v1814_v17  ;;  %vm1836_vm5 = vweird.f32 %v2308_v19 }
0x1c82   :  { %vm1837_vm7 = vmor %vm1835_vm6, %vm1836_vm5 }
0x1c83   :  { %v1818_v58 = vmul.f32 %v2306_v23, %v1817_v52  ;;  %v1832_v2 = vsub.f32 1.0, %v1831_v53 }
0x1c85   :  { %v1819_v63 = vadd.f32 %v2306_v23, %v1818_v58  ;;  %v1833_v38 = vmul.f32 %v2308_v19, %v1832_v2 }
0x1c87   :  { %v1823_v35 = vsel %vm1822_vm3, %v2306_v23, %v1819_v63  ;;  %v1834_v41 = vadd.f32 %v2308_v19, %v1833_v38 }
0x1c88   :  { %v1828_v32 = vsel %vm1825_vm4, %v1827_v39, %v1823_v35 }
0x1c89   :  { %v1829_v49 = vmul.f32 %v2302_v15, %v1828_v32  ;;  %v1838_v45 = vsel %vm1837_vm7, %v2308_v19, %v1834_v41 }
0x1c8a   :  { %v1843_v47 = vsel %vm1840_vm8, %v1842_v48, %v1838_v45 }
0x1c8b   :  { %1847 = vperm.xlu2 %2173, %v1829_v49   ;;  %v1844_v31 = vmul.f32 %v2304_v46, %v1843_v47 }
0x1c93   :  { %1852 = vperm.xlu2 %2173, %v1844_v31  }
0x1c9b   :  { %1920 = vrot.lane.b32.xlu2 %v1760_v51, %s2625_s4 }
0x1ce5   :  { %v1848_v9 = vpop.permute.xlu2 %1847 }
0x1ce6   :  { %v1855_v43 = vmul.f32 %v3168_v6, %v1848_v9 }
0x1ce8   :  { %v1857_v3 = vsel %vm250_vm0, %v1855_v43, 0.0 }
0x1ce9   :  { %v1858_v37 = vrot.slane %v1857_v3, 4 }
0x1ceb   :  { %v1859_v12 = vadd.f32 %v1858_v37, %v1857_v3 }
0x1ced   :  { %v1853_v5 = vpop.permute.xlu2 %1852  ;;  %v1860_v7 = vrot.slane %v1859_v12, 2 }
0x1cee   :  { %v1856_v59 = vmul.f32 %v3175_v44, %v1853_v5  ;;  %v1875_v44 = vrot.slane %v3234_v24, 2 }
0x1cef   :  { %v1861_v11 = vadd.f32 %v1860_v7, %v1859_v12 }
0x1cf0   :  { %v1864_v18 = vsel %vm250_vm0, %v1856_v59, 0.0 }
0x1cf1   :  { %v1865_v14 = vrot.slane %v1864_v18, 4  ;;  %v1862_v15 = vrot.slane %v1861_v11, 1 }
0x1cf3   :  { %v1866_v42 = vadd.f32 %v1865_v14, %v1864_v18  ;;  %v1863_v6 = vadd.f32 %v1862_v15, %v1861_v11 }
0x1cf5   :  { %v1867_v13 = vrot.slane %v1866_v42, 2  ;;  %v1921_v2 = vpop.permute.xlu2 %1920 }
0x1cf7   :  { %v1868_v61 = vadd.f32 %v1867_v13, %v1866_v42 }
0x1cf9   :  { %v1869_v46 = vrot.slane %v1868_v61, 1 }
0x1cfb   :  { %v1870_v16 = vadd.f32 %v1869_v46, %v1868_v61 }
0x1cfd   :  { %v1873_v57 = vsel %vm420_vm12, %v1870_v16, %v1863_v6 }
0x1cfe   :  { %2147 = vmatmul.msk.f32.vlgmr.msra.gmra.mxu1 %vm250_vm0, %v1873_v57 }
0x1d06   :  { %2151 = vmatmul.msk.f32.vlgmr.msrb.gmra.mxu1 %vm250_vm0, %v2031_v25 }
0x1d7b   :  { %v1896_v21 = vpop.f32.mrf.mxu1 }
0x1d7c   :  { %v1897_v26 = vadd.f32 %v1896_v21, %v1875_v44 }
0x1d7e   :  { %v1899_v22 = vadd.f32 %v1897_v26, %v1760_v51 }
0x1d80   :  { %v2148_v29 = vmul.f32 -1.442695, %v1899_v22 }
0x1d82   :  { %2309 = vpow2.f32 %v2148_v29 }
0x1d83   :  { %v2055_v62 = vpop.f32.mrf.mxu1 }
0x1d84   :  { %v2056_v33 = vadd.f32 %v3296_v60, %v2055_v62 }
0x1d86   :  { %2061 = vst [vmem:[#allocation16] sm:$0xff] %v2056_v33 }
0x1d88   :  { %v2310_v28 = vpop.eup %2309 }
0x1d89   :  { %v1903_v17 = vadd.f32 1.0, %v2310_v28 }
0x1d8b   :  { %2311 = vrcp.f32 %v1903_v17  ;;  %v1915_v19 = vand.u32 2147483648, %v1903_v17  ;;  %v1913_v53 = vand.u32 2147483647, %v1903_v17  ;;  %vm1909_vm9 = vweird.f32 %v1903_v17 }
0x1d8d   :  { %v1916_v58 = vor.u32 1.1754944e-38, %v1915_v19  ;;  %vm1914_vm11 = vcmp.eq.f32.partialorder %v1913_v53, 8.507059e+37 }
0x1d91   :  { %v2312_v23 = vpop.eup %2311 }
0x1d92   :  { %v1905_v0 = vmul.f32 %v2312_v23, %v1903_v17  ;;  %vm1910_vm12 = vweird.f32 %v2312_v23 }
0x1d93   :  { %vm1911_vm10 = vmor %vm1909_vm9, %vm1910_vm12 }
0x1d94   :  { %v1906_v24 = vsub.f32 1.0, %v1905_v0 }
0x1d96   :  { %v1907_v52 = vmul.f32 %v2312_v23, %v1906_v24 }
0x1d98   :  { %v1908_v36 = vadd.f32 %v2312_v23, %v1907_v52 }
0x1d9a   :  { %v1912_v50 = vsel %vm1911_vm10, %v2312_v23, %v1908_v36 }
0x1d9b   :  { %v1917_v63 = vsel %vm1914_vm11, %v1916_v58, %v1912_v50 }
0x1d9c   :  { %v1923_v38 = vmul.f32 %v1921_v2, %v1917_v63  ;;  %v1930_v32 = vsub.f32 1.0, %v1917_v63  ;;  %v1936_v49 = vmul.f32 %v1917_v63, %v3242_v8 }
0x1d9e   :  { %1925 = vrot.lane.b32.xlu2 %v1923_v38, %s2625_s4 }
0x1df8   :  { %v1926_v39 = vpop.permute.xlu2 %1925 }
0x1df9   :  { %v1928_v35 = vadd.f32 %v1926_v39, %v1897_v26 }
0x1dfb   :  { %2313 = vtanh.f32 %v1928_v35 }
0x1e01   :  { %v2314_v41 = vpop.eup %2313 }
0x1e02   :  { %1932 = vrot.lane.b32.xlu2 %v2314_v41, %s2626_s29 }
0x1e0a   :  { %1964 = vrot.lane.b32.xlu2 %v3260_v55, %s2626_s29 }
0x1e5c   :  { %v1933_v34 = vpop.permute.xlu2 %1932 }
0x1e5d   :  { %v1935_v30 = vmul.f32 %v1933_v34, %v1930_v32 }
0x1e5f   :  { %v1937_v45 = vadd.f32 %v1936_v49, %v1935_v30 }
0x1e61   :  { %1939 = vrot.lane.b32.xlu1 %v1937_v45, %s2626_s29 }
0x1e64   :  { %v1965_v4 = vpop.permute.xlu2 %1964 }
0x1ed3   :  { %v1940_v48 = vpop.permute.xlu1 %1939 }
0x1ed4   :  { %2065 = vst.msk [vmem:[#allocation17] sm:$0x3] %vm2064_vm14, %v1940_v48  ;;  %2149 = vmatmul.msk.f32.vlgmr.msra.gmra.mxu2 %vm250_vm0, %v1940_v48 }
0x1f57   :  { %v1960_v47 = vpop.f32.mrf.mxu2 }
0x1f58   :  { %v1961_v31 = vadd.f32 %v1960_v47, %v2970_v56 }
0x1f5a   :  { %v1967_v51 = vadd.f32 %v1965_v4, %v1961_v31 }
0x1f5c   :  { %v2150_v55 = vmul.f32 -1.442695, %v1967_v51 }
0x1f5e   :  { %2315 = vpow2.f32 %v2150_v55 }
0x1f64   :  { %v2316_v54 = vpop.eup %2315 }
0x1f65   :  { %v1971_v10 = vadd.f32 1.0, %v2316_v54 }
0x1f67   :  { %2317 = vrcp.f32 %v1971_v10  ;;  %v1983_v9 = vand.u32 2147483648, %v1971_v10  ;;  %v1981_v3 = vand.u32 2147483647, %v1971_v10  ;;  %vm1977_vm15 = vweird.f32 %v1971_v10 }
0x1f69   :  { %v1984_v12 = vor.u32 1.1754944e-38, %v1983_v9  ;;  %vm1982_vm4 = vcmp.eq.f32.partialorder %v1981_v3, 8.507059e+37 }
0x1f6d   :  { %v2318_v8 = vpop.eup %2317 }
0x1f6e   :  { %v1973_v27 = vmul.f32 %v2318_v8, %v1971_v10  ;;  %vm1978_vm2 = vweird.f32 %v2318_v8 }
0x1f6f   :  { %vm1979_vm3 = vmor %vm1977_vm15, %vm1978_vm2 }
0x1f70   :  { %v1974_v1 = vsub.f32 1.0, %v1973_v27 }
0x1f72   :  { %v1975_v43 = vmul.f32 %v2318_v8, %v1974_v1 }
0x1f74   :  { %v1976_v37 = vadd.f32 %v2318_v8, %v1975_v43 }
0x1f76   :  { %v1980_v5 = vsel %vm1979_vm3, %v2318_v8, %v1976_v37 }
0x1f77   :  { %v1985_v56 = vsel %vm1982_vm4, %v1984_v12, %v1980_v5 }
0x1f78   :  { %v1990_v59 = vmul.f32 %v3287_v40, %v1985_v56  ;;  %v1997_v11 = vsub.f32 1.0, %v1985_v56  ;;  %v2003_v13 = vmul.f32 %v1985_v56, %v3251_v20 }
0x1f7a   :  { %1992 = vrot.lane.b32.xlu2 %v1990_v59, %s2625_s4  ;;  %s2629_s4 = smov [#allocation16]  }
0x1f7b   :  { %s2075_s10 = sshll.u32 %s2629_s4, 4  ;;  %s2076_s10 = int_to_ptr.vmem [resolvable:$true] %s2075_s10 }
0x1fd4   :  { %v1993_v7 = vpop.permute.xlu2 %1992 }
0x1fd5   :  { %v1995_v18 = vadd.f32 %v1993_v7, %v1961_v31 }
0x1fd7   :  { %2319 = vtanh.f32 %v1995_v18 }
0x1fdd   :  { %v2320_v14 = vpop.eup %2319 }
0x1fde   :  { %1999 = vrot.lane.b32.xlu2 %v2320_v14, %s2626_s29 }
0x2038   :  { %v2000_v42 = vpop.permute.xlu2 %1999 }
0x2039   :  { %v2002_v15 = vmul.f32 %v2000_v42, %v1997_v11 }
0x203b   :  { %v2004_v61 = vadd.f32 %v2003_v13, %v2002_v15 }
0x203d   :  { %v2015_v46 = vrot.slane %v2004_v61, 6  ;;  %2066 = vrot.lane.b32.xlu1 %v2004_v61, %s2626_s29 }
0x203f   :  { %v2023_v40 = vsel %vm2017_vm1, %v3251_v20, %v2015_v46 }
0x2040   :  { %v2024_v6 = vsel %vm2019_vm13, %v2023_v40, 0.0 }
0x2041   :  { %2032 = vrot.lane.b32.xlu2 %v2024_v6, %s2626_s29 }
0x209b   :  { %v2033_v16 = vpop.permute.xlu2 %2032 }
0x209c   :  { %2152 = vmatmul.msk.f32.gmra.mxu1 %vm250_vm0, %v2033_v16 }
0x20af   :  { %v2067_v57 = vpop.permute.xlu1 %2066 }
0x20b0   :  { %2070 = vst.msk [vmem:[#allocation17 + $0x2] sm:$0x3] %vm2064_vm14, %v2067_v57 }
0x20b1   :  { %2096 = dma.vmem_to_hbm [thread:$0]  %s2089_s20, 64, %s2091_s25, [#allocation18], %s2623_s8, %s2623_s8, %s2628_s26  }
0x2119   :  { %v2058_v20 = vpop.f32.mrf.mxu1 }
0x211a   :  { %v2059_v25 = vadd.f32 %v3296_v60, %v2058_v20 }
0x211c   :  { %2062 = vst [vmem:[#allocation16 + $0x8] sm:$0xff] %v2059_v25 }
0x211d   :  { %2083 = dma.vmem_to_hbm [thread:$0]  %s2076_s10, 256, %s2078_s28, [#allocation4], %s2612_s21, %s2612_s21, %s2613_s22  }
0x211e   :  { %2607 = dma.done.wait [#allocation4], 256  }
0x211f   :  { %2608 = vsyncadd [#allocation4], 4294967040 }
0x2120   :  { %2609 = dma.done.wait [#allocation18], 64  }
0x2121   :  { %2610 = vsyncadd [#allocation18], 4294967232 }
0x2122   :  { %2105 = vsyncpa [#allocation3], 1 }
0x2123   :  { %2106 = vsyncpa [#allocation6], 1 }
0x2124   :  { %2107 = vsyncpa [#allocation9], 1 }
0x2125   :  { %2108 = vsyncpa [#allocation12], 1 }
0x2126   :  { %2109 = vsyncpa [#allocation15], 1 }
0x2127   :  { %2110 = vsyncpa [#allocation4], 1 }
0x2128   :  { %2111 = vsyncpa [#allocation18], 1 }

</bundles_post_ra>
